<compile_context>
chip_gen: v7x
topology: tpu7x:2x2x1
jax: 0.10.0
libtpu: 0.0.40
codegen_flags: <defaults>
</compile_context>

<pallas_src>
import functools
import math

import jax
import jax.numpy as jnp
from jax.experimental import pallas as pl


_NEG_INF = -1e30

_POOL_KEYS = ("gnn_w", "gnn_b", "lin_w", "lin_b",
              "att_w_q", "att_w_kT", "att_b",
              "le_w1T", "le_b1", "le_w2T", "le_w3T", "le_b3")
_N_CONV_REFS = 6
_N_POOL_REFS = len(_POOL_KEYS)          # 12 per pooling layer
_N_HEAD_REFS = 7


def _leaky_relu(v, slope=0.2):
    return jnp.where(v > 0, v, slope * v)


def _rt_dot(a, b):
    """a @ b.T  -- RHS-transposed matmul (contract last dim of both operands)."""
    return jax.lax.dot_general(a, b, (((1,), (1,)), ((), ())),
                               preferred_element_type=jnp.float32)


def _stage(x, adj, conv_w, conv_b, pp, n, k_keep, nhid):
    """GCNConv+ReLU -> ASAPooling -> global max/mean pool, fully in-register."""
    f32 = jnp.float32
    row_i = jax.lax.broadcasted_iota(jnp.int32, (n, n), 0)
    col_i = jax.lax.broadcasted_iota(jnp.int32, (n, n), 1)
    eye_b = row_i == col_i
    eye_f = jnp.where(eye_b, 1.0, 0.0)
    # add_remaining_self_loops(fill=1); the graph is structural / weight-1 throughout.
    adj_mask = jnp.where(eye_b | (adj > 0), 1.0, 0.0)            # [n, n] 0/1, symmetric

    # ---- shared GCN normalization  D^-1/2 (A + I) D^-1/2 ----
    deg_r = jnp.sum(adj_mask, axis=1, keepdims=True)             # [n, 1]
    deg_c = jnp.sum(adj_mask, axis=0, keepdims=True)             # [1, n]
    dinv_r = jnp.where(deg_r > 0, jax.lax.rsqrt(deg_r), 0.0)
    dinv_c = jnp.where(deg_c > 0, jax.lax.rsqrt(deg_c), 0.0)
    ahat = dinv_r * adj_mask * dinv_c                            # [n, n]

    # ---- GCNConv + ReLU (stage conv) ----
    h = jnp.dot(ahat, jnp.dot(x, conv_w, preferred_element_type=f32),
                preferred_element_type=f32) + conv_b
    h = jnp.maximum(h, 0.0)                                      # [n, H]

    # ---- ASAPooling: intra-cluster GCNConv (no activation), same ahat ----
    x_pool = jnp.dot(ahat, jnp.dot(h, pp["gnn_w"], preferred_element_type=f32),
                     preferred_element_type=f32) + pp["gnn_b"]   # [n, H]

    # per-target max over incoming neighbours (incl. self loop): 2-D running max,
    # no [N, N, H] broadcast (static unroll, n <= 16).
    x_q = jnp.full((n, nhid), _NEG_INF, f32)
    for j in range(n):
        contrib = jnp.where(adj_mask[:, j:j + 1] > 0, x_pool[j:j + 1, :], _NEG_INF)
        x_q = jnp.maximum(x_q, contrib)
    x_q = jnp.dot(x_q, pp["lin_w"], preferred_element_type=f32) + pp["lin_b"]

    # additive attention, target-major St[i, j]; leaky_relu then softmax over incoming j
    q_col = jnp.dot(x_q, pp["att_w_q"], preferred_element_type=f32) + pp["att_b"]  # [n,1]
    k_row = _rt_dot(pp["att_w_kT"], x_pool)                      # [1, n]
    raw = _leaky_relu(q_col + k_row)                             # [n, n]
    raw = jnp.where(adj_mask > 0, raw, _NEG_INF)
    mx = jnp.max(raw, axis=1, keepdims=True)
    e = jnp.exp(raw - mx) * adj_mask
    denom = jnp.sum(e, axis=1, keepdims=True)
    st = e * pl.reciprocal(denom, approx=True)                   # [n, n]

    # cluster representation: x_new[i] = sum_j St[i, j] * h[j]
    x_new = jnp.dot(st, h, preferred_element_type=f32)           # [n, H]

    # LEConv fitness, row layout:  out_i = sum_{j in N(i)} (W1 x_j + b1 - W2 x_i) + W3 x_i + b3
    a_row = _rt_dot(pp["le_w1T"], x_new) + pp["le_b1"]           # [1, n]
    b_row = _rt_dot(pp["le_w2T"], x_new)                         # [1, n]
    c_row = _rt_dot(pp["le_w3T"], x_new) + pp["le_b3"]           # [1, n]
    agg_row = jnp.dot(a_row, adj_mask, preferred_element_type=f32)
    fit_row = jax.nn.sigmoid(agg_row - deg_c * b_row + c_row)    # [1, n]
    fit_col = _rt_dot(eye_f, fit_row)                            # [n, 1] bit-exact transpose

    # ---- top-k cluster selection as a one-hot permutation matrix P [k, n] ----
    # rank_i = #{ j : f_j > f_i  or (f_j == f_i and j < i) }  (torch.topk ordering)
    better = (fit_col > fit_row) | ((fit_col == fit_row) & (row_i < col_i))
    rank = jnp.sum(better.astype(f32), axis=0, keepdims=True)    # [1, n]
    r_iota = jax.lax.broadcasted_iota(jnp.int32, (k_keep, n), 0).astype(f32)
    perm = (jnp.abs(rank - r_iota) < 0.5).astype(f32)            # [k, n]

    fit_sel = jnp.dot(perm, fit_col, preferred_element_type=f32)         # [k, 1]
    x_sel = jnp.dot(perm, x_new, preferred_element_type=f32) * fit_sel   # [k, H]

    # graph coarsening:  A' = S_sel^T (A + I) S_sel, diag removed; downstream layers
    # are unweighted (the reference forward discards edge_weight), so binarize.
    s_sel = jnp.dot(perm, st, preferred_element_type=f32)        # [k, n]
    tmp = jnp.dot(s_sel, adj_mask, preferred_element_type=f32)   # [k, n]
    ac = _rt_dot(tmp, s_sel)                                     # [k, k]
    kr = jax.lax.broadcasted_iota(jnp.int32, (k_keep, k_keep), 0)
    kc = jax.lax.broadcasted_iota(jnp.int32, (k_keep, k_keep), 1)
    ac = jnp.where(kr == kc, 0.0, ac)
    adj_new = (ac > 0).astype(f32)

    # per-stage readout [gmp | gap] (kept as two lane-dense [1, H] rows)
    gmp = jnp.max(x_sel, axis=0, keepdims=True)                  # [1, H]
    gap = jnp.sum(x_sel, axis=0, keepdims=True) * (1.0 / k_keep) # [1, H]
    return x_sel, adj_new, gmp, gap


def _asanet_kernel(*refs, ratio):
    x_ref, adj_ref = refs[0], refs[1]
    out_ref = refs[-1]
    prm = refs[2:-1]
    convs = prm[:_N_CONV_REFS]
    pool_prm = prm[_N_CONV_REFS:_N_CONV_REFS + 3 * _N_POOL_REFS]
    head = prm[_N_CONV_REFS + 3 * _N_POOL_REFS:]
    (l1a_ref, l1b_ref, l1bias_ref, l2w_ref, l2b_ref, l3w_ref, l3b_ref) = head

    f32 = jnp.float32
    nhid = convs[0].shape[1]

    x = x_ref[...].astype(f32)
    adj = adj_ref[...].astype(f32)
    n = x_ref.shape[0]

    gmp_sum = jnp.zeros((1, nhid), f32)
    gap_sum = jnp.zeros((1, nhid), f32)

    for s in range(3):                                           # static unroll over stages
        conv_w = convs[2 * s][...]
        conv_b = convs[2 * s + 1][...]
        pp = {key: pool_prm[_N_POOL_REFS * s + i][...]
              for i, key in enumerate(_POOL_KEYS)}
        k_keep = int(math.ceil(ratio * n))
        x, adj, gmp, gap = _stage(x, adj, conv_w, conv_b, pp, n, k_keep, nhid)
        gmp_sum = gmp_sum + gmp
        gap_sum = gap_sum + gap
        n = k_keep

    # x = x1 + x2 + x3 == [gmp_sum | gap_sum]; lin1 is pre-split so no concat is needed.
    h1 = (jnp.dot(gmp_sum, l1a_ref[...], preferred_element_type=f32)
          + jnp.dot(gap_sum, l1b_ref[...], preferred_element_type=f32)
          + l1bias_ref[...])
    h1 = jnp.maximum(h1, 0.0)
    # F.dropout(training=False) == identity
    h2 = jnp.maximum(jnp.dot(h1, l2w_ref[...], preferred_element_type=f32)
                     + l2b_ref[...], 0.0)
    logits = jnp.dot(h2, l3w_ref[...], preferred_element_type=f32) + l3b_ref[...]
    z = logits - jnp.max(logits, axis=-1, keepdims=True)
    out_ref[...] = z - jnp.log(jnp.sum(jnp.exp(z), axis=-1, keepdims=True))


def asanet_forward(flat_params, x, adj, ratio):
    """Entire ASANet forward in one pallas_call (everything resident in VMEM)."""
    num_classes = flat_params[-1].shape[1]
    return pl.pallas_call(
        functools.partial(_asanet_kernel, ratio=ratio),
        out_shape=jax.ShapeDtypeStruct((1, num_classes), jnp.float32),
    )(x, adj, *flat_params)


# ----------------------------- parameter init (pre-packed for the kernel) -----------------

def init_params(key, num_features, nhid, num_classes):
    """Returns the flat param list in kernel order; biases pre-reshaped to (1, n) and the
    row-oriented weight vectors pre-transposed once here (zero per-forward glue ops)."""
    def lin(k, fi, fo):
        kw, kb = jax.random.split(k)
        return (jax.random.normal(kw, (fi, fo), jnp.float32) * 0.1,
                jax.random.normal(kb, (fo,), jnp.float32) * 0.1)

    keys = iter(jax.random.split(key, 64))
    flat = []

    # conv1 / conv2 / conv3
    for fi in (num_features, nhid, nhid):
        w, b = lin(next(keys), fi, nhid)
        flat += [w, b.reshape(1, nhid)]

    # pool1 / pool2 / pool3  (order must match _POOL_KEYS)
    for _ in range(3):
        gnn_w, gnn_b = lin(next(keys), nhid, nhid)        # gnn_intra_cluster GCNConv
        lin_w, lin_b = lin(next(keys), nhid, nhid)        # self.lin
        att_w, att_b = lin(next(keys), 2 * nhid, 1)       # self.att: [x_q | x_pool_j] -> 1
        le_w1, le_b1 = lin(next(keys), nhid, 1)           # LEConv lin1 (bias)
        le_w2, _ = lin(next(keys), nhid, 1)               # LEConv lin2 (no bias)
        le_w3, le_b3 = lin(next(keys), nhid, 1)           # LEConv lin3 (bias)
        flat += [
            gnn_w, gnn_b.reshape(1, nhid),
            lin_w, lin_b.reshape(1, nhid),
            att_w[:nhid],                                 # [H, 1]  target (x_q) part
            att_w[nhid:].reshape(1, nhid),                # [1, H]  source (x_pool) part
            att_b.reshape(1, 1),
            le_w1.reshape(1, nhid), le_b1.reshape(1, 1),
            le_w2.reshape(1, nhid),
            le_w3.reshape(1, nhid), le_b3.reshape(1, 1),
        ]

    # MLP head (lin1 split into gmp / gap halves so the kernel never concatenates)
    w1, b1 = lin(next(keys), 2 * nhid, nhid)
    w2, b2 = lin(next(keys), nhid, nhid // 2)
    w3, b3 = lin(next(keys), nhid // 2, num_classes)
    flat += [w1[:nhid], w1[nhid:], b1.reshape(1, nhid),
             w2, b2.reshape(1, nhid // 2),
             w3, b3.reshape(1, num_classes)]

    assert len(flat) == _N_CONV_REFS + 3 * _N_POOL_REFS + _N_HEAD_REFS
    return flat


# ----------------------------- main -----------------------------

if __name__ == "__main__":
    NUM_FEATURES = 16
    NHID = 32
    NUM_CLASSES = 4
    POOL_RATIO = 0.5
    N_NODES = 16                                        # batch = zeros(N): one graph

    key = jax.random.PRNGKey(0)
    k_x, k_a, k_p = jax.random.split(key, 3)

    x = jax.random.normal(k_x, (N_NODES, NUM_FEATURES), jnp.float32)
    upper = (jax.random.uniform(k_a, (N_NODES, N_NODES)) < 0.35).astype(jnp.float32)
    upper = jnp.triu(upper, k=1)
    adj = upper + upper.T                               # symmetric 0/1, no self loops

    flat_params = init_params(k_p, NUM_FEATURES, NHID, NUM_CLASSES)

    fwd = jax.jit(functools.partial(asanet_forward, ratio=POOL_RATIO))
    out = jax.block_until_ready(fwd(flat_params, x, adj))

    assert out.shape == (1, NUM_CLASSES)
    assert bool(jnp.all(jnp.isfinite(out)))
    # log_softmax rows must sum to ~1 in probability space
    assert bool(jnp.allclose(jnp.sum(jnp.exp(out), axis=-1), 1.0, atol=1e-4))
    print("KERNEL_OK")
</pallas_src>

<mosaic_0001>
module attributes {stable_mosaic.version = 11 : i64} {
  func.func @_asanet_kernel(%arg0: memref<16x16xf32, #tpu.memory_space<vmem>>, %arg1: memref<16x16xf32, #tpu.memory_space<vmem>>, %arg2: memref<16x32xf32, #tpu.memory_space<vmem>>, %arg3: memref<1x32xf32, #tpu.memory_space<vmem>>, %arg4: memref<32x32xf32, #tpu.memory_space<vmem>>, %arg5: memref<1x32xf32, #tpu.memory_space<vmem>>, %arg6: memref<32x32xf32, #tpu.memory_space<vmem>>, %arg7: memref<1x32xf32, #tpu.memory_space<vmem>>, %arg8: memref<32x32xf32, #tpu.memory_space<vmem>>, %arg9: memref<1x32xf32, #tpu.memory_space<vmem>>, %arg10: memref<32x32xf32, #tpu.memory_space<vmem>>, %arg11: memref<1x32xf32, #tpu.memory_space<vmem>>, %arg12: memref<32x1xf32, #tpu.memory_space<vmem>>, %arg13: memref<1x32xf32, #tpu.memory_space<vmem>>, %arg14: memref<1x1xf32, #tpu.memory_space<vmem>>, %arg15: memref<1x32xf32, #tpu.memory_space<vmem>>, %arg16: memref<1x1xf32, #tpu.memory_space<vmem>>, %arg17: memref<1x32xf32, #tpu.memory_space<vmem>>, %arg18: memref<1x32xf32, #tpu.memory_space<vmem>>, %arg19: memref<1x1xf32, #tpu.memory_space<vmem>>, %arg20: memref<32x32xf32, #tpu.memory_space<vmem>>, %arg21: memref<1x32xf32, #tpu.memory_space<vmem>>, %arg22: memref<32x32xf32, #tpu.memory_space<vmem>>, %arg23: memref<1x32xf32, #tpu.memory_space<vmem>>, %arg24: memref<32x1xf32, #tpu.memory_space<vmem>>, %arg25: memref<1x32xf32, #tpu.memory_space<vmem>>, %arg26: memref<1x1xf32, #tpu.memory_space<vmem>>, %arg27: memref<1x32xf32, #tpu.memory_space<vmem>>, %arg28: memref<1x1xf32, #tpu.memory_space<vmem>>, %arg29: memref<1x32xf32, #tpu.memory_space<vmem>>, %arg30: memref<1x32xf32, #tpu.memory_space<vmem>>, %arg31: memref<1x1xf32, #tpu.memory_space<vmem>>, %arg32: memref<32x32xf32, #tpu.memory_space<vmem>>, %arg33: memref<1x32xf32, #tpu.memory_space<vmem>>, %arg34: memref<32x32xf32, #tpu.memory_space<vmem>>, %arg35: memref<1x32xf32, #tpu.memory_space<vmem>>, %arg36: memref<32x1xf32, #tpu.memory_space<vmem>>, %arg37: memref<1x32xf32, #tpu.memory_space<vmem>>, %arg38: memref<1x1xf32, #tpu.memory_space<vmem>>, %arg39: memref<1x32xf32, #tpu.memory_space<vmem>>, %arg40: memref<1x1xf32, #tpu.memory_space<vmem>>, %arg41: memref<1x32xf32, #tpu.memory_space<vmem>>, %arg42: memref<1x32xf32, #tpu.memory_space<vmem>>, %arg43: memref<1x1xf32, #tpu.memory_space<vmem>>, %arg44: memref<32x32xf32, #tpu.memory_space<vmem>>, %arg45: memref<32x32xf32, #tpu.memory_space<vmem>>, %arg46: memref<1x32xf32, #tpu.memory_space<vmem>>, %arg47: memref<32x16xf32, #tpu.memory_space<vmem>>, %arg48: memref<1x16xf32, #tpu.memory_space<vmem>>, %arg49: memref<16x4xf32, #tpu.memory_space<vmem>>, %arg50: memref<1x4xf32, #tpu.memory_space<vmem>>, %arg51: memref<1x4xf32, #tpu.memory_space<vmem>>) attributes {dimension_semantics = [], scalar_prefetch = 0 : i64, scratch_operands = 0 : i64, tpu.core_type = #tpu.core_type<tc>} {
    %c0 = arith.constant 0 : index
    %c0_0 = arith.constant 0 : index
    %0 = vector.load %arg0[%c0, %c0_0] : memref<16x16xf32, #tpu.memory_space<vmem>>, vector<16x16xf32>
    %c0_1 = arith.constant 0 : index
    %c0_2 = arith.constant 0 : index
    %1 = vector.load %arg1[%c0_1, %c0_2] : memref<16x16xf32, #tpu.memory_space<vmem>>, vector<16x16xf32>
    %cst = arith.constant 0.000000e+00 : f32
    %2 = vector.broadcast %cst : f32 to vector<1x32xf32>
    %cst_3 = arith.constant 0.000000e+00 : f32
    %3 = vector.broadcast %cst_3 : f32 to vector<1x32xf32>
    %c0_4 = arith.constant 0 : index
    %c0_5 = arith.constant 0 : index
    %4 = vector.load %arg2[%c0_4, %c0_5] : memref<16x32xf32, #tpu.memory_space<vmem>>, vector<16x32xf32>
    %c0_6 = arith.constant 0 : index
    %c0_7 = arith.constant 0 : index
    %5 = vector.load %arg3[%c0_6, %c0_7] : memref<1x32xf32, #tpu.memory_space<vmem>>, vector<1x32xf32>
    %c0_8 = arith.constant 0 : index
    %c0_9 = arith.constant 0 : index
    %6 = vector.load %arg8[%c0_8, %c0_9] : memref<32x32xf32, #tpu.memory_space<vmem>>, vector<32x32xf32>
    %c0_10 = arith.constant 0 : index
    %c0_11 = arith.constant 0 : index
    %7 = vector.load %arg9[%c0_10, %c0_11] : memref<1x32xf32, #tpu.memory_space<vmem>>, vector<1x32xf32>
    %c0_12 = arith.constant 0 : index
    %c0_13 = arith.constant 0 : index
    %8 = vector.load %arg10[%c0_12, %c0_13] : memref<32x32xf32, #tpu.memory_space<vmem>>, vector<32x32xf32>
    %c0_14 = arith.constant 0 : index
    %c0_15 = arith.constant 0 : index
    %9 = vector.load %arg11[%c0_14, %c0_15] : memref<1x32xf32, #tpu.memory_space<vmem>>, vector<1x32xf32>
    %c0_16 = arith.constant 0 : index
    %c0_17 = arith.constant 0 : index
    %10 = vector.load %arg12[%c0_16, %c0_17] : memref<32x1xf32, #tpu.memory_space<vmem>>, vector<32x1xf32>
    %c0_18 = arith.constant 0 : index
    %c0_19 = arith.constant 0 : index
    %11 = vector.load %arg13[%c0_18, %c0_19] : memref<1x32xf32, #tpu.memory_space<vmem>>, vector<1x32xf32>
    %c0_20 = arith.constant 0 : index
    %c0_21 = arith.constant 0 : index
    %12 = vector.load %arg14[%c0_20, %c0_21] : memref<1x1xf32, #tpu.memory_space<vmem>>, vector<1x1xf32>
    %c0_22 = arith.constant 0 : index
    %c0_23 = arith.constant 0 : index
    %13 = vector.load %arg15[%c0_22, %c0_23] : memref<1x32xf32, #tpu.memory_space<vmem>>, vector<1x32xf32>
    %c0_24 = arith.constant 0 : index
    %c0_25 = arith.constant 0 : index
    %14 = vector.load %arg16[%c0_24, %c0_25] : memref<1x1xf32, #tpu.memory_space<vmem>>, vector<1x1xf32>
    %c0_26 = arith.constant 0 : index
    %c0_27 = arith.constant 0 : index
    %15 = vector.load %arg17[%c0_26, %c0_27] : memref<1x32xf32, #tpu.memory_space<vmem>>, vector<1x32xf32>
    %c0_28 = arith.constant 0 : index
    %c0_29 = arith.constant 0 : index
    %16 = vector.load %arg18[%c0_28, %c0_29] : memref<1x32xf32, #tpu.memory_space<vmem>>, vector<1x32xf32>
    %c0_30 = arith.constant 0 : index
    %c0_31 = arith.constant 0 : index
    %17 = vector.load %arg19[%c0_30, %c0_31] : memref<1x1xf32, #tpu.memory_space<vmem>>, vector<1x1xf32>
    %18 = tpu.iota {dimensions = array<i32: 0>} : vector<16x16xi32>
    %19 = tpu.iota {dimensions = array<i32: 1>} : vector<16x16xi32>
    %20 = arith.cmpi eq, %18, %19 : vector<16x16xi32>
    %cst_32 = arith.constant 1.000000e+00 : f32
    %cst_33 = arith.constant 0.000000e+00 : f32
    %21 = vector.broadcast %cst_32 : f32 to vector<16x16xf32>
    %22 = vector.broadcast %cst_33 : f32 to vector<16x16xf32>
    %23 = arith.select %20, %21, %22 : vector<16x16xi1>, vector<16x16xf32>
    %cst_34 = arith.constant 0.000000e+00 : f32
    %24 = vector.broadcast %cst_34 : f32 to vector<16x16xf32>
    %25 = arith.cmpf ogt, %1, %24 : vector<16x16xf32>
    %26 = arith.ori %20, %25 : vector<16x16xi1>
    %cst_35 = arith.constant 1.000000e+00 : f32
    %cst_36 = arith.constant 0.000000e+00 : f32
    %27 = vector.broadcast %cst_35 : f32 to vector<16x16xf32>
    %28 = vector.broadcast %cst_36 : f32 to vector<16x16xf32>
    %29 = arith.select %26, %27, %28 : vector<16x16xi1>, vector<16x16xf32>
    %cst_37 = arith.constant dense<0.000000e+00> : vector<16xf32>
    %30 = vector.multi_reduction <add>, %29, %cst_37 [1] : vector<16x16xf32> to vector<16xf32>
    %31 = vector.shape_cast %30 : vector<16xf32> to vector<16x1xf32>
    %cst_38 = arith.constant dense<0.000000e+00> : vector<16xf32>
    %32 = vector.multi_reduction <add>, %29, %cst_38 [0] : vector<16x16xf32> to vector<16xf32>
    %33 = vector.shape_cast %32 : vector<16xf32> to vector<1x16xf32>
    %cst_39 = arith.constant 0.000000e+00 : f32
    %34 = vector.broadcast %cst_39 : f32 to vector<16x1xf32>
    %35 = arith.cmpf ogt, %31, %34 : vector<16x1xf32>
    %36 = math.rsqrt %31 : vector<16x1xf32>
    %cst_40 = arith.constant 0.000000e+00 : f32
    %37 = vector.broadcast %cst_40 : f32 to vector<16x1xf32>
    %38 = arith.select %35, %36, %37 : vector<16x1xi1>, vector<16x1xf32>
    %cst_41 = arith.constant 0.000000e+00 : f32
    %39 = vector.broadcast %cst_41 : f32 to vector<1x16xf32>
    %40 = arith.cmpf ogt, %33, %39 : vector<1x16xf32>
    %41 = math.rsqrt %33 : vector<1x16xf32>
    %cst_42 = arith.constant 0.000000e+00 : f32
    %42 = vector.broadcast %cst_42 : f32 to vector<1x16xf32>
    %43 = arith.select %40, %41, %42 : vector<1x16xi1>, vector<1x16xf32>
    %44 = vector.broadcast %38 : vector<16x1xf32> to vector<16x16xf32>
    %45 = arith.mulf %44, %29 : vector<16x16xf32>
    %46 = vector.broadcast %43 : vector<1x16xf32> to vector<16x16xf32>
    %47 = arith.mulf %45, %46 : vector<16x16xf32>
    %cst_43 = arith.constant dense<0.000000e+00> : vector<16x32xf32>
    %48 = tpu.matmul %0, %4, %cst_43 {dimension_numbers = #tpu.dot_dimension_numbers<[1], [0], [0], [1], [0, 0, 1, 1], [], []>} : vector<16x16xf32>, vector<16x32xf32>, vector<16x32xf32> -> vector<16x32xf32>
    %cst_44 = arith.constant dense<0.000000e+00> : vector<16x32xf32>
    %49 = tpu.matmul %47, %48, %cst_44 {dimension_numbers = #tpu.dot_dimension_numbers<[1], [0], [0], [1], [0, 0, 1, 1], [], []>} : vector<16x16xf32>, vector<16x32xf32>, vector<16x32xf32> -> vector<16x32xf32>
    %50 = vector.broadcast %5 : vector<1x32xf32> to vector<16x32xf32>
    %51 = arith.addf %49, %50 : vector<16x32xf32>
    %cst_45 = arith.constant 0.000000e+00 : f32
    %52 = vector.broadcast %cst_45 : f32 to vector<16x32xf32>
    %53 = arith.maximumf %51, %52 : vector<16x32xf32>
    %cst_46 = arith.constant dense<0.000000e+00> : vector<16x32xf32>
    %54 = tpu.matmul %53, %6, %cst_46 {dimension_numbers = #tpu.dot_dimension_numbers<[1], [0], [0], [1], [0, 0, 1, 1], [], []>} : vector<16x32xf32>, vector<32x32xf32>, vector<16x32xf32> -> vector<16x32xf32>
    %cst_47 = arith.constant dense<0.000000e+00> : vector<16x32xf32>
    %55 = tpu.matmul %47, %54, %cst_47 {dimension_numbers = #tpu.dot_dimension_numbers<[1], [0], [0], [1], [0, 0, 1, 1], [], []>} : vector<16x16xf32>, vector<16x32xf32>, vector<16x32xf32> -> vector<16x32xf32>
    %56 = vector.broadcast %7 : vector<1x32xf32> to vector<16x32xf32>
    %57 = arith.addf %55, %56 : vector<16x32xf32>
    %cst_48 = arith.constant -1.000000e+30 : f32
    %58 = vector.broadcast %cst_48 : f32 to vector<16x32xf32>
    %59 = vector.extract_strided_slice %29 {offsets = [0, 0], sizes = [16, 1], strides = [1, 1]} : vector<16x16xf32> to vector<16x1xf32>
    %cst_49 = arith.constant 0.000000e+00 : f32
    %60 = vector.broadcast %cst_49 : f32 to vector<16x1xf32>
    %61 = arith.cmpf ogt, %59, %60 : vector<16x1xf32>
    %62 = vector.extract_strided_slice %57 {offsets = [0, 0], sizes = [1, 32], strides = [1, 1]} : vector<16x32xf32> to vector<1x32xf32>
    %cst_50 = arith.constant -1.000000e+30 : f32
    %63 = vector.shape_cast %61 : vector<16x1xi1> to vector<16x1xi1>
    %64 = vector.broadcast %63 : vector<16x1xi1> to vector<16x32xi1>
    %65 = vector.shape_cast %62 : vector<1x32xf32> to vector<1x32xf32>
    %66 = vector.broadcast %65 : vector<1x32xf32> to vector<16x32xf32>
    %67 = vector.broadcast %cst_50 : f32 to vector<16x32xf32>
    %68 = arith.select %64, %66, %67 : vector<16x32xi1>, vector<16x32xf32>
    %69 = arith.maximumf %58, %68 : vector<16x32xf32>
    %70 = vector.extract_strided_slice %29 {offsets = [0, 1], sizes = [16, 1], strides = [1, 1]} : vector<16x16xf32> to vector<16x1xf32>
    %cst_51 = arith.constant 0.000000e+00 : f32
    %71 = vector.broadcast %cst_51 : f32 to vector<16x1xf32>
    %72 = arith.cmpf ogt, %70, %71 : vector<16x1xf32>
    %73 = vector.extract_strided_slice %57 {offsets = [1, 0], sizes = [1, 32], strides = [1, 1]} : vector<16x32xf32> to vector<1x32xf32>
    %cst_52 = arith.constant -1.000000e+30 : f32
    %74 = vector.shape_cast %72 : vector<16x1xi1> to vector<16x1xi1>
    %75 = vector.broadcast %74 : vector<16x1xi1> to vector<16x32xi1>
    %76 = vector.shape_cast %73 : vector<1x32xf32> to vector<1x32xf32>
    %77 = vector.broadcast %76 : vector<1x32xf32> to vector<16x32xf32>
    %78 = vector.broadcast %cst_52 : f32 to vector<16x32xf32>
    %79 = arith.select %75, %77, %78 : vector<16x32xi1>, vector<16x32xf32>
    %80 = arith.maximumf %69, %79 : vector<16x32xf32>
    %81 = vector.extract_strided_slice %29 {offsets = [0, 2], sizes = [16, 1], strides = [1, 1]} : vector<16x16xf32> to vector<16x1xf32>
    %cst_53 = arith.constant 0.000000e+00 : f32
    %82 = vector.broadcast %cst_53 : f32 to vector<16x1xf32>
    %83 = arith.cmpf ogt, %81, %82 : vector<16x1xf32>
    %84 = vector.extract_strided_slice %57 {offsets = [2, 0], sizes = [1, 32], strides = [1, 1]} : vector<16x32xf32> to vector<1x32xf32>
    %cst_54 = arith.constant -1.000000e+30 : f32
    %85 = vector.shape_cast %83 : vector<16x1xi1> to vector<16x1xi1>
    %86 = vector.broadcast %85 : vector<16x1xi1> to vector<16x32xi1>
    %87 = vector.shape_cast %84 : vector<1x32xf32> to vector<1x32xf32>
    %88 = vector.broadcast %87 : vector<1x32xf32> to vector<16x32xf32>
    %89 = vector.broadcast %cst_54 : f32 to vector<16x32xf32>
    %90 = arith.select %86, %88, %89 : vector<16x32xi1>, vector<16x32xf32>
    %91 = arith.maximumf %80, %90 : vector<16x32xf32>
    %92 = vector.extract_strided_slice %29 {offsets = [0, 3], sizes = [16, 1], strides = [1, 1]} : vector<16x16xf32> to vector<16x1xf32>
    %cst_55 = arith.constant 0.000000e+00 : f32
    %93 = vector.broadcast %cst_55 : f32 to vector<16x1xf32>
    %94 = arith.cmpf ogt, %92, %93 : vector<16x1xf32>
    %95 = vector.extract_strided_slice %57 {offsets = [3, 0], sizes = [1, 32], strides = [1, 1]} : vector<16x32xf32> to vector<1x32xf32>
    %cst_56 = arith.constant -1.000000e+30 : f32
    %96 = vector.shape_cast %94 : vector<16x1xi1> to vector<16x1xi1>
    %97 = vector.broadcast %96 : vector<16x1xi1> to vector<16x32xi1>
    %98 = vector.shape_cast %95 : vector<1x32xf32> to vector<1x32xf32>
    %99 = vector.broadcast %98 : vector<1x32xf32> to vector<16x32xf32>
    %100 = vector.broadcast %cst_56 : f32 to vector<16x32xf32>
    %101 = arith.select %97, %99, %100 : vector<16x32xi1>, vector<16x32xf32>
    %102 = arith.maximumf %91, %101 : vector<16x32xf32>
    %103 = vector.extract_strided_slice %29 {offsets = [0, 4], sizes = [16, 1], strides = [1, 1]} : vector<16x16xf32> to vector<16x1xf32>
    %cst_57 = arith.constant 0.000000e+00 : f32
    %104 = vector.broadcast %cst_57 : f32 to vector<16x1xf32>
    %105 = arith.cmpf ogt, %103, %104 : vector<16x1xf32>
    %106 = vector.extract_strided_slice %57 {offsets = [4, 0], sizes = [1, 32], strides = [1, 1]} : vector<16x32xf32> to vector<1x32xf32>
    %cst_58 = arith.constant -1.000000e+30 : f32
    %107 = vector.shape_cast %105 : vector<16x1xi1> to vector<16x1xi1>
    %108 = vector.broadcast %107 : vector<16x1xi1> to vector<16x32xi1>
    %109 = vector.shape_cast %106 : vector<1x32xf32> to vector<1x32xf32>
    %110 = vector.broadcast %109 : vector<1x32xf32> to vector<16x32xf32>
    %111 = vector.broadcast %cst_58 : f32 to vector<16x32xf32>
    %112 = arith.select %108, %110, %111 : vector<16x32xi1>, vector<16x32xf32>
    %113 = arith.maximumf %102, %112 : vector<16x32xf32>
    %114 = vector.extract_strided_slice %29 {offsets = [0, 5], sizes = [16, 1], strides = [1, 1]} : vector<16x16xf32> to vector<16x1xf32>
    %cst_59 = arith.constant 0.000000e+00 : f32
    %115 = vector.broadcast %cst_59 : f32 to vector<16x1xf32>
    %116 = arith.cmpf ogt, %114, %115 : vector<16x1xf32>
    %117 = vector.extract_strided_slice %57 {offsets = [5, 0], sizes = [1, 32], strides = [1, 1]} : vector<16x32xf32> to vector<1x32xf32>
    %cst_60 = arith.constant -1.000000e+30 : f32
    %118 = vector.shape_cast %116 : vector<16x1xi1> to vector<16x1xi1>
    %119 = vector.broadcast %118 : vector<16x1xi1> to vector<16x32xi1>
    %120 = vector.shape_cast %117 : vector<1x32xf32> to vector<1x32xf32>
    %121 = vector.broadcast %120 : vector<1x32xf32> to vector<16x32xf32>
    %122 = vector.broadcast %cst_60 : f32 to vector<16x32xf32>
    %123 = arith.select %119, %121, %122 : vector<16x32xi1>, vector<16x32xf32>
    %124 = arith.maximumf %113, %123 : vector<16x32xf32>
    %125 = vector.extract_strided_slice %29 {offsets = [0, 6], sizes = [16, 1], strides = [1, 1]} : vector<16x16xf32> to vector<16x1xf32>
    %cst_61 = arith.constant 0.000000e+00 : f32
    %126 = vector.broadcast %cst_61 : f32 to vector<16x1xf32>
    %127 = arith.cmpf ogt, %125, %126 : vector<16x1xf32>
    %128 = vector.extract_strided_slice %57 {offsets = [6, 0], sizes = [1, 32], strides = [1, 1]} : vector<16x32xf32> to vector<1x32xf32>
    %cst_62 = arith.constant -1.000000e+30 : f32
    %129 = vector.shape_cast %127 : vector<16x1xi1> to vector<16x1xi1>
    %130 = vector.broadcast %129 : vector<16x1xi1> to vector<16x32xi1>
    %131 = vector.shape_cast %128 : vector<1x32xf32> to vector<1x32xf32>
    %132 = vector.broadcast %131 : vector<1x32xf32> to vector<16x32xf32>
    %133 = vector.broadcast %cst_62 : f32 to vector<16x32xf32>
    %134 = arith.select %130, %132, %133 : vector<16x32xi1>, vector<16x32xf32>
    %135 = arith.maximumf %124, %134 : vector<16x32xf32>
    %136 = vector.extract_strided_slice %29 {offsets = [0, 7], sizes = [16, 1], strides = [1, 1]} : vector<16x16xf32> to vector<16x1xf32>
    %cst_63 = arith.constant 0.000000e+00 : f32
    %137 = vector.broadcast %cst_63 : f32 to vector<16x1xf32>
    %138 = arith.cmpf ogt, %136, %137 : vector<16x1xf32>
    %139 = vector.extract_strided_slice %57 {offsets = [7, 0], sizes = [1, 32], strides = [1, 1]} : vector<16x32xf32> to vector<1x32xf32>
    %cst_64 = arith.constant -1.000000e+30 : f32
    %140 = vector.shape_cast %138 : vector<16x1xi1> to vector<16x1xi1>
    %141 = vector.broadcast %140 : vector<16x1xi1> to vector<16x32xi1>
    %142 = vector.shape_cast %139 : vector<1x32xf32> to vector<1x32xf32>
    %143 = vector.broadcast %142 : vector<1x32xf32> to vector<16x32xf32>
    %144 = vector.broadcast %cst_64 : f32 to vector<16x32xf32>
    %145 = arith.select %141, %143, %144 : vector<16x32xi1>, vector<16x32xf32>
    %146 = arith.maximumf %135, %145 : vector<16x32xf32>
    %147 = vector.extract_strided_slice %29 {offsets = [0, 8], sizes = [16, 1], strides = [1, 1]} : vector<16x16xf32> to vector<16x1xf32>
    %cst_65 = arith.constant 0.000000e+00 : f32
    %148 = vector.broadcast %cst_65 : f32 to vector<16x1xf32>
    %149 = arith.cmpf ogt, %147, %148 : vector<16x1xf32>
    %150 = vector.extract_strided_slice %57 {offsets = [8, 0], sizes = [1, 32], strides = [1, 1]} : vector<16x32xf32> to vector<1x32xf32>
    %cst_66 = arith.constant -1.000000e+30 : f32
    %151 = vector.shape_cast %149 : vector<16x1xi1> to vector<16x1xi1>
    %152 = vector.broadcast %151 : vector<16x1xi1> to vector<16x32xi1>
    %153 = vector.shape_cast %150 : vector<1x32xf32> to vector<1x32xf32>
    %154 = vector.broadcast %153 : vector<1x32xf32> to vector<16x32xf32>
    %155 = vector.broadcast %cst_66 : f32 to vector<16x32xf32>
    %156 = arith.select %152, %154, %155 : vector<16x32xi1>, vector<16x32xf32>
    %157 = arith.maximumf %146, %156 : vector<16x32xf32>
    %158 = vector.extract_strided_slice %29 {offsets = [0, 9], sizes = [16, 1], strides = [1, 1]} : vector<16x16xf32> to vector<16x1xf32>
    %cst_67 = arith.constant 0.000000e+00 : f32
    %159 = vector.broadcast %cst_67 : f32 to vector<16x1xf32>
    %160 = arith.cmpf ogt, %158, %159 : vector<16x1xf32>
    %161 = vector.extract_strided_slice %57 {offsets = [9, 0], sizes = [1, 32], strides = [1, 1]} : vector<16x32xf32> to vector<1x32xf32>
    %cst_68 = arith.constant -1.000000e+30 : f32
    %162 = vector.shape_cast %160 : vector<16x1xi1> to vector<16x1xi1>
    %163 = vector.broadcast %162 : vector<16x1xi1> to vector<16x32xi1>
    %164 = vector.shape_cast %161 : vector<1x32xf32> to vector<1x32xf32>
    %165 = vector.broadcast %164 : vector<1x32xf32> to vector<16x32xf32>
    %166 = vector.broadcast %cst_68 : f32 to vector<16x32xf32>
    %167 = arith.select %163, %165, %166 : vector<16x32xi1>, vector<16x32xf32>
    %168 = arith.maximumf %157, %167 : vector<16x32xf32>
    %169 = vector.extract_strided_slice %29 {offsets = [0, 10], sizes = [16, 1], strides = [1, 1]} : vector<16x16xf32> to vector<16x1xf32>
    %cst_69 = arith.constant 0.000000e+00 : f32
    %170 = vector.broadcast %cst_69 : f32 to vector<16x1xf32>
    %171 = arith.cmpf ogt, %169, %170 : vector<16x1xf32>
    %172 = vector.extract_strided_slice %57 {offsets = [10, 0], sizes = [1, 32], strides = [1, 1]} : vector<16x32xf32> to vector<1x32xf32>
    %cst_70 = arith.constant -1.000000e+30 : f32
    %173 = vector.shape_cast %171 : vector<16x1xi1> to vector<16x1xi1>
    %174 = vector.broadcast %173 : vector<16x1xi1> to vector<16x32xi1>
    %175 = vector.shape_cast %172 : vector<1x32xf32> to vector<1x32xf32>
    %176 = vector.broadcast %175 : vector<1x32xf32> to vector<16x32xf32>
    %177 = vector.broadcast %cst_70 : f32 to vector<16x32xf32>
    %178 = arith.select %174, %176, %177 : vector<16x32xi1>, vector<16x32xf32>
    %179 = arith.maximumf %168, %178 : vector<16x32xf32>
    %180 = vector.extract_strided_slice %29 {offsets = [0, 11], sizes = [16, 1], strides = [1, 1]} : vector<16x16xf32> to vector<16x1xf32>
    %cst_71 = arith.constant 0.000000e+00 : f32
    %181 = vector.broadcast %cst_71 : f32 to vector<16x1xf32>
    %182 = arith.cmpf ogt, %180, %181 : vector<16x1xf32>
    %183 = vector.extract_strided_slice %57 {offsets = [11, 0], sizes = [1, 32], strides = [1, 1]} : vector<16x32xf32> to vector<1x32xf32>
    %cst_72 = arith.constant -1.000000e+30 : f32
    %184 = vector.shape_cast %182 : vector<16x1xi1> to vector<16x1xi1>
    %185 = vector.broadcast %184 : vector<16x1xi1> to vector<16x32xi1>
    %186 = vector.shape_cast %183 : vector<1x32xf32> to vector<1x32xf32>
    %187 = vector.broadcast %186 : vector<1x32xf32> to vector<16x32xf32>
    %188 = vector.broadcast %cst_72 : f32 to vector<16x32xf32>
    %189 = arith.select %185, %187, %188 : vector<16x32xi1>, vector<16x32xf32>
    %190 = arith.maximumf %179, %189 : vector<16x32xf32>
    %191 = vector.extract_strided_slice %29 {offsets = [0, 12], sizes = [16, 1], strides = [1, 1]} : vector<16x16xf32> to vector<16x1xf32>
    %cst_73 = arith.constant 0.000000e+00 : f32
    %192 = vector.broadcast %cst_73 : f32 to vector<16x1xf32>
    %193 = arith.cmpf ogt, %191, %192 : vector<16x1xf32>
    %194 = vector.extract_strided_slice %57 {offsets = [12, 0], sizes = [1, 32], strides = [1, 1]} : vector<16x32xf32> to vector<1x32xf32>
    %cst_74 = arith.constant -1.000000e+30 : f32
    %195 = vector.shape_cast %193 : vector<16x1xi1> to vector<16x1xi1>
    %196 = vector.broadcast %195 : vector<16x1xi1> to vector<16x32xi1>
    %197 = vector.shape_cast %194 : vector<1x32xf32> to vector<1x32xf32>
    %198 = vector.broadcast %197 : vector<1x32xf32> to vector<16x32xf32>
    %199 = vector.broadcast %cst_74 : f32 to vector<16x32xf32>
    %200 = arith.select %196, %198, %199 : vector<16x32xi1>, vector<16x32xf32>
    %201 = arith.maximumf %190, %200 : vector<16x32xf32>
    %202 = vector.extract_strided_slice %29 {offsets = [0, 13], sizes = [16, 1], strides = [1, 1]} : vector<16x16xf32> to vector<16x1xf32>
    %cst_75 = arith.constant 0.000000e+00 : f32
    %203 = vector.broadcast %cst_75 : f32 to vector<16x1xf32>
    %204 = arith.cmpf ogt, %202, %203 : vector<16x1xf32>
    %205 = vector.extract_strided_slice %57 {offsets = [13, 0], sizes = [1, 32], strides = [1, 1]} : vector<16x32xf32> to vector<1x32xf32>
    %cst_76 = arith.constant -1.000000e+30 : f32
    %206 = vector.shape_cast %204 : vector<16x1xi1> to vector<16x1xi1>
    %207 = vector.broadcast %206 : vector<16x1xi1> to vector<16x32xi1>
    %208 = vector.shape_cast %205 : vector<1x32xf32> to vector<1x32xf32>
    %209 = vector.broadcast %208 : vector<1x32xf32> to vector<16x32xf32>
    %210 = vector.broadcast %cst_76 : f32 to vector<16x32xf32>
    %211 = arith.select %207, %209, %210 : vector<16x32xi1>, vector<16x32xf32>
    %212 = arith.maximumf %201, %211 : vector<16x32xf32>
    %213 = vector.extract_strided_slice %29 {offsets = [0, 14], sizes = [16, 1], strides = [1, 1]} : vector<16x16xf32> to vector<16x1xf32>
    %cst_77 = arith.constant 0.000000e+00 : f32
    %214 = vector.broadcast %cst_77 : f32 to vector<16x1xf32>
    %215 = arith.cmpf ogt, %213, %214 : vector<16x1xf32>
    %216 = vector.extract_strided_slice %57 {offsets = [14, 0], sizes = [1, 32], strides = [1, 1]} : vector<16x32xf32> to vector<1x32xf32>
    %cst_78 = arith.constant -1.000000e+30 : f32
    %217 = vector.shape_cast %215 : vector<16x1xi1> to vector<16x1xi1>
    %218 = vector.broadcast %217 : vector<16x1xi1> to vector<16x32xi1>
    %219 = vector.shape_cast %216 : vector<1x32xf32> to vector<1x32xf32>
    %220 = vector.broadcast %219 : vector<1x32xf32> to vector<16x32xf32>
    %221 = vector.broadcast %cst_78 : f32 to vector<16x32xf32>
    %222 = arith.select %218, %220, %221 : vector<16x32xi1>, vector<16x32xf32>
    %223 = arith.maximumf %212, %222 : vector<16x32xf32>
    %224 = vector.extract_strided_slice %29 {offsets = [0, 15], sizes = [16, 1], strides = [1, 1]} : vector<16x16xf32> to vector<16x1xf32>
    %cst_79 = arith.constant 0.000000e+00 : f32
    %225 = vector.broadcast %cst_79 : f32 to vector<16x1xf32>
    %226 = arith.cmpf ogt, %224, %225 : vector<16x1xf32>
    %227 = vector.extract_strided_slice %57 {offsets = [15, 0], sizes = [1, 32], strides = [1, 1]} : vector<16x32xf32> to vector<1x32xf32>
    %cst_80 = arith.constant -1.000000e+30 : f32
    %228 = vector.shape_cast %226 : vector<16x1xi1> to vector<16x1xi1>
    %229 = vector.broadcast %228 : vector<16x1xi1> to vector<16x32xi1>
    %230 = vector.shape_cast %227 : vector<1x32xf32> to vector<1x32xf32>
    %231 = vector.broadcast %230 : vector<1x32xf32> to vector<16x32xf32>
    %232 = vector.broadcast %cst_80 : f32 to vector<16x32xf32>
    %233 = arith.select %229, %231, %232 : vector<16x32xi1>, vector<16x32xf32>
    %234 = arith.maximumf %223, %233 : vector<16x32xf32>
    %cst_81 = arith.constant dense<0.000000e+00> : vector<16x32xf32>
    %235 = tpu.matmul %234, %8, %cst_81 {dimension_numbers = #tpu.dot_dimension_numbers<[1], [0], [0], [1], [0, 0, 1, 1], [], []>} : vector<16x32xf32>, vector<32x32xf32>, vector<16x32xf32> -> vector<16x32xf32>
    %236 = vector.broadcast %9 : vector<1x32xf32> to vector<16x32xf32>
    %237 = arith.addf %235, %236 : vector<16x32xf32>
    %cst_82 = arith.constant dense<0.000000e+00> : vector<16x1xf32>
    %238 = tpu.matmul %237, %10, %cst_82 {dimension_numbers = #tpu.dot_dimension_numbers<[1], [0], [0], [1], [0, 0, 1, 1], [], []>} : vector<16x32xf32>, vector<32x1xf32>, vector<16x1xf32> -> vector<16x1xf32>
    %239 = vector.broadcast %12 : vector<1x1xf32> to vector<16x1xf32>
    %240 = arith.addf %238, %239 : vector<16x1xf32>
    %cst_83 = arith.constant dense<0.000000e+00> : vector<1x16xf32>
    %241 = tpu.matmul %11, %57, %cst_83 {dimension_numbers = #tpu.dot_dimension_numbers<[1], [1], [0], [0], [0, 0, 1, 0], [], []>} : vector<1x32xf32>, vector<16x32xf32>, vector<1x16xf32> -> vector<1x16xf32>
    %242 = vector.broadcast %240 : vector<16x1xf32> to vector<16x16xf32>
    %243 = vector.broadcast %241 : vector<1x16xf32> to vector<16x16xf32>
    %244 = arith.addf %242, %243 : vector<16x16xf32>
    %cst_84 = arith.constant 0.000000e+00 : f32
    %245 = vector.broadcast %cst_84 : f32 to vector<16x16xf32>
    %246 = arith.cmpf ogt, %244, %245 : vector<16x16xf32>
    %cst_85 = arith.constant 2.000000e-01 : f32
    %247 = vector.broadcast %cst_85 : f32 to vector<16x16xf32>
    %248 = arith.mulf %247, %244 : vector<16x16xf32>
    %249 = arith.select %246, %244, %248 : vector<16x16xi1>, vector<16x16xf32>
    %cst_86 = arith.constant 0.000000e+00 : f32
    %250 = vector.broadcast %cst_86 : f32 to vector<16x16xf32>
    %251 = arith.cmpf ogt, %29, %250 : vector<16x16xf32>
    %cst_87 = arith.constant -1.000000e+30 : f32
    %252 = vector.broadcast %cst_87 : f32 to vector<16x16xf32>
    %253 = arith.select %251, %249, %252 : vector<16x16xi1>, vector<16x16xf32>
    %cst_88 = arith.constant dense<0xFF800000> : vector<16xf32>
    %254 = vector.multi_reduction <maximumf>, %253, %cst_88 [1] : vector<16x16xf32> to vector<16xf32>
    %255 = vector.shape_cast %254 : vector<16xf32> to vector<16x1xf32>
    %256 = vector.broadcast %255 : vector<16x1xf32> to vector<16x16xf32>
    %257 = arith.subf %253, %256 : vector<16x16xf32>
    %258 = math.exp %257 : vector<16x16xf32>
    %259 = arith.mulf %258, %29 : vector<16x16xf32>
    %cst_89 = arith.constant dense<0.000000e+00> : vector<16xf32>
    %260 = vector.multi_reduction <add>, %259, %cst_89 [1] : vector<16x16xf32> to vector<16xf32>
    %261 = vector.shape_cast %260 : vector<16xf32> to vector<16x1xf32>
    %262 = tpu.reciprocal %261 {approx = true} : vector<16x1xf32> -> vector<16x1xf32>
    %263 = vector.broadcast %262 : vector<16x1xf32> to vector<16x16xf32>
    %264 = arith.mulf %259, %263 : vector<16x16xf32>
    %cst_90 = arith.constant dense<0.000000e+00> : vector<16x32xf32>
    %265 = tpu.matmul %264, %53, %cst_90 {dimension_numbers = #tpu.dot_dimension_numbers<[1], [0], [0], [1], [0, 0, 1, 1], [], []>} : vector<16x16xf32>, vector<16x32xf32>, vector<16x32xf32> -> vector<16x32xf32>
    %cst_91 = arith.constant dense<0.000000e+00> : vector<1x16xf32>
    %266 = tpu.matmul %13, %265, %cst_91 {dimension_numbers = #tpu.dot_dimension_numbers<[1], [1], [0], [0], [0, 0, 1, 0], [], []>} : vector<1x32xf32>, vector<16x32xf32>, vector<1x16xf32> -> vector<1x16xf32>
    %267 = vector.broadcast %14 : vector<1x1xf32> to vector<1x16xf32>
    %268 = arith.addf %266, %267 : vector<1x16xf32>
    %cst_92 = arith.constant dense<0.000000e+00> : vector<1x16xf32>
    %269 = tpu.matmul %15, %265, %cst_92 {dimension_numbers = #tpu.dot_dimension_numbers<[1], [1], [0], [0], [0, 0, 1, 0], [], []>} : vector<1x32xf32>, vector<16x32xf32>, vector<1x16xf32> -> vector<1x16xf32>
    %cst_93 = arith.constant dense<0.000000e+00> : vector<1x16xf32>
    %270 = tpu.matmul %16, %265, %cst_93 {dimension_numbers = #tpu.dot_dimension_numbers<[1], [1], [0], [0], [0, 0, 1, 0], [], []>} : vector<1x32xf32>, vector<16x32xf32>, vector<1x16xf32> -> vector<1x16xf32>
    %271 = vector.broadcast %17 : vector<1x1xf32> to vector<1x16xf32>
    %272 = arith.addf %270, %271 : vector<1x16xf32>
    %cst_94 = arith.constant dense<0.000000e+00> : vector<1x16xf32>
    %273 = tpu.matmul %268, %29, %cst_94 {dimension_numbers = #tpu.dot_dimension_numbers<[1], [0], [0], [1], [0, 0, 1, 1], [], []>} : vector<1x16xf32>, vector<16x16xf32>, vector<1x16xf32> -> vector<1x16xf32>
    %274 = arith.mulf %33, %269 : vector<1x16xf32>
    %275 = arith.subf %273, %274 : vector<1x16xf32>
    %276 = arith.addf %275, %272 : vector<1x16xf32>
    %277 = arith.negf %276 : vector<1x16xf32>
    %278 = math.exp %277 : vector<1x16xf32>
    %cst_95 = arith.constant 1.000000e+00 : f32
    %279 = vector.broadcast %cst_95 : f32 to vector<1x16xf32>
    %280 = arith.addf %279, %278 : vector<1x16xf32>
    %281 = arith.divf %279, %280 : vector<1x16xf32>
    %cst_96 = arith.constant dense<0.000000e+00> : vector<16x1xf32>
    %282 = tpu.matmul %23, %281, %cst_96 {dimension_numbers = #tpu.dot_dimension_numbers<[1], [1], [0], [0], [0, 0, 1, 0], [], []>} : vector<16x16xf32>, vector<1x16xf32>, vector<16x1xf32> -> vector<16x1xf32>
    %283 = vector.broadcast %282 : vector<16x1xf32> to vector<16x16xf32>
    %284 = vector.broadcast %281 : vector<1x16xf32> to vector<16x16xf32>
    %285 = arith.cmpf ogt, %283, %284 : vector<16x16xf32>
    %286 = vector.broadcast %282 : vector<16x1xf32> to vector<16x16xf32>
    %287 = vector.broadcast %281 : vector<1x16xf32> to vector<16x16xf32>
    %288 = arith.cmpf oeq, %286, %287 : vector<16x16xf32>
    %289 = arith.cmpi slt, %18, %19 : vector<16x16xi32>
    %290 = arith.andi %288, %289 : vector<16x16xi1>
    %291 = arith.ori %285, %290 : vector<16x16xi1>
    %292 = arith.extui %291 : vector<16x16xi1> to vector<16x16xi32>
    %293 = arith.sitofp %292 : vector<16x16xi32> to vector<16x16xf32>
    %cst_97 = arith.constant dense<0.000000e+00> : vector<16xf32>
    %294 = vector.multi_reduction <add>, %293, %cst_97 [0] : vector<16x16xf32> to vector<16xf32>
    %295 = vector.shape_cast %294 : vector<16xf32> to vector<1x16xf32>
    %296 = tpu.iota {dimensions = array<i32: 0>} : vector<8x16xi32>
    %297 = arith.sitofp %296 : vector<8x16xi32> to vector<8x16xf32>
    %298 = vector.broadcast %295 : vector<1x16xf32> to vector<8x16xf32>
    %299 = arith.subf %298, %297 : vector<8x16xf32>
    %300 = math.absf %299 : vector<8x16xf32>
    %cst_98 = arith.constant 5.000000e-01 : f32
    %301 = vector.broadcast %cst_98 : f32 to vector<8x16xf32>
    %302 = arith.cmpf olt, %300, %301 : vector<8x16xf32>
    %303 = arith.extui %302 : vector<8x16xi1> to vector<8x16xi32>
    %304 = arith.sitofp %303 : vector<8x16xi32> to vector<8x16xf32>
    %cst_99 = arith.constant dense<0.000000e+00> : vector<8x1xf32>
    %305 = tpu.matmul %304, %282, %cst_99 {dimension_numbers = #tpu.dot_dimension_numbers<[1], [0], [0], [1], [0, 0, 1, 1], [], []>} : vector<8x16xf32>, vector<16x1xf32>, vector<8x1xf32> -> vector<8x1xf32>
    %cst_100 = arith.constant dense<0.000000e+00> : vector<8x32xf32>
    %306 = tpu.matmul %304, %265, %cst_100 {dimension_numbers = #tpu.dot_dimension_numbers<[1], [0], [0], [1], [0, 0, 1, 1], [], []>} : vector<8x16xf32>, vector<16x32xf32>, vector<8x32xf32> -> vector<8x32xf32>
    %307 = vector.broadcast %305 : vector<8x1xf32> to vector<8x32xf32>
    %308 = arith.mulf %306, %307 : vector<8x32xf32>
    %cst_101 = arith.constant dense<0.000000e+00> : vector<8x16xf32>
    %309 = tpu.matmul %304, %264, %cst_101 {dimension_numbers = #tpu.dot_dimension_numbers<[1], [0], [0], [1], [0, 0, 1, 1], [], []>} : vector<8x16xf32>, vector<16x16xf32>, vector<8x16xf32> -> vector<8x16xf32>
    %cst_102 = arith.constant dense<0.000000e+00> : vector<8x16xf32>
    %310 = tpu.matmul %309, %29, %cst_102 {dimension_numbers = #tpu.dot_dimension_numbers<[1], [0], [0], [1], [0, 0, 1, 1], [], []>} : vector<8x16xf32>, vector<16x16xf32>, vector<8x16xf32> -> vector<8x16xf32>
    %cst_103 = arith.constant dense<0.000000e+00> : vector<8x8xf32>
    %311 = tpu.matmul %310, %309, %cst_103 {dimension_numbers = #tpu.dot_dimension_numbers<[1], [1], [0], [0], [0, 0, 1, 0], [], []>} : vector<8x16xf32>, vector<8x16xf32>, vector<8x8xf32> -> vector<8x8xf32>
    %312 = tpu.iota {dimensions = array<i32: 0>} : vector<8x8xi32>
    %313 = tpu.iota {dimensions = array<i32: 1>} : vector<8x8xi32>
    %314 = arith.cmpi eq, %312, %313 : vector<8x8xi32>
    %cst_104 = arith.constant 0.000000e+00 : f32
    %315 = vector.broadcast %cst_104 : f32 to vector<8x8xf32>
    %316 = arith.select %314, %315, %311 : vector<8x8xi1>, vector<8x8xf32>
    %cst_105 = arith.constant 0.000000e+00 : f32
    %317 = vector.broadcast %cst_105 : f32 to vector<8x8xf32>
    %318 = arith.cmpf ogt, %316, %317 : vector<8x8xf32>
    %319 = arith.extui %318 : vector<8x8xi1> to vector<8x8xi32>
    %320 = arith.sitofp %319 : vector<8x8xi32> to vector<8x8xf32>
    %cst_106 = arith.constant dense<0xFF800000> : vector<32xf32>
    %321 = vector.multi_reduction <maximumf>, %308, %cst_106 [0] : vector<8x32xf32> to vector<32xf32>
    %322 = vector.shape_cast %321 : vector<32xf32> to vector<1x32xf32>
    %cst_107 = arith.constant dense<0.000000e+00> : vector<32xf32>
    %323 = vector.multi_reduction <add>, %308, %cst_107 [0] : vector<8x32xf32> to vector<32xf32>
    %324 = vector.shape_cast %323 : vector<32xf32> to vector<1x32xf32>
    %cst_108 = arith.constant 1.250000e-01 : f32
    %325 = vector.broadcast %cst_108 : f32 to vector<1x32xf32>
    %326 = arith.mulf %324, %325 : vector<1x32xf32>
    %327 = arith.addf %2, %322 : vector<1x32xf32>
    %328 = arith.addf %3, %326 : vector<1x32xf32>
    %c0_109 = arith.constant 0 : index
    %c0_110 = arith.constant 0 : index
    %329 = vector.load %arg4[%c0_109, %c0_110] : memref<32x32xf32, #tpu.memory_space<vmem>>, vector<32x32xf32>
    %c0_111 = arith.constant 0 : index
    %c0_112 = arith.constant 0 : index
    %330 = vector.load %arg5[%c0_111, %c0_112] : memref<1x32xf32, #tpu.memory_space<vmem>>, vector<1x32xf32>
    %c0_113 = arith.constant 0 : index
    %c0_114 = arith.constant 0 : index
    %331 = vector.load %arg20[%c0_113, %c0_114] : memref<32x32xf32, #tpu.memory_space<vmem>>, vector<32x32xf32>
    %c0_115 = arith.constant 0 : index
    %c0_116 = arith.constant 0 : index
    %332 = vector.load %arg21[%c0_115, %c0_116] : memref<1x32xf32, #tpu.memory_space<vmem>>, vector<1x32xf32>
    %c0_117 = arith.constant 0 : index
    %c0_118 = arith.constant 0 : index
    %333 = vector.load %arg22[%c0_117, %c0_118] : memref<32x32xf32, #tpu.memory_space<vmem>>, vector<32x32xf32>
    %c0_119 = arith.constant 0 : index
    %c0_120 = arith.constant 0 : index
    %334 = vector.load %arg23[%c0_119, %c0_120] : memref<1x32xf32, #tpu.memory_space<vmem>>, vector<1x32xf32>
    %c0_121 = arith.constant 0 : index
    %c0_122 = arith.constant 0 : index
    %335 = vector.load %arg24[%c0_121, %c0_122] : memref<32x1xf32, #tpu.memory_space<vmem>>, vector<32x1xf32>
    %c0_123 = arith.constant 0 : index
    %c0_124 = arith.constant 0 : index
    %336 = vector.load %arg25[%c0_123, %c0_124] : memref<1x32xf32, #tpu.memory_space<vmem>>, vector<1x32xf32>
    %c0_125 = arith.constant 0 : index
    %c0_126 = arith.constant 0 : index
    %337 = vector.load %arg26[%c0_125, %c0_126] : memref<1x1xf32, #tpu.memory_space<vmem>>, vector<1x1xf32>
    %c0_127 = arith.constant 0 : index
    %c0_128 = arith.constant 0 : index
    %338 = vector.load %arg27[%c0_127, %c0_128] : memref<1x32xf32, #tpu.memory_space<vmem>>, vector<1x32xf32>
    %c0_129 = arith.constant 0 : index
    %c0_130 = arith.constant 0 : index
    %339 = vector.load %arg28[%c0_129, %c0_130] : memref<1x1xf32, #tpu.memory_space<vmem>>, vector<1x1xf32>
    %c0_131 = arith.constant 0 : index
    %c0_132 = arith.constant 0 : index
    %340 = vector.load %arg29[%c0_131, %c0_132] : memref<1x32xf32, #tpu.memory_space<vmem>>, vector<1x32xf32>
    %c0_133 = arith.constant 0 : index
    %c0_134 = arith.constant 0 : index
    %341 = vector.load %arg30[%c0_133, %c0_134] : memref<1x32xf32, #tpu.memory_space<vmem>>, vector<1x32xf32>
    %c0_135 = arith.constant 0 : index
    %c0_136 = arith.constant 0 : index
    %342 = vector.load %arg31[%c0_135, %c0_136] : memref<1x1xf32, #tpu.memory_space<vmem>>, vector<1x1xf32>
    %343 = tpu.iota {dimensions = array<i32: 0>} : vector<8x8xi32>
    %344 = tpu.iota {dimensions = array<i32: 1>} : vector<8x8xi32>
    %345 = arith.cmpi eq, %343, %344 : vector<8x8xi32>
    %cst_137 = arith.constant 1.000000e+00 : f32
    %cst_138 = arith.constant 0.000000e+00 : f32
    %346 = vector.broadcast %cst_137 : f32 to vector<8x8xf32>
    %347 = vector.broadcast %cst_138 : f32 to vector<8x8xf32>
    %348 = arith.select %345, %346, %347 : vector<8x8xi1>, vector<8x8xf32>
    %cst_139 = arith.constant 0.000000e+00 : f32
    %349 = vector.broadcast %cst_139 : f32 to vector<8x8xf32>
    %350 = arith.cmpf ogt, %320, %349 : vector<8x8xf32>
    %351 = arith.ori %345, %350 : vector<8x8xi1>
    %cst_140 = arith.constant 1.000000e+00 : f32
    %cst_141 = arith.constant 0.000000e+00 : f32
    %352 = vector.broadcast %cst_140 : f32 to vector<8x8xf32>
    %353 = vector.broadcast %cst_141 : f32 to vector<8x8xf32>
    %354 = arith.select %351, %352, %353 : vector<8x8xi1>, vector<8x8xf32>
    %cst_142 = arith.constant dense<0.000000e+00> : vector<8xf32>
    %355 = vector.multi_reduction <add>, %354, %cst_142 [1] : vector<8x8xf32> to vector<8xf32>
    %356 = vector.shape_cast %355 : vector<8xf32> to vector<8x1xf32>
    %cst_143 = arith.constant dense<0.000000e+00> : vector<8xf32>
    %357 = vector.multi_reduction <add>, %354, %cst_143 [0] : vector<8x8xf32> to vector<8xf32>
    %358 = vector.shape_cast %357 : vector<8xf32> to vector<1x8xf32>
    %cst_144 = arith.constant 0.000000e+00 : f32
    %359 = vector.broadcast %cst_144 : f32 to vector<8x1xf32>
    %360 = arith.cmpf ogt, %356, %359 : vector<8x1xf32>
    %361 = math.rsqrt %356 : vector<8x1xf32>
    %cst_145 = arith.constant 0.000000e+00 : f32
    %362 = vector.broadcast %cst_145 : f32 to vector<8x1xf32>
    %363 = arith.select %360, %361, %362 : vector<8x1xi1>, vector<8x1xf32>
    %cst_146 = arith.constant 0.000000e+00 : f32
    %364 = vector.broadcast %cst_146 : f32 to vector<1x8xf32>
    %365 = arith.cmpf ogt, %358, %364 : vector<1x8xf32>
    %366 = math.rsqrt %358 : vector<1x8xf32>
    %cst_147 = arith.constant 0.000000e+00 : f32
    %367 = vector.broadcast %cst_147 : f32 to vector<1x8xf32>
    %368 = arith.select %365, %366, %367 : vector<1x8xi1>, vector<1x8xf32>
    %369 = vector.broadcast %363 : vector<8x1xf32> to vector<8x8xf32>
    %370 = arith.mulf %369, %354 : vector<8x8xf32>
    %371 = vector.broadcast %368 : vector<1x8xf32> to vector<8x8xf32>
    %372 = arith.mulf %370, %371 : vector<8x8xf32>
    %cst_148 = arith.constant dense<0.000000e+00> : vector<8x32xf32>
    %373 = tpu.matmul %308, %329, %cst_148 {dimension_numbers = #tpu.dot_dimension_numbers<[1], [0], [0], [1], [0, 0, 1, 1], [], []>} : vector<8x32xf32>, vector<32x32xf32>, vector<8x32xf32> -> vector<8x32xf32>
    %cst_149 = arith.constant dense<0.000000e+00> : vector<8x32xf32>
    %374 = tpu.matmul %372, %373, %cst_149 {dimension_numbers = #tpu.dot_dimension_numbers<[1], [0], [0], [1], [0, 0, 1, 1], [], []>} : vector<8x8xf32>, vector<8x32xf32>, vector<8x32xf32> -> vector<8x32xf32>
    %375 = vector.broadcast %330 : vector<1x32xf32> to vector<8x32xf32>
    %376 = arith.addf %374, %375 : vector<8x32xf32>
    %cst_150 = arith.constant 0.000000e+00 : f32
    %377 = vector.broadcast %cst_150 : f32 to vector<8x32xf32>
    %378 = arith.maximumf %376, %377 : vector<8x32xf32>
    %cst_151 = arith.constant dense<0.000000e+00> : vector<8x32xf32>
    %379 = tpu.matmul %378, %331, %cst_151 {dimension_numbers = #tpu.dot_dimension_numbers<[1], [0], [0], [1], [0, 0, 1, 1], [], []>} : vector<8x32xf32>, vector<32x32xf32>, vector<8x32xf32> -> vector<8x32xf32>
    %cst_152 = arith.constant dense<0.000000e+00> : vector<8x32xf32>
    %380 = tpu.matmul %372, %379, %cst_152 {dimension_numbers = #tpu.dot_dimension_numbers<[1], [0], [0], [1], [0, 0, 1, 1], [], []>} : vector<8x8xf32>, vector<8x32xf32>, vector<8x32xf32> -> vector<8x32xf32>
    %381 = vector.broadcast %332 : vector<1x32xf32> to vector<8x32xf32>
    %382 = arith.addf %380, %381 : vector<8x32xf32>
    %cst_153 = arith.constant -1.000000e+30 : f32
    %383 = vector.broadcast %cst_153 : f32 to vector<8x32xf32>
    %384 = vector.extract_strided_slice %354 {offsets = [0, 0], sizes = [8, 1], strides = [1, 1]} : vector<8x8xf32> to vector<8x1xf32>
    %cst_154 = arith.constant 0.000000e+00 : f32
    %385 = vector.broadcast %cst_154 : f32 to vector<8x1xf32>
    %386 = arith.cmpf ogt, %384, %385 : vector<8x1xf32>
    %387 = vector.extract_strided_slice %382 {offsets = [0, 0], sizes = [1, 32], strides = [1, 1]} : vector<8x32xf32> to vector<1x32xf32>
    %cst_155 = arith.constant -1.000000e+30 : f32
    %388 = vector.shape_cast %386 : vector<8x1xi1> to vector<8x1xi1>
    %389 = vector.broadcast %388 : vector<8x1xi1> to vector<8x32xi1>
    %390 = vector.shape_cast %387 : vector<1x32xf32> to vector<1x32xf32>
    %391 = vector.broadcast %390 : vector<1x32xf32> to vector<8x32xf32>
    %392 = vector.broadcast %cst_155 : f32 to vector<8x32xf32>
    %393 = arith.select %389, %391, %392 : vector<8x32xi1>, vector<8x32xf32>
    %394 = arith.maximumf %383, %393 : vector<8x32xf32>
    %395 = vector.extract_strided_slice %354 {offsets = [0, 1], sizes = [8, 1], strides = [1, 1]} : vector<8x8xf32> to vector<8x1xf32>
    %cst_156 = arith.constant 0.000000e+00 : f32
    %396 = vector.broadcast %cst_156 : f32 to vector<8x1xf32>
    %397 = arith.cmpf ogt, %395, %396 : vector<8x1xf32>
    %398 = vector.extract_strided_slice %382 {offsets = [1, 0], sizes = [1, 32], strides = [1, 1]} : vector<8x32xf32> to vector<1x32xf32>
    %cst_157 = arith.constant -1.000000e+30 : f32
    %399 = vector.shape_cast %397 : vector<8x1xi1> to vector<8x1xi1>
    %400 = vector.broadcast %399 : vector<8x1xi1> to vector<8x32xi1>
    %401 = vector.shape_cast %398 : vector<1x32xf32> to vector<1x32xf32>
    %402 = vector.broadcast %401 : vector<1x32xf32> to vector<8x32xf32>
    %403 = vector.broadcast %cst_157 : f32 to vector<8x32xf32>
    %404 = arith.select %400, %402, %403 : vector<8x32xi1>, vector<8x32xf32>
    %405 = arith.maximumf %394, %404 : vector<8x32xf32>
    %406 = vector.extract_strided_slice %354 {offsets = [0, 2], sizes = [8, 1], strides = [1, 1]} : vector<8x8xf32> to vector<8x1xf32>
    %cst_158 = arith.constant 0.000000e+00 : f32
    %407 = vector.broadcast %cst_158 : f32 to vector<8x1xf32>
    %408 = arith.cmpf ogt, %406, %407 : vector<8x1xf32>
    %409 = vector.extract_strided_slice %382 {offsets = [2, 0], sizes = [1, 32], strides = [1, 1]} : vector<8x32xf32> to vector<1x32xf32>
    %cst_159 = arith.constant -1.000000e+30 : f32
    %410 = vector.shape_cast %408 : vector<8x1xi1> to vector<8x1xi1>
    %411 = vector.broadcast %410 : vector<8x1xi1> to vector<8x32xi1>
    %412 = vector.shape_cast %409 : vector<1x32xf32> to vector<1x32xf32>
    %413 = vector.broadcast %412 : vector<1x32xf32> to vector<8x32xf32>
    %414 = vector.broadcast %cst_159 : f32 to vector<8x32xf32>
    %415 = arith.select %411, %413, %414 : vector<8x32xi1>, vector<8x32xf32>
    %416 = arith.maximumf %405, %415 : vector<8x32xf32>
    %417 = vector.extract_strided_slice %354 {offsets = [0, 3], sizes = [8, 1], strides = [1, 1]} : vector<8x8xf32> to vector<8x1xf32>
    %cst_160 = arith.constant 0.000000e+00 : f32
    %418 = vector.broadcast %cst_160 : f32 to vector<8x1xf32>
    %419 = arith.cmpf ogt, %417, %418 : vector<8x1xf32>
    %420 = vector.extract_strided_slice %382 {offsets = [3, 0], sizes = [1, 32], strides = [1, 1]} : vector<8x32xf32> to vector<1x32xf32>
    %cst_161 = arith.constant -1.000000e+30 : f32
    %421 = vector.shape_cast %419 : vector<8x1xi1> to vector<8x1xi1>
    %422 = vector.broadcast %421 : vector<8x1xi1> to vector<8x32xi1>
    %423 = vector.shape_cast %420 : vector<1x32xf32> to vector<1x32xf32>
    %424 = vector.broadcast %423 : vector<1x32xf32> to vector<8x32xf32>
    %425 = vector.broadcast %cst_161 : f32 to vector<8x32xf32>
    %426 = arith.select %422, %424, %425 : vector<8x32xi1>, vector<8x32xf32>
    %427 = arith.maximumf %416, %426 : vector<8x32xf32>
    %428 = vector.extract_strided_slice %354 {offsets = [0, 4], sizes = [8, 1], strides = [1, 1]} : vector<8x8xf32> to vector<8x1xf32>
    %cst_162 = arith.constant 0.000000e+00 : f32
    %429 = vector.broadcast %cst_162 : f32 to vector<8x1xf32>
    %430 = arith.cmpf ogt, %428, %429 : vector<8x1xf32>
    %431 = vector.extract_strided_slice %382 {offsets = [4, 0], sizes = [1, 32], strides = [1, 1]} : vector<8x32xf32> to vector<1x32xf32>
    %cst_163 = arith.constant -1.000000e+30 : f32
    %432 = vector.shape_cast %430 : vector<8x1xi1> to vector<8x1xi1>
    %433 = vector.broadcast %432 : vector<8x1xi1> to vector<8x32xi1>
    %434 = vector.shape_cast %431 : vector<1x32xf32> to vector<1x32xf32>
    %435 = vector.broadcast %434 : vector<1x32xf32> to vector<8x32xf32>
    %436 = vector.broadcast %cst_163 : f32 to vector<8x32xf32>
    %437 = arith.select %433, %435, %436 : vector<8x32xi1>, vector<8x32xf32>
    %438 = arith.maximumf %427, %437 : vector<8x32xf32>
    %439 = vector.extract_strided_slice %354 {offsets = [0, 5], sizes = [8, 1], strides = [1, 1]} : vector<8x8xf32> to vector<8x1xf32>
    %cst_164 = arith.constant 0.000000e+00 : f32
    %440 = vector.broadcast %cst_164 : f32 to vector<8x1xf32>
    %441 = arith.cmpf ogt, %439, %440 : vector<8x1xf32>
    %442 = vector.extract_strided_slice %382 {offsets = [5, 0], sizes = [1, 32], strides = [1, 1]} : vector<8x32xf32> to vector<1x32xf32>
    %cst_165 = arith.constant -1.000000e+30 : f32
    %443 = vector.shape_cast %441 : vector<8x1xi1> to vector<8x1xi1>
    %444 = vector.broadcast %443 : vector<8x1xi1> to vector<8x32xi1>
    %445 = vector.shape_cast %442 : vector<1x32xf32> to vector<1x32xf32>
    %446 = vector.broadcast %445 : vector<1x32xf32> to vector<8x32xf32>
    %447 = vector.broadcast %cst_165 : f32 to vector<8x32xf32>
    %448 = arith.select %444, %446, %447 : vector<8x32xi1>, vector<8x32xf32>
    %449 = arith.maximumf %438, %448 : vector<8x32xf32>
    %450 = vector.extract_strided_slice %354 {offsets = [0, 6], sizes = [8, 1], strides = [1, 1]} : vector<8x8xf32> to vector<8x1xf32>
    %cst_166 = arith.constant 0.000000e+00 : f32
    %451 = vector.broadcast %cst_166 : f32 to vector<8x1xf32>
    %452 = arith.cmpf ogt, %450, %451 : vector<8x1xf32>
    %453 = vector.extract_strided_slice %382 {offsets = [6, 0], sizes = [1, 32], strides = [1, 1]} : vector<8x32xf32> to vector<1x32xf32>
    %cst_167 = arith.constant -1.000000e+30 : f32
    %454 = vector.shape_cast %452 : vector<8x1xi1> to vector<8x1xi1>
    %455 = vector.broadcast %454 : vector<8x1xi1> to vector<8x32xi1>
    %456 = vector.shape_cast %453 : vector<1x32xf32> to vector<1x32xf32>
    %457 = vector.broadcast %456 : vector<1x32xf32> to vector<8x32xf32>
    %458 = vector.broadcast %cst_167 : f32 to vector<8x32xf32>
    %459 = arith.select %455, %457, %458 : vector<8x32xi1>, vector<8x32xf32>
    %460 = arith.maximumf %449, %459 : vector<8x32xf32>
    %461 = vector.extract_strided_slice %354 {offsets = [0, 7], sizes = [8, 1], strides = [1, 1]} : vector<8x8xf32> to vector<8x1xf32>
    %cst_168 = arith.constant 0.000000e+00 : f32
    %462 = vector.broadcast %cst_168 : f32 to vector<8x1xf32>
    %463 = arith.cmpf ogt, %461, %462 : vector<8x1xf32>
    %464 = vector.extract_strided_slice %382 {offsets = [7, 0], sizes = [1, 32], strides = [1, 1]} : vector<8x32xf32> to vector<1x32xf32>
    %cst_169 = arith.constant -1.000000e+30 : f32
    %465 = vector.shape_cast %463 : vector<8x1xi1> to vector<8x1xi1>
    %466 = vector.broadcast %465 : vector<8x1xi1> to vector<8x32xi1>
    %467 = vector.shape_cast %464 : vector<1x32xf32> to vector<1x32xf32>
    %468 = vector.broadcast %467 : vector<1x32xf32> to vector<8x32xf32>
    %469 = vector.broadcast %cst_169 : f32 to vector<8x32xf32>
    %470 = arith.select %466, %468, %469 : vector<8x32xi1>, vector<8x32xf32>
    %471 = arith.maximumf %460, %470 : vector<8x32xf32>
    %cst_170 = arith.constant dense<0.000000e+00> : vector<8x32xf32>
    %472 = tpu.matmul %471, %333, %cst_170 {dimension_numbers = #tpu.dot_dimension_numbers<[1], [0], [0], [1], [0, 0, 1, 1], [], []>} : vector<8x32xf32>, vector<32x32xf32>, vector<8x32xf32> -> vector<8x32xf32>
    %473 = vector.broadcast %334 : vector<1x32xf32> to vector<8x32xf32>
    %474 = arith.addf %472, %473 : vector<8x32xf32>
    %cst_171 = arith.constant dense<0.000000e+00> : vector<8x1xf32>
    %475 = tpu.matmul %474, %335, %cst_171 {dimension_numbers = #tpu.dot_dimension_numbers<[1], [0], [0], [1], [0, 0, 1, 1], [], []>} : vector<8x32xf32>, vector<32x1xf32>, vector<8x1xf32> -> vector<8x1xf32>
    %476 = vector.broadcast %337 : vector<1x1xf32> to vector<8x1xf32>
    %477 = arith.addf %475, %476 : vector<8x1xf32>
    %cst_172 = arith.constant dense<0.000000e+00> : vector<1x8xf32>
    %478 = tpu.matmul %336, %382, %cst_172 {dimension_numbers = #tpu.dot_dimension_numbers<[1], [1], [0], [0], [0, 0, 1, 0], [], []>} : vector<1x32xf32>, vector<8x32xf32>, vector<1x8xf32> -> vector<1x8xf32>
    %479 = vector.broadcast %477 : vector<8x1xf32> to vector<8x8xf32>
    %480 = vector.broadcast %478 : vector<1x8xf32> to vector<8x8xf32>
    %481 = arith.addf %479, %480 : vector<8x8xf32>
    %cst_173 = arith.constant 0.000000e+00 : f32
    %482 = vector.broadcast %cst_173 : f32 to vector<8x8xf32>
    %483 = arith.cmpf ogt, %481, %482 : vector<8x8xf32>
    %cst_174 = arith.constant 2.000000e-01 : f32
    %484 = vector.broadcast %cst_174 : f32 to vector<8x8xf32>
    %485 = arith.mulf %484, %481 : vector<8x8xf32>
    %486 = arith.select %483, %481, %485 : vector<8x8xi1>, vector<8x8xf32>
    %cst_175 = arith.constant 0.000000e+00 : f32
    %487 = vector.broadcast %cst_175 : f32 to vector<8x8xf32>
    %488 = arith.cmpf ogt, %354, %487 : vector<8x8xf32>
    %cst_176 = arith.constant -1.000000e+30 : f32
    %489 = vector.broadcast %cst_176 : f32 to vector<8x8xf32>
    %490 = arith.select %488, %486, %489 : vector<8x8xi1>, vector<8x8xf32>
    %cst_177 = arith.constant dense<0xFF800000> : vector<8xf32>
    %491 = vector.multi_reduction <maximumf>, %490, %cst_177 [1] : vector<8x8xf32> to vector<8xf32>
    %492 = vector.shape_cast %491 : vector<8xf32> to vector<8x1xf32>
    %493 = vector.broadcast %492 : vector<8x1xf32> to vector<8x8xf32>
    %494 = arith.subf %490, %493 : vector<8x8xf32>
    %495 = math.exp %494 : vector<8x8xf32>
    %496 = arith.mulf %495, %354 : vector<8x8xf32>
    %cst_178 = arith.constant dense<0.000000e+00> : vector<8xf32>
    %497 = vector.multi_reduction <add>, %496, %cst_178 [1] : vector<8x8xf32> to vector<8xf32>
    %498 = vector.shape_cast %497 : vector<8xf32> to vector<8x1xf32>
    %499 = tpu.reciprocal %498 {approx = true} : vector<8x1xf32> -> vector<8x1xf32>
    %500 = vector.broadcast %499 : vector<8x1xf32> to vector<8x8xf32>
    %501 = arith.mulf %496, %500 : vector<8x8xf32>
    %cst_179 = arith.constant dense<0.000000e+00> : vector<8x32xf32>
    %502 = tpu.matmul %501, %378, %cst_179 {dimension_numbers = #tpu.dot_dimension_numbers<[1], [0], [0], [1], [0, 0, 1, 1], [], []>} : vector<8x8xf32>, vector<8x32xf32>, vector<8x32xf32> -> vector<8x32xf32>
    %cst_180 = arith.constant dense<0.000000e+00> : vector<1x8xf32>
    %503 = tpu.matmul %338, %502, %cst_180 {dimension_numbers = #tpu.dot_dimension_numbers<[1], [1], [0], [0], [0, 0, 1, 0], [], []>} : vector<1x32xf32>, vector<8x32xf32>, vector<1x8xf32> -> vector<1x8xf32>
    %504 = vector.broadcast %339 : vector<1x1xf32> to vector<1x8xf32>
    %505 = arith.addf %503, %504 : vector<1x8xf32>
    %cst_181 = arith.constant dense<0.000000e+00> : vector<1x8xf32>
    %506 = tpu.matmul %340, %502, %cst_181 {dimension_numbers = #tpu.dot_dimension_numbers<[1], [1], [0], [0], [0, 0, 1, 0], [], []>} : vector<1x32xf32>, vector<8x32xf32>, vector<1x8xf32> -> vector<1x8xf32>
    %cst_182 = arith.constant dense<0.000000e+00> : vector<1x8xf32>
    %507 = tpu.matmul %341, %502, %cst_182 {dimension_numbers = #tpu.dot_dimension_numbers<[1], [1], [0], [0], [0, 0, 1, 0], [], []>} : vector<1x32xf32>, vector<8x32xf32>, vector<1x8xf32> -> vector<1x8xf32>
    %508 = vector.broadcast %342 : vector<1x1xf32> to vector<1x8xf32>
    %509 = arith.addf %507, %508 : vector<1x8xf32>
    %cst_183 = arith.constant dense<0.000000e+00> : vector<1x8xf32>
    %510 = tpu.matmul %505, %354, %cst_183 {dimension_numbers = #tpu.dot_dimension_numbers<[1], [0], [0], [1], [0, 0, 1, 1], [], []>} : vector<1x8xf32>, vector<8x8xf32>, vector<1x8xf32> -> vector<1x8xf32>
    %511 = arith.mulf %358, %506 : vector<1x8xf32>
    %512 = arith.subf %510, %511 : vector<1x8xf32>
    %513 = arith.addf %512, %509 : vector<1x8xf32>
    %514 = arith.negf %513 : vector<1x8xf32>
    %515 = math.exp %514 : vector<1x8xf32>
    %cst_184 = arith.constant 1.000000e+00 : f32
    %516 = vector.broadcast %cst_184 : f32 to vector<1x8xf32>
    %517 = arith.addf %516, %515 : vector<1x8xf32>
    %518 = arith.divf %516, %517 : vector<1x8xf32>
    %cst_185 = arith.constant dense<0.000000e+00> : vector<8x1xf32>
    %519 = tpu.matmul %348, %518, %cst_185 {dimension_numbers = #tpu.dot_dimension_numbers<[1], [1], [0], [0], [0, 0, 1, 0], [], []>} : vector<8x8xf32>, vector<1x8xf32>, vector<8x1xf32> -> vector<8x1xf32>
    %520 = vector.broadcast %519 : vector<8x1xf32> to vector<8x8xf32>
    %521 = vector.broadcast %518 : vector<1x8xf32> to vector<8x8xf32>
    %522 = arith.cmpf ogt, %520, %521 : vector<8x8xf32>
    %523 = vector.broadcast %519 : vector<8x1xf32> to vector<8x8xf32>
    %524 = vector.broadcast %518 : vector<1x8xf32> to vector<8x8xf32>
    %525 = arith.cmpf oeq, %523, %524 : vector<8x8xf32>
    %526 = arith.cmpi slt, %343, %344 : vector<8x8xi32>
    %527 = arith.andi %525, %526 : vector<8x8xi1>
    %528 = arith.ori %522, %527 : vector<8x8xi1>
    %529 = arith.extui %528 : vector<8x8xi1> to vector<8x8xi32>
    %530 = arith.sitofp %529 : vector<8x8xi32> to vector<8x8xf32>
    %cst_186 = arith.constant dense<0.000000e+00> : vector<8xf32>
    %531 = vector.multi_reduction <add>, %530, %cst_186 [0] : vector<8x8xf32> to vector<8xf32>
    %532 = vector.shape_cast %531 : vector<8xf32> to vector<1x8xf32>
    %533 = tpu.iota {dimensions = array<i32: 0>} : vector<4x8xi32>
    %534 = arith.sitofp %533 : vector<4x8xi32> to vector<4x8xf32>
    %535 = vector.broadcast %532 : vector<1x8xf32> to vector<4x8xf32>
    %536 = arith.subf %535, %534 : vector<4x8xf32>
    %537 = math.absf %536 : vector<4x8xf32>
    %cst_187 = arith.constant 5.000000e-01 : f32
    %538 = vector.broadcast %cst_187 : f32 to vector<4x8xf32>
    %539 = arith.cmpf olt, %537, %538 : vector<4x8xf32>
    %540 = arith.extui %539 : vector<4x8xi1> to vector<4x8xi32>
    %541 = arith.sitofp %540 : vector<4x8xi32> to vector<4x8xf32>
    %cst_188 = arith.constant dense<0.000000e+00> : vector<4x1xf32>
    %542 = tpu.matmul %541, %519, %cst_188 {dimension_numbers = #tpu.dot_dimension_numbers<[1], [0], [0], [1], [0, 0, 1, 1], [], []>} : vector<4x8xf32>, vector<8x1xf32>, vector<4x1xf32> -> vector<4x1xf32>
    %cst_189 = arith.constant dense<0.000000e+00> : vector<4x32xf32>
    %543 = tpu.matmul %541, %502, %cst_189 {dimension_numbers = #tpu.dot_dimension_numbers<[1], [0], [0], [1], [0, 0, 1, 1], [], []>} : vector<4x8xf32>, vector<8x32xf32>, vector<4x32xf32> -> vector<4x32xf32>
    %544 = vector.broadcast %542 : vector<4x1xf32> to vector<4x32xf32>
    %545 = arith.mulf %543, %544 : vector<4x32xf32>
    %cst_190 = arith.constant dense<0.000000e+00> : vector<4x8xf32>
    %546 = tpu.matmul %541, %501, %cst_190 {dimension_numbers = #tpu.dot_dimension_numbers<[1], [0], [0], [1], [0, 0, 1, 1], [], []>} : vector<4x8xf32>, vector<8x8xf32>, vector<4x8xf32> -> vector<4x8xf32>
    %cst_191 = arith.constant dense<0.000000e+00> : vector<4x8xf32>
    %547 = tpu.matmul %546, %354, %cst_191 {dimension_numbers = #tpu.dot_dimension_numbers<[1], [0], [0], [1], [0, 0, 1, 1], [], []>} : vector<4x8xf32>, vector<8x8xf32>, vector<4x8xf32> -> vector<4x8xf32>
    %cst_192 = arith.constant dense<0.000000e+00> : vector<4x4xf32>
    %548 = tpu.matmul %547, %546, %cst_192 {dimension_numbers = #tpu.dot_dimension_numbers<[1], [1], [0], [0], [0, 0, 1, 0], [], []>} : vector<4x8xf32>, vector<4x8xf32>, vector<4x4xf32> -> vector<4x4xf32>
    %549 = tpu.iota {dimensions = array<i32: 0>} : vector<4x4xi32>
    %550 = tpu.iota {dimensions = array<i32: 1>} : vector<4x4xi32>
    %551 = arith.cmpi eq, %549, %550 : vector<4x4xi32>
    %cst_193 = arith.constant 0.000000e+00 : f32
    %552 = vector.broadcast %cst_193 : f32 to vector<4x4xf32>
    %553 = arith.select %551, %552, %548 : vector<4x4xi1>, vector<4x4xf32>
    %cst_194 = arith.constant 0.000000e+00 : f32
    %554 = vector.broadcast %cst_194 : f32 to vector<4x4xf32>
    %555 = arith.cmpf ogt, %553, %554 : vector<4x4xf32>
    %556 = arith.extui %555 : vector<4x4xi1> to vector<4x4xi32>
    %557 = arith.sitofp %556 : vector<4x4xi32> to vector<4x4xf32>
    %cst_195 = arith.constant dense<0xFF800000> : vector<32xf32>
    %558 = vector.multi_reduction <maximumf>, %545, %cst_195 [0] : vector<4x32xf32> to vector<32xf32>
    %559 = vector.shape_cast %558 : vector<32xf32> to vector<1x32xf32>
    %cst_196 = arith.constant dense<0.000000e+00> : vector<32xf32>
    %560 = vector.multi_reduction <add>, %545, %cst_196 [0] : vector<4x32xf32> to vector<32xf32>
    %561 = vector.shape_cast %560 : vector<32xf32> to vector<1x32xf32>
    %cst_197 = arith.constant 2.500000e-01 : f32
    %562 = vector.broadcast %cst_197 : f32 to vector<1x32xf32>
    %563 = arith.mulf %561, %562 : vector<1x32xf32>
    %564 = arith.addf %327, %559 : vector<1x32xf32>
    %565 = arith.addf %328, %563 : vector<1x32xf32>
    %c0_198 = arith.constant 0 : index
    %c0_199 = arith.constant 0 : index
    %566 = vector.load %arg6[%c0_198, %c0_199] : memref<32x32xf32, #tpu.memory_space<vmem>>, vector<32x32xf32>
    %c0_200 = arith.constant 0 : index
    %c0_201 = arith.constant 0 : index
    %567 = vector.load %arg7[%c0_200, %c0_201] : memref<1x32xf32, #tpu.memory_space<vmem>>, vector<1x32xf32>
    %c0_202 = arith.constant 0 : index
    %c0_203 = arith.constant 0 : index
    %568 = vector.load %arg32[%c0_202, %c0_203] : memref<32x32xf32, #tpu.memory_space<vmem>>, vector<32x32xf32>
    %c0_204 = arith.constant 0 : index
    %c0_205 = arith.constant 0 : index
    %569 = vector.load %arg33[%c0_204, %c0_205] : memref<1x32xf32, #tpu.memory_space<vmem>>, vector<1x32xf32>
    %c0_206 = arith.constant 0 : index
    %c0_207 = arith.constant 0 : index
    %570 = vector.load %arg34[%c0_206, %c0_207] : memref<32x32xf32, #tpu.memory_space<vmem>>, vector<32x32xf32>
    %c0_208 = arith.constant 0 : index
    %c0_209 = arith.constant 0 : index
    %571 = vector.load %arg35[%c0_208, %c0_209] : memref<1x32xf32, #tpu.memory_space<vmem>>, vector<1x32xf32>
    %c0_210 = arith.constant 0 : index
    %c0_211 = arith.constant 0 : index
    %572 = vector.load %arg36[%c0_210, %c0_211] : memref<32x1xf32, #tpu.memory_space<vmem>>, vector<32x1xf32>
    %c0_212 = arith.constant 0 : index
    %c0_213 = arith.constant 0 : index
    %573 = vector.load %arg37[%c0_212, %c0_213] : memref<1x32xf32, #tpu.memory_space<vmem>>, vector<1x32xf32>
    %c0_214 = arith.constant 0 : index
    %c0_215 = arith.constant 0 : index
    %574 = vector.load %arg38[%c0_214, %c0_215] : memref<1x1xf32, #tpu.memory_space<vmem>>, vector<1x1xf32>
    %c0_216 = arith.constant 0 : index
    %c0_217 = arith.constant 0 : index
    %575 = vector.load %arg39[%c0_216, %c0_217] : memref<1x32xf32, #tpu.memory_space<vmem>>, vector<1x32xf32>
    %c0_218 = arith.constant 0 : index
    %c0_219 = arith.constant 0 : index
    %576 = vector.load %arg40[%c0_218, %c0_219] : memref<1x1xf32, #tpu.memory_space<vmem>>, vector<1x1xf32>
    %c0_220 = arith.constant 0 : index
    %c0_221 = arith.constant 0 : index
    %577 = vector.load %arg41[%c0_220, %c0_221] : memref<1x32xf32, #tpu.memory_space<vmem>>, vector<1x32xf32>
    %c0_222 = arith.constant 0 : index
    %c0_223 = arith.constant 0 : index
    %578 = vector.load %arg42[%c0_222, %c0_223] : memref<1x32xf32, #tpu.memory_space<vmem>>, vector<1x32xf32>
    %c0_224 = arith.constant 0 : index
    %c0_225 = arith.constant 0 : index
    %579 = vector.load %arg43[%c0_224, %c0_225] : memref<1x1xf32, #tpu.memory_space<vmem>>, vector<1x1xf32>
    %580 = tpu.iota {dimensions = array<i32: 0>} : vector<4x4xi32>
    %581 = tpu.iota {dimensions = array<i32: 1>} : vector<4x4xi32>
    %582 = arith.cmpi eq, %580, %581 : vector<4x4xi32>
    %cst_226 = arith.constant 1.000000e+00 : f32
    %cst_227 = arith.constant 0.000000e+00 : f32
    %583 = vector.broadcast %cst_226 : f32 to vector<4x4xf32>
    %584 = vector.broadcast %cst_227 : f32 to vector<4x4xf32>
    %585 = arith.select %582, %583, %584 : vector<4x4xi1>, vector<4x4xf32>
    %cst_228 = arith.constant 0.000000e+00 : f32
    %586 = vector.broadcast %cst_228 : f32 to vector<4x4xf32>
    %587 = arith.cmpf ogt, %557, %586 : vector<4x4xf32>
    %588 = arith.ori %582, %587 : vector<4x4xi1>
    %cst_229 = arith.constant 1.000000e+00 : f32
    %cst_230 = arith.constant 0.000000e+00 : f32
    %589 = vector.broadcast %cst_229 : f32 to vector<4x4xf32>
    %590 = vector.broadcast %cst_230 : f32 to vector<4x4xf32>
    %591 = arith.select %588, %589, %590 : vector<4x4xi1>, vector<4x4xf32>
    %cst_231 = arith.constant dense<0.000000e+00> : vector<4xf32>
    %592 = vector.multi_reduction <add>, %591, %cst_231 [1] : vector<4x4xf32> to vector<4xf32>
    %593 = vector.shape_cast %592 : vector<4xf32> to vector<4x1xf32>
    %cst_232 = arith.constant dense<0.000000e+00> : vector<4xf32>
    %594 = vector.multi_reduction <add>, %591, %cst_232 [0] : vector<4x4xf32> to vector<4xf32>
    %595 = vector.shape_cast %594 : vector<4xf32> to vector<1x4xf32>
    %cst_233 = arith.constant 0.000000e+00 : f32
    %596 = vector.broadcast %cst_233 : f32 to vector<4x1xf32>
    %597 = arith.cmpf ogt, %593, %596 : vector<4x1xf32>
    %598 = math.rsqrt %593 : vector<4x1xf32>
    %cst_234 = arith.constant 0.000000e+00 : f32
    %599 = vector.broadcast %cst_234 : f32 to vector<4x1xf32>
    %600 = arith.select %597, %598, %599 : vector<4x1xi1>, vector<4x1xf32>
    %cst_235 = arith.constant 0.000000e+00 : f32
    %601 = vector.broadcast %cst_235 : f32 to vector<1x4xf32>
    %602 = arith.cmpf ogt, %595, %601 : vector<1x4xf32>
    %603 = math.rsqrt %595 : vector<1x4xf32>
    %cst_236 = arith.constant 0.000000e+00 : f32
    %604 = vector.broadcast %cst_236 : f32 to vector<1x4xf32>
    %605 = arith.select %602, %603, %604 : vector<1x4xi1>, vector<1x4xf32>
    %606 = vector.broadcast %600 : vector<4x1xf32> to vector<4x4xf32>
    %607 = arith.mulf %606, %591 : vector<4x4xf32>
    %608 = vector.broadcast %605 : vector<1x4xf32> to vector<4x4xf32>
    %609 = arith.mulf %607, %608 : vector<4x4xf32>
    %cst_237 = arith.constant dense<0.000000e+00> : vector<4x32xf32>
    %610 = tpu.matmul %545, %566, %cst_237 {dimension_numbers = #tpu.dot_dimension_numbers<[1], [0], [0], [1], [0, 0, 1, 1], [], []>} : vector<4x32xf32>, vector<32x32xf32>, vector<4x32xf32> -> vector<4x32xf32>
    %cst_238 = arith.constant dense<0.000000e+00> : vector<4x32xf32>
    %611 = tpu.matmul %609, %610, %cst_238 {dimension_numbers = #tpu.dot_dimension_numbers<[1], [0], [0], [1], [0, 0, 1, 1], [], []>} : vector<4x4xf32>, vector<4x32xf32>, vector<4x32xf32> -> vector<4x32xf32>
    %612 = vector.broadcast %567 : vector<1x32xf32> to vector<4x32xf32>
    %613 = arith.addf %611, %612 : vector<4x32xf32>
    %cst_239 = arith.constant 0.000000e+00 : f32
    %614 = vector.broadcast %cst_239 : f32 to vector<4x32xf32>
    %615 = arith.maximumf %613, %614 : vector<4x32xf32>
    %cst_240 = arith.constant dense<0.000000e+00> : vector<4x32xf32>
    %616 = tpu.matmul %615, %568, %cst_240 {dimension_numbers = #tpu.dot_dimension_numbers<[1], [0], [0], [1], [0, 0, 1, 1], [], []>} : vector<4x32xf32>, vector<32x32xf32>, vector<4x32xf32> -> vector<4x32xf32>
    %cst_241 = arith.constant dense<0.000000e+00> : vector<4x32xf32>
    %617 = tpu.matmul %609, %616, %cst_241 {dimension_numbers = #tpu.dot_dimension_numbers<[1], [0], [0], [1], [0, 0, 1, 1], [], []>} : vector<4x4xf32>, vector<4x32xf32>, vector<4x32xf32> -> vector<4x32xf32>
    %618 = vector.broadcast %569 : vector<1x32xf32> to vector<4x32xf32>
    %619 = arith.addf %617, %618 : vector<4x32xf32>
    %cst_242 = arith.constant -1.000000e+30 : f32
    %620 = vector.broadcast %cst_242 : f32 to vector<4x32xf32>
    %621 = vector.extract_strided_slice %591 {offsets = [0, 0], sizes = [4, 1], strides = [1, 1]} : vector<4x4xf32> to vector<4x1xf32>
    %cst_243 = arith.constant 0.000000e+00 : f32
    %622 = vector.broadcast %cst_243 : f32 to vector<4x1xf32>
    %623 = arith.cmpf ogt, %621, %622 : vector<4x1xf32>
    %624 = vector.extract_strided_slice %619 {offsets = [0, 0], sizes = [1, 32], strides = [1, 1]} : vector<4x32xf32> to vector<1x32xf32>
    %cst_244 = arith.constant -1.000000e+30 : f32
    %625 = vector.shape_cast %623 : vector<4x1xi1> to vector<4x1xi1>
    %626 = vector.broadcast %625 : vector<4x1xi1> to vector<4x32xi1>
    %627 = vector.shape_cast %624 : vector<1x32xf32> to vector<1x32xf32>
    %628 = vector.broadcast %627 : vector<1x32xf32> to vector<4x32xf32>
    %629 = vector.broadcast %cst_244 : f32 to vector<4x32xf32>
    %630 = arith.select %626, %628, %629 : vector<4x32xi1>, vector<4x32xf32>
    %631 = arith.maximumf %620, %630 : vector<4x32xf32>
    %632 = vector.extract_strided_slice %591 {offsets = [0, 1], sizes = [4, 1], strides = [1, 1]} : vector<4x4xf32> to vector<4x1xf32>
    %cst_245 = arith.constant 0.000000e+00 : f32
    %633 = vector.broadcast %cst_245 : f32 to vector<4x1xf32>
    %634 = arith.cmpf ogt, %632, %633 : vector<4x1xf32>
    %635 = vector.extract_strided_slice %619 {offsets = [1, 0], sizes = [1, 32], strides = [1, 1]} : vector<4x32xf32> to vector<1x32xf32>
    %cst_246 = arith.constant -1.000000e+30 : f32
    %636 = vector.shape_cast %634 : vector<4x1xi1> to vector<4x1xi1>
    %637 = vector.broadcast %636 : vector<4x1xi1> to vector<4x32xi1>
    %638 = vector.shape_cast %635 : vector<1x32xf32> to vector<1x32xf32>
    %639 = vector.broadcast %638 : vector<1x32xf32> to vector<4x32xf32>
    %640 = vector.broadcast %cst_246 : f32 to vector<4x32xf32>
    %641 = arith.select %637, %639, %640 : vector<4x32xi1>, vector<4x32xf32>
    %642 = arith.maximumf %631, %641 : vector<4x32xf32>
    %643 = vector.extract_strided_slice %591 {offsets = [0, 2], sizes = [4, 1], strides = [1, 1]} : vector<4x4xf32> to vector<4x1xf32>
    %cst_247 = arith.constant 0.000000e+00 : f32
    %644 = vector.broadcast %cst_247 : f32 to vector<4x1xf32>
    %645 = arith.cmpf ogt, %643, %644 : vector<4x1xf32>
    %646 = vector.extract_strided_slice %619 {offsets = [2, 0], sizes = [1, 32], strides = [1, 1]} : vector<4x32xf32> to vector<1x32xf32>
    %cst_248 = arith.constant -1.000000e+30 : f32
    %647 = vector.shape_cast %645 : vector<4x1xi1> to vector<4x1xi1>
    %648 = vector.broadcast %647 : vector<4x1xi1> to vector<4x32xi1>
    %649 = vector.shape_cast %646 : vector<1x32xf32> to vector<1x32xf32>
    %650 = vector.broadcast %649 : vector<1x32xf32> to vector<4x32xf32>
    %651 = vector.broadcast %cst_248 : f32 to vector<4x32xf32>
    %652 = arith.select %648, %650, %651 : vector<4x32xi1>, vector<4x32xf32>
    %653 = arith.maximumf %642, %652 : vector<4x32xf32>
    %654 = vector.extract_strided_slice %591 {offsets = [0, 3], sizes = [4, 1], strides = [1, 1]} : vector<4x4xf32> to vector<4x1xf32>
    %cst_249 = arith.constant 0.000000e+00 : f32
    %655 = vector.broadcast %cst_249 : f32 to vector<4x1xf32>
    %656 = arith.cmpf ogt, %654, %655 : vector<4x1xf32>
    %657 = vector.extract_strided_slice %619 {offsets = [3, 0], sizes = [1, 32], strides = [1, 1]} : vector<4x32xf32> to vector<1x32xf32>
    %cst_250 = arith.constant -1.000000e+30 : f32
    %658 = vector.shape_cast %656 : vector<4x1xi1> to vector<4x1xi1>
    %659 = vector.broadcast %658 : vector<4x1xi1> to vector<4x32xi1>
    %660 = vector.shape_cast %657 : vector<1x32xf32> to vector<1x32xf32>
    %661 = vector.broadcast %660 : vector<1x32xf32> to vector<4x32xf32>
    %662 = vector.broadcast %cst_250 : f32 to vector<4x32xf32>
    %663 = arith.select %659, %661, %662 : vector<4x32xi1>, vector<4x32xf32>
    %664 = arith.maximumf %653, %663 : vector<4x32xf32>
    %cst_251 = arith.constant dense<0.000000e+00> : vector<4x32xf32>
    %665 = tpu.matmul %664, %570, %cst_251 {dimension_numbers = #tpu.dot_dimension_numbers<[1], [0], [0], [1], [0, 0, 1, 1], [], []>} : vector<4x32xf32>, vector<32x32xf32>, vector<4x32xf32> -> vector<4x32xf32>
    %666 = vector.broadcast %571 : vector<1x32xf32> to vector<4x32xf32>
    %667 = arith.addf %665, %666 : vector<4x32xf32>
    %cst_252 = arith.constant dense<0.000000e+00> : vector<4x1xf32>
    %668 = tpu.matmul %667, %572, %cst_252 {dimension_numbers = #tpu.dot_dimension_numbers<[1], [0], [0], [1], [0, 0, 1, 1], [], []>} : vector<4x32xf32>, vector<32x1xf32>, vector<4x1xf32> -> vector<4x1xf32>
    %669 = vector.broadcast %574 : vector<1x1xf32> to vector<4x1xf32>
    %670 = arith.addf %668, %669 : vector<4x1xf32>
    %cst_253 = arith.constant dense<0.000000e+00> : vector<1x4xf32>
    %671 = tpu.matmul %573, %619, %cst_253 {dimension_numbers = #tpu.dot_dimension_numbers<[1], [1], [0], [0], [0, 0, 1, 0], [], []>} : vector<1x32xf32>, vector<4x32xf32>, vector<1x4xf32> -> vector<1x4xf32>
    %672 = vector.broadcast %670 : vector<4x1xf32> to vector<4x4xf32>
    %673 = vector.broadcast %671 : vector<1x4xf32> to vector<4x4xf32>
    %674 = arith.addf %672, %673 : vector<4x4xf32>
    %cst_254 = arith.constant 0.000000e+00 : f32
    %675 = vector.broadcast %cst_254 : f32 to vector<4x4xf32>
    %676 = arith.cmpf ogt, %674, %675 : vector<4x4xf32>
    %cst_255 = arith.constant 2.000000e-01 : f32
    %677 = vector.broadcast %cst_255 : f32 to vector<4x4xf32>
    %678 = arith.mulf %677, %674 : vector<4x4xf32>
    %679 = arith.select %676, %674, %678 : vector<4x4xi1>, vector<4x4xf32>
    %cst_256 = arith.constant 0.000000e+00 : f32
    %680 = vector.broadcast %cst_256 : f32 to vector<4x4xf32>
    %681 = arith.cmpf ogt, %591, %680 : vector<4x4xf32>
    %cst_257 = arith.constant -1.000000e+30 : f32
    %682 = vector.broadcast %cst_257 : f32 to vector<4x4xf32>
    %683 = arith.select %681, %679, %682 : vector<4x4xi1>, vector<4x4xf32>
    %cst_258 = arith.constant dense<0xFF800000> : vector<4xf32>
    %684 = vector.multi_reduction <maximumf>, %683, %cst_258 [1] : vector<4x4xf32> to vector<4xf32>
    %685 = vector.shape_cast %684 : vector<4xf32> to vector<4x1xf32>
    %686 = vector.broadcast %685 : vector<4x1xf32> to vector<4x4xf32>
    %687 = arith.subf %683, %686 : vector<4x4xf32>
    %688 = math.exp %687 : vector<4x4xf32>
    %689 = arith.mulf %688, %591 : vector<4x4xf32>
    %cst_259 = arith.constant dense<0.000000e+00> : vector<4xf32>
    %690 = vector.multi_reduction <add>, %689, %cst_259 [1] : vector<4x4xf32> to vector<4xf32>
    %691 = vector.shape_cast %690 : vector<4xf32> to vector<4x1xf32>
    %692 = tpu.reciprocal %691 {approx = true} : vector<4x1xf32> -> vector<4x1xf32>
    %693 = vector.broadcast %692 : vector<4x1xf32> to vector<4x4xf32>
    %694 = arith.mulf %689, %693 : vector<4x4xf32>
    %cst_260 = arith.constant dense<0.000000e+00> : vector<4x32xf32>
    %695 = tpu.matmul %694, %615, %cst_260 {dimension_numbers = #tpu.dot_dimension_numbers<[1], [0], [0], [1], [0, 0, 1, 1], [], []>} : vector<4x4xf32>, vector<4x32xf32>, vector<4x32xf32> -> vector<4x32xf32>
    %cst_261 = arith.constant dense<0.000000e+00> : vector<1x4xf32>
    %696 = tpu.matmul %575, %695, %cst_261 {dimension_numbers = #tpu.dot_dimension_numbers<[1], [1], [0], [0], [0, 0, 1, 0], [], []>} : vector<1x32xf32>, vector<4x32xf32>, vector<1x4xf32> -> vector<1x4xf32>
    %697 = vector.broadcast %576 : vector<1x1xf32> to vector<1x4xf32>
    %698 = arith.addf %696, %697 : vector<1x4xf32>
    %cst_262 = arith.constant dense<0.000000e+00> : vector<1x4xf32>
    %699 = tpu.matmul %577, %695, %cst_262 {dimension_numbers = #tpu.dot_dimension_numbers<[1], [1], [0], [0], [0, 0, 1, 0], [], []>} : vector<1x32xf32>, vector<4x32xf32>, vector<1x4xf32> -> vector<1x4xf32>
    %cst_263 = arith.constant dense<0.000000e+00> : vector<1x4xf32>
    %700 = tpu.matmul %578, %695, %cst_263 {dimension_numbers = #tpu.dot_dimension_numbers<[1], [1], [0], [0], [0, 0, 1, 0], [], []>} : vector<1x32xf32>, vector<4x32xf32>, vector<1x4xf32> -> vector<1x4xf32>
    %701 = vector.broadcast %579 : vector<1x1xf32> to vector<1x4xf32>
    %702 = arith.addf %700, %701 : vector<1x4xf32>
    %cst_264 = arith.constant dense<0.000000e+00> : vector<1x4xf32>
    %703 = tpu.matmul %698, %591, %cst_264 {dimension_numbers = #tpu.dot_dimension_numbers<[1], [0], [0], [1], [0, 0, 1, 1], [], []>} : vector<1x4xf32>, vector<4x4xf32>, vector<1x4xf32> -> vector<1x4xf32>
    %704 = arith.mulf %595, %699 : vector<1x4xf32>
    %705 = arith.subf %703, %704 : vector<1x4xf32>
    %706 = arith.addf %705, %702 : vector<1x4xf32>
    %707 = arith.negf %706 : vector<1x4xf32>
    %708 = math.exp %707 : vector<1x4xf32>
    %cst_265 = arith.constant 1.000000e+00 : f32
    %709 = vector.broadcast %cst_265 : f32 to vector<1x4xf32>
    %710 = arith.addf %709, %708 : vector<1x4xf32>
    %711 = arith.divf %709, %710 : vector<1x4xf32>
    %cst_266 = arith.constant dense<0.000000e+00> : vector<4x1xf32>
    %712 = tpu.matmul %585, %711, %cst_266 {dimension_numbers = #tpu.dot_dimension_numbers<[1], [1], [0], [0], [0, 0, 1, 0], [], []>} : vector<4x4xf32>, vector<1x4xf32>, vector<4x1xf32> -> vector<4x1xf32>
    %713 = vector.broadcast %712 : vector<4x1xf32> to vector<4x4xf32>
    %714 = vector.broadcast %711 : vector<1x4xf32> to vector<4x4xf32>
    %715 = arith.cmpf ogt, %713, %714 : vector<4x4xf32>
    %716 = vector.broadcast %712 : vector<4x1xf32> to vector<4x4xf32>
    %717 = vector.broadcast %711 : vector<1x4xf32> to vector<4x4xf32>
    %718 = arith.cmpf oeq, %716, %717 : vector<4x4xf32>
    %719 = arith.cmpi slt, %580, %581 : vector<4x4xi32>
    %720 = arith.andi %718, %719 : vector<4x4xi1>
    %721 = arith.ori %715, %720 : vector<4x4xi1>
    %722 = arith.extui %721 : vector<4x4xi1> to vector<4x4xi32>
    %723 = arith.sitofp %722 : vector<4x4xi32> to vector<4x4xf32>
    %cst_267 = arith.constant dense<0.000000e+00> : vector<4xf32>
    %724 = vector.multi_reduction <add>, %723, %cst_267 [0] : vector<4x4xf32> to vector<4xf32>
    %725 = vector.shape_cast %724 : vector<4xf32> to vector<1x4xf32>
    %726 = tpu.iota {dimensions = array<i32: 0>} : vector<2x4xi32>
    %727 = arith.sitofp %726 : vector<2x4xi32> to vector<2x4xf32>
    %728 = vector.broadcast %725 : vector<1x4xf32> to vector<2x4xf32>
    %729 = arith.subf %728, %727 : vector<2x4xf32>
    %730 = math.absf %729 : vector<2x4xf32>
    %cst_268 = arith.constant 5.000000e-01 : f32
    %731 = vector.broadcast %cst_268 : f32 to vector<2x4xf32>
    %732 = arith.cmpf olt, %730, %731 : vector<2x4xf32>
    %733 = arith.extui %732 : vector<2x4xi1> to vector<2x4xi32>
    %734 = arith.sitofp %733 : vector<2x4xi32> to vector<2x4xf32>
    %cst_269 = arith.constant dense<0.000000e+00> : vector<2x1xf32>
    %735 = tpu.matmul %734, %712, %cst_269 {dimension_numbers = #tpu.dot_dimension_numbers<[1], [0], [0], [1], [0, 0, 1, 1], [], []>} : vector<2x4xf32>, vector<4x1xf32>, vector<2x1xf32> -> vector<2x1xf32>
    %cst_270 = arith.constant dense<0.000000e+00> : vector<2x32xf32>
    %736 = tpu.matmul %734, %695, %cst_270 {dimension_numbers = #tpu.dot_dimension_numbers<[1], [0], [0], [1], [0, 0, 1, 1], [], []>} : vector<2x4xf32>, vector<4x32xf32>, vector<2x32xf32> -> vector<2x32xf32>
    %737 = vector.broadcast %735 : vector<2x1xf32> to vector<2x32xf32>
    %738 = arith.mulf %736, %737 : vector<2x32xf32>
    %cst_271 = arith.constant dense<0xFF800000> : vector<32xf32>
    %739 = vector.multi_reduction <maximumf>, %738, %cst_271 [0] : vector<2x32xf32> to vector<32xf32>
    %740 = vector.shape_cast %739 : vector<32xf32> to vector<1x32xf32>
    %cst_272 = arith.constant dense<0.000000e+00> : vector<32xf32>
    %741 = vector.multi_reduction <add>, %738, %cst_272 [0] : vector<2x32xf32> to vector<32xf32>
    %742 = vector.shape_cast %741 : vector<32xf32> to vector<1x32xf32>
    %cst_273 = arith.constant 5.000000e-01 : f32
    %743 = vector.broadcast %cst_273 : f32 to vector<1x32xf32>
    %744 = arith.mulf %742, %743 : vector<1x32xf32>
    %745 = arith.addf %564, %740 : vector<1x32xf32>
    %746 = arith.addf %565, %744 : vector<1x32xf32>
    %c0_274 = arith.constant 0 : index
    %c0_275 = arith.constant 0 : index
    %747 = vector.load %arg44[%c0_274, %c0_275] : memref<32x32xf32, #tpu.memory_space<vmem>>, vector<32x32xf32>
    %cst_276 = arith.constant dense<0.000000e+00> : vector<1x32xf32>
    %748 = tpu.matmul %745, %747, %cst_276 {dimension_numbers = #tpu.dot_dimension_numbers<[1], [0], [0], [1], [0, 0, 1, 1], [], []>} : vector<1x32xf32>, vector<32x32xf32>, vector<1x32xf32> -> vector<1x32xf32>
    %c0_277 = arith.constant 0 : index
    %c0_278 = arith.constant 0 : index
    %749 = vector.load %arg45[%c0_277, %c0_278] : memref<32x32xf32, #tpu.memory_space<vmem>>, vector<32x32xf32>
    %cst_279 = arith.constant dense<0.000000e+00> : vector<1x32xf32>
    %750 = tpu.matmul %746, %749, %cst_279 {dimension_numbers = #tpu.dot_dimension_numbers<[1], [0], [0], [1], [0, 0, 1, 1], [], []>} : vector<1x32xf32>, vector<32x32xf32>, vector<1x32xf32> -> vector<1x32xf32>
    %751 = arith.addf %748, %750 : vector<1x32xf32>
    %c0_280 = arith.constant 0 : index
    %c0_281 = arith.constant 0 : index
    %752 = vector.load %arg46[%c0_280, %c0_281] : memref<1x32xf32, #tpu.memory_space<vmem>>, vector<1x32xf32>
    %753 = arith.addf %751, %752 : vector<1x32xf32>
    %cst_282 = arith.constant 0.000000e+00 : f32
    %754 = vector.broadcast %cst_282 : f32 to vector<1x32xf32>
    %755 = arith.maximumf %753, %754 : vector<1x32xf32>
    %c0_283 = arith.constant 0 : index
    %c0_284 = arith.constant 0 : index
    %756 = vector.load %arg47[%c0_283, %c0_284] : memref<32x16xf32, #tpu.memory_space<vmem>>, vector<32x16xf32>
    %cst_285 = arith.constant dense<0.000000e+00> : vector<1x16xf32>
    %757 = tpu.matmul %755, %756, %cst_285 {dimension_numbers = #tpu.dot_dimension_numbers<[1], [0], [0], [1], [0, 0, 1, 1], [], []>} : vector<1x32xf32>, vector<32x16xf32>, vector<1x16xf32> -> vector<1x16xf32>
    %c0_286 = arith.constant 0 : index
    %c0_287 = arith.constant 0 : index
    %758 = vector.load %arg48[%c0_286, %c0_287] : memref<1x16xf32, #tpu.memory_space<vmem>>, vector<1x16xf32>
    %759 = arith.addf %757, %758 : vector<1x16xf32>
    %cst_288 = arith.constant 0.000000e+00 : f32
    %760 = vector.broadcast %cst_288 : f32 to vector<1x16xf32>
    %761 = arith.maximumf %759, %760 : vector<1x16xf32>
    %c0_289 = arith.constant 0 : index
    %c0_290 = arith.constant 0 : index
    %762 = vector.load %arg49[%c0_289, %c0_290] : memref<16x4xf32, #tpu.memory_space<vmem>>, vector<16x4xf32>
    %cst_291 = arith.constant dense<0.000000e+00> : vector<1x4xf32>
    %763 = tpu.matmul %761, %762, %cst_291 {dimension_numbers = #tpu.dot_dimension_numbers<[1], [0], [0], [1], [0, 0, 1, 1], [], []>} : vector<1x16xf32>, vector<16x4xf32>, vector<1x4xf32> -> vector<1x4xf32>
    %c0_292 = arith.constant 0 : index
    %c0_293 = arith.constant 0 : index
    %764 = vector.load %arg50[%c0_292, %c0_293] : memref<1x4xf32, #tpu.memory_space<vmem>>, vector<1x4xf32>
    %765 = arith.addf %763, %764 : vector<1x4xf32>
    %cst_294 = arith.constant dense<0xFF800000> : vector<1xf32>
    %766 = vector.multi_reduction <maximumf>, %765, %cst_294 [1] : vector<1x4xf32> to vector<1xf32>
    %767 = vector.shape_cast %766 : vector<1xf32> to vector<1x1xf32>
    %768 = vector.broadcast %767 : vector<1x1xf32> to vector<1x4xf32>
    %769 = arith.subf %765, %768 : vector<1x4xf32>
    %770 = math.exp %769 : vector<1x4xf32>
    %cst_295 = arith.constant dense<0.000000e+00> : vector<1xf32>
    %771 = vector.multi_reduction <add>, %770, %cst_295 [1] : vector<1x4xf32> to vector<1xf32>
    %772 = vector.shape_cast %771 : vector<1xf32> to vector<1x1xf32>
    %773 = math.log %772 : vector<1x1xf32>
    %774 = vector.broadcast %773 : vector<1x1xf32> to vector<1x4xf32>
    %775 = arith.subf %769, %774 : vector<1x4xf32>
    %c0_296 = arith.constant 0 : index
    %c0_297 = arith.constant 0 : index
    %776 = vector.load %arg51[%c0_296, %c0_297] : memref<1x4xf32, #tpu.memory_space<vmem>>, vector<1x4xf32>
    tpu.vector_store %arg51[%c0_296, %c0_297], %775 {strides = array<i32>} : memref<1x4xf32, #tpu.memory_space<vmem>>, vector<1x4xf32>,
    return
  }
}

</mosaic_0001>

<bundles_post_ra>
// kernel: asanet_forward.1
= control target key start
LH: loop header
LB: loop body
LE: loop exit
PB: predicated region body
PF: predicated region fallthrough
CT: control target
= control target key end

     0   :  { %s7093_s6 = smov 1   ;;  %s7094_s10 = smov 2   ;;  %s8316_s0 = inlined_call_operand.smem [shape: u32[52], index: -1, kind: input, shape index: {}] }
   0x1   :  { %s7202_s5 = sld [smem:[%s8316_s0]]   ;;  %s7095_s14 = smov 3  }
   0x2   :  { %s7207_s9 = sld [smem:[%s8316_s0 + %s7093_s6]]   ;;  %s7096_s18 = smov 4  }
   0x3   :  { %s7212_s13 = sld [smem:[%s8316_s0 + %s7094_s10]]   ;;  %s7097_s22 = smov 5  }
   0x4   :  { %s7217_s17 = sld [smem:[%s8316_s0 + %s7095_s14]]   ;;  %s7098_s26 = smov 6  }
   0x5   :  { %s7222_s21 = sld [smem:[%s8316_s0 + %s7096_s18]]   ;;  %s7099_s30 = smov 7  }
   0x6   :  { %s7227_s25 = sld [smem:[%s8316_s0 + %s7097_s22]]   ;;  %s7100_s4 = smov 8  }
   0x7   :  { %8351 = sst [smem:[#allocation68_spill]] %s7202_s5  ;;  %s7101_s10 = smov 9  }
   0x8   :  { %8352 = sst [smem:[#allocation69_spill]] %s7207_s9  ;;  %s7102_s15 = smov 10  }
   0x9   :  { %s7232_s29 = sld [smem:[%s8316_s0 + %s7098_s26]]   ;;  %s7103_s20 = smov 11  }
   0xa   :  { %8353 = sst [smem:[#allocation70_spill]] %s7217_s17  ;;  %s7104_s26 = smov 12  }
   0xb   :  { %8354 = sst [smem:[#allocation71_spill]] %s7222_s21  ;;  %s7105_s1 = smov 13  }
   0xc   :  { %s7237_s3 = sld [smem:[%s8316_s0 + %s7099_s30]]   ;;  %s7106_s7 = smov 14  }
   0xd   :  { %s7242_s8 = sld [smem:[%s8316_s0 + %s7100_s4]]   ;;  %s7108_s22 = smov 17  }
   0xe   :  { %s7247_s14 = sld [smem:[%s8316_s0 + %s7101_s10]]   ;;  %s7109_s28 = smov 18  }
   0xf   :  { %8355 = sst [smem:[#allocation72_spill]] %s7232_s29  ;;  %s7110_s10 = smov 20  }
  0x10   :  { %s7252_s19 = sld [smem:[%s8316_s0 + %s7102_s15]]   ;;  %s7107_s15 = smov 15  }
  0x11   :  { %s7257_s24 = sld [smem:[%s8316_s0 + %s7103_s20]]   ;;  %s7115_s16 = smov 25  }
  0x12   :  { %8356 = sst [smem:[#allocation73_spill]] %s7237_s3  ;;  %s7138_s17 = smov 26  }
  0x13   :  { %8357 = sst [smem:[#allocation74_spill]] %s7242_s8  ;;  %s7140_s18 = smov 31  }
  0x14   :  { %s7262_s30 = sld [smem:[%s8316_s0 + %s7104_s26]]   ;;  %s7141_s23 = smov 38  }
  0x15   :  { %s7267_s6 = sld [smem:[%s8316_s0 + %s7105_s1]]   ;;  %s7143_s9 = smov 43  }
  0x16   :  { %8358 = sst [smem:[#allocation75_spill]] %s7252_s19 }
  0x17   :  { %8359 = sst [smem:[#allocation76_spill]] %s7257_s24 }
  0x18   :  { %s5453_s12 = sld [smem:[%s8316_s0 + %s7106_s7]]  }
  0x19   :  { %s7275_s20 = sld [smem:[%s8316_s0 + %s7107_s15]]   ;;  %s7111_s15 = smov 21  }
  0x1a   :  { %8360 = sst [smem:[#allocation77_spill]] %s7262_s30  ;;  %s7119_s30 = smov 32  }
  0x1b   :  { %s7280_s27 = sld [smem:[%s8316_s0 + %s7108_s22]]   ;;  %s7112_s22 = smov 22  }
  0x1c   :  { %s7285_s4 = sld [smem:[%s8316_s0 + %s7109_s28]]   ;;  %s7113_s28 = smov 23  }
  0x1d   :  { %s7290_s29 = sld [smem:[%s8316_s0 + %s7110_s10]]   ;;  %s7114_s10 = smov 24  }
  0x1e   :  { %s7295_s21 = sld [smem:[%s8316_s0 + %s7111_s15]]   ;;  %v108_v0 = vstv %s5453_s12  ;;  %s7116_s12 = smov 27  }
  0x1f   :  { %8361 = sst [smem:[#allocation78_spill]] %s7275_s20  ;;  %109 = vst [vmem:[#allocation2] sm:$0x1] %v108_v0 }
  0x20   :  { %s7300_s19 = sld [smem:[%s8316_s0 + %s7112_s22]]  }
  0x21   :  { %s7305_s7 = sld [smem:[%s8316_s0 + %s7113_s28]]   ;;  %s7117_s28 = smov 29  }
  0x22   :  { %8362 = sst [smem:[#allocation79_spill]] %s7285_s4 }
  0x23   :  { %8363 = sst [smem:[#allocation80_spill]] %s7290_s29  ;;  %s7118_s29 = smov 30  }
  0x24   :  { %s7310_s15 = sld [smem:[%s8316_s0 + %s7114_s10]]  }
  0x25   :  { %s7315_s22 = sld [smem:[%s8316_s0 + %s7115_s16]]  }
  0x26   :  { %8364 = sst [smem:[#allocation81_spill]] %s7300_s19  ;;  %s7121_s19 = smov 34  }
  0x27   :  { %8365 = sst [smem:[#allocation82_spill]] %s7305_s7 }
  0x28   :  { %s7320_s1 = sld [smem:[%s8316_s0 + %s7116_s12]]   ;;  %s7120_s12 = smov 33  }
  0x29   :  { %s7325_s8 = sld [smem:[%s8316_s0 + %s7117_s28]]   ;;  %s7137_s28 = smov 19  }
  0x2a   :  { %8366 = sst [smem:[#allocation83_spill]] %s7310_s15 }
  0x2b   :  { %s7330_s15 = sld [smem:[%s8316_s0 + %s7118_s29]]   ;;  %s7122_s29 = smov 35  }
  0x2c   :  { %s7335_s5 = sld [smem:[%s8316_s0 + %s7119_s30]]   ;;  %s7123_s30 = smov 36  }
  0x2d   :  { %s7345_s7 = sld [smem:[%s8316_s0 + %s7121_s19]]   ;;  %s7125_s19 = smov 39  }
  0x2e   :  { %8367 = sst [smem:[#allocation84_spill]] %s7320_s1 }
  0x2f   :  { %s7340_s1 = sld [smem:[%s8316_s0 + %s7120_s12]]   ;;  %s7124_s12 = smov 37  }
  0x30   :  { %s7360_s4 = sld [smem:[%s8316_s0 + %s7124_s12]]   ;;  %s7128_s12 = smov 44  }
  0x31   :  { %8368 = sst [smem:[#allocation85_spill]] %s7330_s15 }
  0x32   :  { %8369 = sst [smem:[#allocation86_spill]] %s7335_s5 }
  0x33   :  { %8370 = sst [smem:[#allocation87_spill]] %s7345_s7 }
  0x34   :  { %s7350_s15 = sld [smem:[%s8316_s0 + %s7122_s29]]   ;;  %s7126_s29 = smov 41  }
  0x35   :  { %s7355_s5 = sld [smem:[%s8316_s0 + %s7123_s30]]   ;;  %s7127_s30 = smov 42  }
  0x36   :  { %s7365_s7 = sld [smem:[%s8316_s0 + %s7125_s19]]   ;;  %s7129_s19 = smov 45  }
  0x37   :  { %s7380_s20 = sld [smem:[%s8316_s0 + %s7128_s12]]   ;;  %s7132_s12 = smov 48  }
  0x38   :  { %s5465_s11 = sld [smem:[%s8316_s0 + %s7138_s17]]  }
  0x39   :  { %s5482_s16 = sld [smem:[%s8316_s0 + %s7143_s9]]  }
  0x3a   :  { %8371 = sst [smem:[#allocation88_spill]] %s7350_s15 }
  0x3b   :  { %8372 = sst [smem:[#allocation89_spill]] %s7355_s5 }
  0x3c   :  { %8373 = sst [smem:[#allocation90_spill]] %s7365_s7 }
  0x3d   :  { %s7370_s15 = sld [smem:[%s8316_s0 + %s7126_s29]]   ;;  %s7130_s29 = smov 46  }
  0x3e   :  { %s7375_s5 = sld [smem:[%s8316_s0 + %s7127_s30]]   ;;  %s7131_s30 = smov 47   ;;  %v114_v3 = vstv %s5465_s11 }
  0x3f   :  { %8376 = sst [smem:[#allocation93_spill]] %s7380_s20  ;;  %115 = vst [vmem:[#allocation5] sm:$0x1] %v114_v3  ;;  %v124_v8 = vstv %s5482_s16 }
  0x40   :  { %s7385_s7 = sld [smem:[%s8316_s0 + %s7129_s19]]   ;;  %s7133_s19 = smov 49   ;;  %125 = vst [vmem:[#allocation10] sm:$0x1] %v124_v8 }
  0x41   :  { %s7390_s24 = sld [smem:[%s8316_s0 + %s7130_s29]]   ;;  %s7134_s29 = smov 50  }
  0x42   :  { %s7400_s20 = sld [smem:[%s8316_s0 + %s7132_s12]]   ;;  %s7136_s12 = smov 16  }
  0x43   :  { %8374 = sst [smem:[#allocation91_spill]] %s7370_s15 }
  0x44   :  { %8375 = sst [smem:[#allocation92_spill]] %s7375_s5 }
  0x45   :  { %s7395_s5 = sld [smem:[%s8316_s0 + %s7131_s30]]   ;;  %s7135_s30 = smov 51  }
  0x46   :  { %8377 = sst [smem:[#allocation94_spill]] %s7385_s7 }
  0x47   :  { %8378 = sst [smem:[#allocation95_spill]] %s7390_s24 }
  0x48   :  { %8380 = sst [smem:[#allocation97_spill]] %s7400_s20 }
  0x49   :  { %s7405_s7 = sld [smem:[%s8316_s0 + %s7133_s19]]   ;;  %s7142_s19 = smov 40  }
  0x4a   :  { %s7410_s3 = sld [smem:[%s8316_s0 + %s7134_s29]]  }
  0x4b   :  { %8379 = sst [smem:[#allocation96_spill]] %s7395_s5 }
  0x4c   :  { %s7415_s5 = sld [smem:[%s8316_s0 + %s7135_s30]]  }
  0x4d   :  { %s5455_s20 = sld [smem:[%s8316_s0 + %s7136_s12]]  }
  0x4e   :  { %s5470_s12 = sld [smem:[%s8316_s0 + %s7140_s18]]  }
  0x4f   :  { %8381 = sst [smem:[#allocation98_spill]] %s7405_s7 }
  0x50   :  { %8382 = sst [smem:[#allocation99_spill]] %s7410_s3  ;;  %s7139_s3 = smov 28  }
  0x51   :  { %s5458_s7 = sld [smem:[%s8316_s0 + %s7137_s28]]  }
  0x52   :  { %8383 = sst [smem:[#allocation100_spill]] %s7415_s5 }
  0x53   :  { %s5467_s30 = sld [smem:[%s8316_s0 + %s7139_s3]]   ;;  %v110_v1 = vstv %s5455_s20 }
  0x54   :  { %s5477_s28 = sld [smem:[%s8316_s0 + %s7141_s23]]   ;;  %111 = vst [vmem:[#allocation3] sm:$0x1] %v110_v1  ;;  %v118_v5 = vstv %s5470_s12 }
  0x55   :  { %s5479_s17 = sld [smem:[%s8316_s0 + %s7142_s19]]   ;;  %119 = vst [vmem:[#allocation7] sm:$0x1] %v118_v5 }
  0x57   :  { %v112_v2 = vstv %s5458_s7 }
  0x58   :  { %113 = vst [vmem:[#allocation4] sm:$0x1] %v112_v2 }
  0x59   :  { %v116_v4 = vstv %s5467_s30 }
  0x5a   :  { %117 = vst [vmem:[#allocation6] sm:$0x1] %v116_v4  ;;  %v120_v6 = vstv %s5477_s28 }
  0x5b   :  { %121 = vst [vmem:[#allocation8] sm:$0x1] %v120_v6  ;;  %v122_v7 = vstv %s5479_s17 }
  0x5c   :  { %123 = vst [vmem:[#allocation9] sm:$0x1] %v122_v7 }
  0x5d   :  { %126 = vsyncpa [#allocation12], 0 }
  0x5e   :  { %127 = vsyncpa [#allocation15], 0 }
  0x5f   :  { %128 = vsyncpa [#allocation18], 0 }
  0x60   :  { %129 = vsyncpa [#allocation21], 0 }
  0x61   :  { %130 = vsyncpa [#allocation24], 0 }
  0x62   :  { %131 = vsyncpa [#allocation27], 0 }
  0x63   :  { %132 = vsyncpa [#allocation30], 0 }
  0x64   :  { %133 = vsyncpa [#allocation33], 0 }
  0x65   :  { %134 = vsyncpa [#allocation36], 0 }
  0x66   :  { %135 = vsyncpa [#allocation39], 0 }
  0x67   :  { %136 = vsyncpa [#allocation42], 0 }
  0x68   :  { %137 = vsyncpa [#allocation45], 0 }
  0x69   :  { %138 = vsyncpa [#allocation48], 0 }
  0x6a   :  { %139 = vsyncpa [#allocation51], 0 }
  0x6b   :  { %140 = vsyncpa [#allocation13], 0  ;;  %s7144_s0 = smov [#allocation14]   ;;  %s7145_s24 = smov [#allocation17]  }
  0x6c   :  { %s160_s5 = sshll.u32 %s7144_s0, 4  ;;  %s185_s20 = sshll.u32 %s7145_s24, 4  ;;  %s161_s5 = int_to_ptr.vmem [resolvable:$true] %s160_s5  ;;  %s7441_s20 = int_to_ptr.vmem [resolvable:$true] %s185_s20 }
  0x6d   :  { %s6469_s7 = scalar_lea.hbm %s7212_s13, 256 }
  0x6e   :  { %p6470_p0 = scmp.ne.s32.totalorder %s7212_s13, %s6469_s7  ;;  %p6473_p1 = scmp.lt.u32.totalorder %s6469_s7, %s7212_s13 }
  0x70   :  { %p6475_p2 = pnand %p6473_p1, %p6470_p0 }
  0x72   :  { %6478 = shalt.err (!%p6475_p2)
}
  0x73   :  { %s6479_s15 = scalar_lea.vmem %s161_s5, 256  ;;  %p6484_p4 = scmp.lt.s32.totalorder %s161_s5, %s161_s5 }
  0x74   :  { %p6480_p3 = scmp.ne.s32.totalorder %s161_s5, %s6479_s15  ;;  %p6485_p5 = scmp.lt.s32.totalorder %s6479_s15, %s6479_s15 }
  0x76   :  { %p6486_p6 = por %p6485_p5, %p6484_p4 }
  0x78   :  { %p6487_p7 = pnand %p6486_p6, %p6480_p3 }
  0x7a   :  { %6490 = shalt.err (!%p6487_p7)
}
  0x7b   :  { %s7146_s11 = smov 128   ;;  %s7147_s30 = smov 8  }
  0x7c   :  { %166 = dma.hbm_to_vmem [thread:$0]  %s7212_s13, 256, %s161_s5, [#allocation15], %s7146_s11, %s7146_s11, %s7147_s30  }
  0x7d   :  { %s6491_s18 = scalar_lea.hbm %s7227_s25, 16 }
  0x7e   :  { %p6492_p8 = scmp.ne.s32.totalorder %s7227_s25, %s6491_s18  ;;  %p6495_p9 = scmp.lt.u32.totalorder %s6491_s18, %s7227_s25 }
  0x80   :  { %p6497_p10 = pnand %p6495_p9, %p6492_p8 }
  0x82   :  { %6500 = shalt.err (!%p6497_p10)
}
  0x83   :  { %s6501_s12 = scalar_lea.vmem %s7441_s20, 16  ;;  %s6505_s23 = scalar_lea.vmem %s7441_s20, 32 }
  0x84   :  { %p6502_p11 = scmp.ne.s32.totalorder %s7441_s20, %s6501_s12  ;;  %p6506_p12 = scmp.lt.s32.totalorder %s7441_s20, %s7441_s20 }
  0x85   :  { %p6507_p13 = scmp.lt.s32.totalorder %s6505_s23, %s6501_s12 }
  0x87   :  { %p6508_p0 = por %p6507_p13, %p6506_p12 }
  0x89   :  { %p6509_p1 = pnand %p6508_p0, %p6502_p11 }
  0x8b   :  { %6512 = shalt.err (!%p6509_p1)
}
  0x8c   :  { %188 = dma.hbm_to_vmem [thread:$0]  %s7227_s25, 16, %s7441_s20, [#allocation18]  }
  0x8d   :  { %s7148_s13 = smov [#allocation20]   ;;  %s7149_s28 = smov [#allocation23]  }
  0x8e   :  { %s209_s26 = sshll.u32 %s7148_s13, 4  ;;  %s233_s19 = sshll.u32 %s7149_s28, 4  ;;  %s210_s26 = int_to_ptr.vmem [resolvable:$true] %s209_s26  ;;  %s234_s19 = int_to_ptr.vmem [resolvable:$true] %s233_s19 }
  0x8f   :  { %s6513_s2 = scalar_lea.hbm %s7247_s14, 16 }
  0x90   :  { %p6514_p2 = scmp.ne.s32.totalorder %s7247_s14, %s6513_s2  ;;  %p6517_p3 = scmp.lt.u32.totalorder %s6513_s2, %s7247_s14 }
  0x92   :  { %p6519_p4 = pnand %p6517_p3, %p6514_p2 }
  0x94   :  { %6522 = shalt.err (!%p6519_p4)
}
  0x95   :  { %s6523_s10 = scalar_lea.vmem %s210_s26, 16  ;;  %s6527_s17 = scalar_lea.vmem %s210_s26, 32 }
  0x96   :  { %p6524_p5 = scmp.ne.s32.totalorder %s210_s26, %s6523_s10  ;;  %p6528_p6 = scmp.lt.s32.totalorder %s210_s26, %s210_s26 }
  0x97   :  { %p6529_p7 = scmp.lt.s32.totalorder %s6527_s17, %s6523_s10 }
  0x99   :  { %p6530_p8 = por %p6529_p7, %p6528_p6 }
  0x9b   :  { %p6531_p9 = pnand %p6530_p8, %p6524_p5 }
  0x9d   :  { %6534 = shalt.err (!%p6531_p9)
}
  0x9e   :  { %212 = dma.hbm_to_vmem [thread:$0]  %s7247_s14, 16, %s210_s26, [#allocation21]  }
  0x9f   :  { %s6535_s25 = scalar_lea.hbm %s7267_s6, 16 }
  0xa0   :  { %p6536_p10 = scmp.ne.s32.totalorder %s7267_s6, %s6535_s25  ;;  %p6539_p11 = scmp.lt.u32.totalorder %s6535_s25, %s7267_s6 }
  0xa2   :  { %p6541_p12 = pnand %p6539_p11, %p6536_p10 }
  0xa4   :  { %6544 = shalt.err (!%p6541_p12)
}
  0xa5   :  { %s6545_s9 = scalar_lea.vmem %s234_s19, 16  ;;  %s6549_s3 = scalar_lea.vmem %s234_s19, 32 }
  0xa6   :  { %p6546_p13 = scmp.ne.s32.totalorder %s234_s19, %s6545_s9  ;;  %p6550_p0 = scmp.lt.s32.totalorder %s234_s19, %s234_s19 }
  0xa7   :  { %p6551_p1 = scmp.lt.s32.totalorder %s6549_s3, %s6545_s9 }
  0xa9   :  { %p6552_p2 = por %p6551_p1, %p6550_p0 }
  0xab   :  { %p6553_p3 = pnand %p6552_p2, %p6546_p13 }
  0xad   :  { %6556 = shalt.err (!%p6553_p3)
}
  0xae   :  { %236 = dma.hbm_to_vmem [thread:$0]  %s7267_s6, 16, %s234_s19, [#allocation24]  }
  0xaf   :  { %s7150_s29 = smov [#allocation26]   ;;  %s7151_s16 = smov [#allocation29]  }
  0xb0   :  { %s257_s14 = sshll.u32 %s7150_s29, 4  ;;  %s281_s0 = sshll.u32 %s7151_s16, 4  ;;  %s258_s14 = int_to_ptr.vmem [resolvable:$true] %s257_s14  ;;  %s282_s0 = int_to_ptr.vmem [resolvable:$true] %s281_s0 }
  0xb1   :  { %s6557_s5 = scalar_lea.hbm %s7280_s27, 16 }
  0xb2   :  { %p6558_p4 = scmp.ne.s32.totalorder %s7280_s27, %s6557_s5  ;;  %p6561_p5 = scmp.lt.u32.totalorder %s6557_s5, %s7280_s27 }
  0xb4   :  { %p6563_p6 = pnand %p6561_p5, %p6558_p4 }
  0xb6   :  { %6566 = shalt.err (!%p6563_p6)
}
  0xb7   :  { %s6567_s24 = scalar_lea.vmem %s258_s14, 16  ;;  %s6571_s20 = scalar_lea.vmem %s258_s14, 32 }
  0xb8   :  { %p6568_p7 = scmp.ne.s32.totalorder %s258_s14, %s6567_s24  ;;  %p6572_p8 = scmp.lt.s32.totalorder %s258_s14, %s258_s14 }
  0xb9   :  { %p6573_p9 = scmp.lt.s32.totalorder %s6571_s20, %s6567_s24 }
  0xbb   :  { %p6574_p10 = por %p6573_p9, %p6572_p8 }
  0xbd   :  { %p6575_p11 = pnand %p6574_p10, %p6568_p7 }
  0xbf   :  { %6578 = shalt.err (!%p6575_p11)
}
  0xc0   :  { %260 = dma.hbm_to_vmem [thread:$0]  %s7280_s27, 16, %s258_s14, [#allocation27]  }
  0xc1   :  { %s6579_s6 = scalar_lea.hbm %s7295_s21, 16 }
  0xc2   :  { %p6580_p12 = scmp.ne.s32.totalorder %s7295_s21, %s6579_s6  ;;  %p6583_p13 = scmp.lt.u32.totalorder %s6579_s6, %s7295_s21 }
  0xc4   :  { %p6585_p0 = pnand %p6583_p13, %p6580_p12 }
  0xc6   :  { %6588 = shalt.err (!%p6585_p0)
}
  0xc7   :  { %s6589_s7 = scalar_lea.vmem %s282_s0, 16  ;;  %s6593_s15 = scalar_lea.vmem %s282_s0, 32 }
  0xc8   :  { %p6590_p1 = scmp.ne.s32.totalorder %s282_s0, %s6589_s7  ;;  %p6594_p2 = scmp.lt.s32.totalorder %s282_s0, %s282_s0 }
  0xc9   :  { %p6595_p3 = scmp.lt.s32.totalorder %s6593_s15, %s6589_s7 }
  0xcb   :  { %p6596_p4 = por %p6595_p3, %p6594_p2 }
  0xcd   :  { %p6597_p5 = pnand %p6596_p4, %p6590_p1 }
  0xcf   :  { %6600 = shalt.err (!%p6597_p5)
}
  0xd0   :  { %284 = dma.hbm_to_vmem [thread:$0]  %s7295_s21, 16, %s282_s0, [#allocation30]  }
  0xd1   :  { %s7152_s18 = smov [#allocation32]   ;;  %s7153_s12 = smov [#allocation35]  }
  0xd2   :  { %s305_s27 = sshll.u32 %s7152_s18, 4  ;;  %s329_s23 = sshll.u32 %s7153_s12, 4  ;;  %s306_s27 = int_to_ptr.vmem [resolvable:$true] %s305_s27  ;;  %s330_s23 = int_to_ptr.vmem [resolvable:$true] %s329_s23 }
  0xd3   :  { %s6601_s13 = scalar_lea.hbm %s7315_s22, 16 }
  0xd4   :  { %p6602_p6 = scmp.ne.s32.totalorder %s7315_s22, %s6601_s13  ;;  %p6605_p7 = scmp.lt.u32.totalorder %s6601_s13, %s7315_s22 }
  0xd6   :  { %p6607_p8 = pnand %p6605_p7, %p6602_p6 }
  0xd8   :  { %6610 = shalt.err (!%p6607_p8)
}
  0xd9   :  { %s6611_s26 = scalar_lea.vmem %s306_s27, 16  ;;  %s6615_s28 = scalar_lea.vmem %s306_s27, 32 }
  0xda   :  { %p6612_p9 = scmp.ne.s32.totalorder %s306_s27, %s6611_s26  ;;  %p6616_p10 = scmp.lt.s32.totalorder %s306_s27, %s306_s27 }
  0xdb   :  { %p6617_p11 = scmp.lt.s32.totalorder %s6615_s28, %s6611_s26 }
  0xdd   :  { %p6618_p12 = por %p6617_p11, %p6616_p10 }
  0xdf   :  { %p6619_p13 = pnand %p6618_p12, %p6612_p9 }
  0xe1   :  { %6622 = shalt.err (!%p6619_p13)
}
  0xe2   :  { %308 = dma.hbm_to_vmem [thread:$0]  %s7315_s22, 16, %s306_s27, [#allocation33]  }
  0xe3   :  { %s6623_s21 = scalar_lea.hbm %s7325_s8, 16 }
  0xe4   :  { %p6624_p0 = scmp.ne.s32.totalorder %s7325_s8, %s6623_s21  ;;  %p6627_p1 = scmp.lt.u32.totalorder %s6623_s21, %s7325_s8 }
  0xe6   :  { %p6629_p2 = pnand %p6627_p1, %p6624_p0 }
  0xe8   :  { %6632 = shalt.err (!%p6629_p2)
}
  0xe9   :  { %s6633_s19 = scalar_lea.vmem %s330_s23, 16  ;;  %s6637_s2 = scalar_lea.vmem %s330_s23, 32 }
  0xea   :  { %p6634_p3 = scmp.ne.s32.totalorder %s330_s23, %s6633_s19  ;;  %p6638_p4 = scmp.lt.s32.totalorder %s330_s23, %s330_s23 }
  0xeb   :  { %p6639_p5 = scmp.lt.s32.totalorder %s6637_s2, %s6633_s19 }
  0xed   :  { %p6640_p6 = por %p6639_p5, %p6638_p4 }
  0xef   :  { %p6641_p7 = pnand %p6640_p6, %p6634_p3 }
  0xf1   :  { %6644 = shalt.err (!%p6641_p7)
}
  0xf2   :  { %332 = dma.hbm_to_vmem [thread:$0]  %s7325_s8, 16, %s330_s23, [#allocation36]  }
  0xf3   :  { %s7154_s10 = smov [#allocation38]   ;;  %s7155_s17 = smov [#allocation41]  }
  0xf4   :  { %s353_s22 = sshll.u32 %s7154_s10, 4  ;;  %s377_s25 = sshll.u32 %s7155_s17, 4  ;;  %s354_s22 = int_to_ptr.vmem [resolvable:$true] %s353_s22  ;;  %s378_s25 = int_to_ptr.vmem [resolvable:$true] %s377_s25 }
  0xf5   :  { %s6645_s9 = scalar_lea.hbm %s7340_s1, 16 }
  0xf6   :  { %p6646_p8 = scmp.ne.s32.totalorder %s7340_s1, %s6645_s9  ;;  %p6649_p9 = scmp.lt.u32.totalorder %s6645_s9, %s7340_s1 }
  0xf8   :  { %p6651_p10 = pnand %p6649_p9, %p6646_p8 }
  0xfa   :  { %6654 = shalt.err (!%p6651_p10)
}
  0xfb   :  { %s6655_s3 = scalar_lea.vmem %s354_s22, 16  ;;  %s6659_s29 = scalar_lea.vmem %s354_s22, 32 }
  0xfc   :  { %p6656_p11 = scmp.ne.s32.totalorder %s354_s22, %s6655_s3  ;;  %p6660_p12 = scmp.lt.s32.totalorder %s354_s22, %s354_s22 }
  0xfd   :  { %p6661_p13 = scmp.lt.s32.totalorder %s6659_s29, %s6655_s3 }
  0xff   :  { %p6662_p0 = por %p6661_p13, %p6660_p12 }
 0x101   :  { %p6663_p1 = pnand %p6662_p0, %p6656_p11 }
 0x103   :  { %6666 = shalt.err (!%p6663_p1)
}
 0x104   :  { %356 = dma.hbm_to_vmem [thread:$0]  %s7340_s1, 16, %s354_s22, [#allocation39]  }
 0x105   :  { %s6667_s8 = scalar_lea.hbm %s7360_s4, 16 }
 0x106   :  { %p6668_p2 = scmp.ne.s32.totalorder %s7360_s4, %s6667_s8  ;;  %p6671_p3 = scmp.lt.u32.totalorder %s6667_s8, %s7360_s4 }
 0x108   :  { %p6673_p4 = pnand %p6671_p3, %p6668_p2 }
 0x10a   :  { %6676 = shalt.err (!%p6673_p4)
}
 0x10b   :  { %s6677_s14 = scalar_lea.vmem %s378_s25, 16  ;;  %s6681_s16 = scalar_lea.vmem %s378_s25, 32 }
 0x10c   :  { %p6678_p5 = scmp.ne.s32.totalorder %s378_s25, %s6677_s14  ;;  %p6682_p6 = scmp.lt.s32.totalorder %s378_s25, %s378_s25 }
 0x10d   :  { %p6683_p7 = scmp.lt.s32.totalorder %s6681_s16, %s6677_s14 }
 0x10f   :  { %p6684_p8 = por %p6683_p7, %p6682_p6 }
 0x111   :  { %p6685_p9 = pnand %p6684_p8, %p6678_p5 }
 0x113   :  { %6688 = shalt.err (!%p6685_p9)
}
 0x114   :  { %s8384_s0 = sld [smem:[#allocation91_spill]]  ;;  %s7156_s5 = smov [#allocation44]  }
 0x115   :  { %380 = dma.hbm_to_vmem [thread:$0]  %s7360_s4, 16, %s378_s25, [#allocation42]  }
 0x116   :  { %s401_s1 = sshll.u32 %s7156_s5, 4  ;;  %s7157_s24 = smov [#allocation47]   ;;  %s402_s1 = int_to_ptr.vmem [resolvable:$true] %s401_s1 }
 0x117   :  { %s427_s20 = sshll.u32 %s7157_s24, 4  ;;  %s428_s20 = int_to_ptr.vmem [resolvable:$true] %s427_s20 }
 0x11a   :  { %s6689_s6 = scalar_lea.hbm %s8384_s0, 16 }
 0x11b   :  { %p6690_p10 = scmp.ne.s32.totalorder %s8384_s0, %s6689_s6  ;;  %p6693_p11 = scmp.lt.u32.totalorder %s6689_s6, %s8384_s0 }
 0x11d   :  { %p6695_p12 = pnand %p6693_p11, %p6690_p10 }
 0x11f   :  { %6698 = shalt.err (!%p6695_p12)
}
 0x120   :  { %s6699_s7 = scalar_lea.vmem %s402_s1, 16  ;;  %s6703_s15 = scalar_lea.vmem %s402_s1, 32 }
 0x121   :  { %p6700_p13 = scmp.ne.s32.totalorder %s402_s1, %s6699_s7  ;;  %p6704_p0 = scmp.lt.s32.totalorder %s402_s1, %s402_s1 }
 0x122   :  { %p6705_p1 = scmp.lt.s32.totalorder %s6703_s15, %s6699_s7 }
 0x124   :  { %p6706_p2 = por %p6705_p1, %p6704_p0 }
 0x126   :  { %p6707_p3 = pnand %p6706_p2, %p6700_p13 }
 0x128   :  { %6710 = shalt.err (!%p6707_p3)
}
 0x129   :  { %s8385_s4 = sld [smem:[#allocation95_spill]] }
 0x12a   :  { %404 = dma.hbm_to_vmem [thread:$0]  %s8384_s0, 16, %s402_s1, [#allocation45]  }
 0x12f   :  { %s6711_s18 = scalar_lea.hbm %s8385_s4, 16 }
 0x130   :  { %p6712_p4 = scmp.ne.s32.totalorder %s8385_s4, %s6711_s18  ;;  %p6715_p5 = scmp.lt.u32.totalorder %s6711_s18, %s8385_s4 }
 0x132   :  { %p6717_p6 = pnand %p6715_p5, %p6712_p4 }
 0x134   :  { %6720 = shalt.err (!%p6717_p6)
}
 0x135   :  { %s6721_s27 = scalar_lea.vmem %s428_s20, 16  ;;  %s6725_s12 = scalar_lea.vmem %s428_s20, 32 }
 0x136   :  { %p6722_p7 = scmp.ne.s32.totalorder %s428_s20, %s6721_s27  ;;  %p6726_p8 = scmp.lt.s32.totalorder %s428_s20, %s428_s20 }
 0x137   :  { %p6727_p9 = scmp.lt.s32.totalorder %s6725_s12, %s6721_s27 }
 0x139   :  { %p6728_p10 = por %p6727_p9, %p6726_p8 }
 0x13b   :  { %p6729_p11 = pnand %p6728_p10, %p6722_p7 }
 0x13d   :  { %6732 = shalt.err (!%p6729_p11)
}
 0x13e   :  { %s8386_s23 = sld [smem:[#allocation69_spill]]  ;;  %s7158_s13 = smov [#allocation11]  }
 0x13f   :  { %430 = dma.hbm_to_vmem [thread:$0]  %s8385_s4, 16, %s428_s20, [#allocation48]  }
 0x140   :  { %s148_s26 = sshll.u32 %s7158_s13, 4  ;;  %s7159_s28 = smov [#allocation16]   ;;  %s149_s26 = int_to_ptr.vmem [resolvable:$true] %s148_s26 }
 0x141   :  { %s173_s21 = sshll.u32 %s7159_s28, 4  ;;  %s174_s21 = int_to_ptr.vmem [resolvable:$true] %s173_s21 }
 0x144   :  { %s6733_s19 = scalar_lea.hbm %s8386_s23, 256 }
 0x145   :  { %p6734_p12 = scmp.ne.s32.totalorder %s8386_s23, %s6733_s19  ;;  %p6737_p13 = scmp.lt.u32.totalorder %s6733_s19, %s8386_s23 }
 0x147   :  { %p6739_p0 = pnand %p6737_p13, %p6734_p12 }
 0x149   :  { %6742 = shalt.err (!%p6739_p0)
}
 0x14a   :  { %s6743_s2 = scalar_lea.vmem %s149_s26, 256  ;;  %p6748_p2 = scmp.lt.s32.totalorder %s149_s26, %s149_s26 }
 0x14b   :  { %p6744_p1 = scmp.ne.s32.totalorder %s149_s26, %s6743_s2  ;;  %p6749_p3 = scmp.lt.s32.totalorder %s6743_s2, %s6743_s2 }
 0x14d   :  { %p6750_p4 = por %p6749_p3, %p6748_p2 }
 0x14f   :  { %p6751_p5 = pnand %p6750_p4, %p6744_p1 }
 0x151   :  { %6754 = shalt.err (!%p6751_p5)
}
 0x152   :  { %s8387_s10 = sld [smem:[#allocation70_spill]] }
 0x153   :  { %154 = dma.hbm_to_vmem [thread:$0]  %s8386_s23, 256, %s149_s26, [#allocation12], %s7146_s11, %s7146_s11, %s7147_s30  }
 0x158   :  { %s6755_s22 = scalar_lea.hbm %s8387_s10, 16 }
 0x159   :  { %p6756_p6 = scmp.ne.s32.totalorder %s8387_s10, %s6755_s22  ;;  %p6759_p7 = scmp.lt.u32.totalorder %s6755_s22, %s8387_s10 }
 0x15b   :  { %p6761_p8 = pnand %p6759_p7, %p6756_p6 }
 0x15d   :  { %6764 = shalt.err (!%p6761_p8)
}
 0x15e   :  { %s6765_s17 = scalar_lea.vmem %s174_s21, 16  ;;  %s6769_s25 = scalar_lea.vmem %s174_s21, 32 }
 0x15f   :  { %p6766_p9 = scmp.ne.s32.totalorder %s174_s21, %s6765_s17  ;;  %p6770_p10 = scmp.lt.s32.totalorder %s174_s21, %s174_s21 }
 0x160   :  { %p6771_p11 = scmp.lt.s32.totalorder %s6769_s25, %s6765_s17 }
 0x162   :  { %p6772_p12 = por %p6771_p11, %p6770_p10 }
 0x164   :  { %p6773_p13 = pnand %p6772_p12, %p6766_p9 }
 0x166   :  { %6776 = shalt.err (!%p6773_p13)
}
 0x167   :  { %s8388_s9 = sld [smem:[#allocation73_spill]]  ;;  %s7160_s3 = smov [#allocation19]  }
 0x168   :  { %176 = dma.hbm_to_vmem [thread:$0]  %s8387_s10, 16, %s174_s21, [#allocation15]  }
 0x169   :  { %s197_s11 = sshll.u32 %s7160_s3, 4  ;;  %s7161_s30 = smov [#allocation22]   ;;  %s198_s11 = int_to_ptr.vmem [resolvable:$true] %s197_s11 }
 0x16a   :  { %s221_s29 = sshll.u32 %s7161_s30, 4  ;;  %s222_s29 = int_to_ptr.vmem [resolvable:$true] %s221_s29 }
 0x16d   :  { %s6777_s8 = scalar_lea.hbm %s8388_s9, 16 }
 0x16e   :  { %p6778_p0 = scmp.ne.s32.totalorder %s8388_s9, %s6777_s8  ;;  %p6781_p1 = scmp.lt.u32.totalorder %s6777_s8, %s8388_s9 }
 0x170   :  { %p6783_p2 = pnand %p6781_p1, %p6778_p0 }
 0x172   :  { %6786 = shalt.err (!%p6783_p2)
}
 0x173   :  { %s6787_s14 = scalar_lea.vmem %s198_s11, 16  ;;  %s6791_s16 = scalar_lea.vmem %s198_s11, 32 }
 0x174   :  { %p6788_p3 = scmp.ne.s32.totalorder %s198_s11, %s6787_s14  ;;  %p6792_p4 = scmp.lt.s32.totalorder %s198_s11, %s198_s11 }
 0x175   :  { %p6793_p5 = scmp.lt.s32.totalorder %s6791_s16, %s6787_s14 }
 0x177   :  { %p6794_p6 = por %p6793_p5, %p6792_p4 }
 0x179   :  { %p6795_p7 = pnand %p6794_p6, %p6788_p3 }
 0x17b   :  { %6798 = shalt.err (!%p6795_p7)
}
 0x17c   :  { %s8389_s0 = sld [smem:[#allocation76_spill]] }
 0x17d   :  { %200 = dma.hbm_to_vmem [thread:$0]  %s8388_s9, 16, %s198_s11, [#allocation18]  }
 0x182   :  { %s6799_s5 = scalar_lea.hbm %s8389_s0, 16 }
 0x183   :  { %p6800_p8 = scmp.ne.s32.totalorder %s8389_s0, %s6799_s5  ;;  %p6803_p9 = scmp.lt.u32.totalorder %s6799_s5, %s8389_s0 }
 0x185   :  { %p6805_p10 = pnand %p6803_p9, %p6800_p8 }
 0x187   :  { %6808 = shalt.err (!%p6805_p10)
}
 0x188   :  { %s6809_s1 = scalar_lea.vmem %s222_s29, 16  ;;  %s6813_s24 = scalar_lea.vmem %s222_s29, 32 }
 0x189   :  { %p6810_p11 = scmp.ne.s32.totalorder %s222_s29, %s6809_s1  ;;  %p6814_p12 = scmp.lt.s32.totalorder %s222_s29, %s222_s29 }
 0x18a   :  { %p6815_p13 = scmp.lt.s32.totalorder %s6813_s24, %s6809_s1 }
 0x18c   :  { %p6816_p0 = por %p6815_p13, %p6814_p12 }
 0x18e   :  { %p6817_p1 = pnand %p6816_p0, %p6810_p11 }
 0x190   :  { %6820 = shalt.err (!%p6817_p1)
}
 0x191   :  { %s8390_s20 = sld [smem:[#allocation78_spill]]  ;;  %s7162_s6 = smov [#allocation25]  }
 0x192   :  { %224 = dma.hbm_to_vmem [thread:$0]  %s8389_s0, 16, %s222_s29, [#allocation21]  }
 0x193   :  { %s245_s7 = sshll.u32 %s7162_s6, 4  ;;  %s7163_s15 = smov [#allocation28]   ;;  %s246_s7 = int_to_ptr.vmem [resolvable:$true] %s245_s7 }
 0x194   :  { %s267_s4 = sshll.u32 %s7163_s15, 4  ;;  %s268_s4 = int_to_ptr.vmem [resolvable:$true] %s267_s4 }
 0x197   :  { %s6821_s18 = scalar_lea.hbm %s8390_s20, 16 }
 0x198   :  { %p6822_p2 = scmp.ne.s32.totalorder %s8390_s20, %s6821_s18  ;;  %p6825_p3 = scmp.lt.u32.totalorder %s6821_s18, %s8390_s20 }
 0x19a   :  { %p6827_p4 = pnand %p6825_p3, %p6822_p2 }
 0x19c   :  { %6830 = shalt.err (!%p6827_p4)
}
 0x19d   :  { %s6831_s27 = scalar_lea.vmem %s246_s7, 16  ;;  %s6835_s12 = scalar_lea.vmem %s246_s7, 32 }
 0x19e   :  { %p6832_p5 = scmp.ne.s32.totalorder %s246_s7, %s6831_s27  ;;  %p6836_p6 = scmp.lt.s32.totalorder %s246_s7, %s246_s7 }
 0x19f   :  { %p6837_p7 = scmp.lt.s32.totalorder %s6835_s12, %s6831_s27 }
 0x1a1   :  { %p6838_p8 = por %p6837_p7, %p6836_p6 }
 0x1a3   :  { %p6839_p9 = pnand %p6838_p8, %p6832_p5 }
 0x1a5   :  { %6842 = shalt.err (!%p6839_p9)
}
 0x1a6   :  { %s8391_s23 = sld [smem:[#allocation79_spill]] }
 0x1a7   :  { %248 = dma.hbm_to_vmem [thread:$0]  %s8390_s20, 16, %s246_s7, [#allocation24]  }
 0x1ac   :  { %s6843_s13 = scalar_lea.hbm %s8391_s23, 16 }
 0x1ad   :  { %p6844_p10 = scmp.ne.s32.totalorder %s8391_s23, %s6843_s13  ;;  %p6847_p11 = scmp.lt.u32.totalorder %s6843_s13, %s8391_s23 }
 0x1af   :  { %p6849_p12 = pnand %p6847_p11, %p6844_p10 }
 0x1b1   :  { %6852 = shalt.err (!%p6849_p12)
}
 0x1b2   :  { %s6853_s26 = scalar_lea.vmem %s268_s4, 16  ;;  %s6857_s28 = scalar_lea.vmem %s268_s4, 32 }
 0x1b3   :  { %p6854_p13 = scmp.ne.s32.totalorder %s268_s4, %s6853_s26  ;;  %p6858_p0 = scmp.lt.s32.totalorder %s268_s4, %s268_s4 }
 0x1b4   :  { %p6859_p1 = scmp.lt.s32.totalorder %s6857_s28, %s6853_s26 }
 0x1b6   :  { %p6860_p2 = por %p6859_p1, %p6858_p0 }
 0x1b8   :  { %p6861_p3 = pnand %p6860_p2, %p6854_p13 }
 0x1ba   :  { %6864 = shalt.err (!%p6861_p3)
}
 0x1bb   :  { %s8392_s21 = sld [smem:[#allocation82_spill]]  ;;  %s7164_s19 = smov [#allocation31]  }
 0x1bc   :  { %270 = dma.hbm_to_vmem [thread:$0]  %s8391_s23, 16, %s268_s4, [#allocation27]  }
 0x1bd   :  { %s293_s2 = sshll.u32 %s7164_s19, 4  ;;  %s7165_s10 = smov [#allocation34]   ;;  %s294_s2 = int_to_ptr.vmem [resolvable:$true] %s293_s2 }
 0x1be   :  { %s317_s22 = sshll.u32 %s7165_s10, 4  ;;  %s318_s22 = int_to_ptr.vmem [resolvable:$true] %s317_s22 }
 0x1c1   :  { %s6865_s17 = scalar_lea.hbm %s8392_s21, 16 }
 0x1c2   :  { %p6866_p4 = scmp.ne.s32.totalorder %s8392_s21, %s6865_s17  ;;  %p6869_p5 = scmp.lt.u32.totalorder %s6865_s17, %s8392_s21 }
 0x1c4   :  { %p6871_p6 = pnand %p6869_p5, %p6866_p4 }
 0x1c6   :  { %6874 = shalt.err (!%p6871_p6)
}
 0x1c7   :  { %s6875_s25 = scalar_lea.vmem %s294_s2, 16  ;;  %s6879_s9 = scalar_lea.vmem %s294_s2, 32 }
 0x1c8   :  { %p6876_p7 = scmp.ne.s32.totalorder %s294_s2, %s6875_s25  ;;  %p6880_p8 = scmp.lt.s32.totalorder %s294_s2, %s294_s2 }
 0x1c9   :  { %p6881_p9 = scmp.lt.s32.totalorder %s6879_s9, %s6875_s25 }
 0x1cb   :  { %p6882_p10 = por %p6881_p9, %p6880_p8 }
 0x1cd   :  { %p6883_p11 = pnand %p6882_p10, %p6876_p7 }
 0x1cf   :  { %6886 = shalt.err (!%p6883_p11)
}
 0x1d0   :  { %s8393_s3 = sld [smem:[#allocation84_spill]] }
 0x1d1   :  { %296 = dma.hbm_to_vmem [thread:$0]  %s8392_s21, 16, %s294_s2, [#allocation30]  }
 0x1d6   :  { %s6887_s11 = scalar_lea.hbm %s8393_s3, 16 }
 0x1d7   :  { %p6888_p12 = scmp.ne.s32.totalorder %s8393_s3, %s6887_s11  ;;  %p6891_p13 = scmp.lt.u32.totalorder %s6887_s11, %s8393_s3 }
 0x1d9   :  { %p6893_p0 = pnand %p6891_p13, %p6888_p12 }
 0x1db   :  { %6896 = shalt.err (!%p6893_p0)
}
 0x1dc   :  { %s6897_s30 = scalar_lea.vmem %s318_s22, 16  ;;  %s6901_s29 = scalar_lea.vmem %s318_s22, 32 }
 0x1dd   :  { %p6898_p1 = scmp.ne.s32.totalorder %s318_s22, %s6897_s30  ;;  %p6902_p2 = scmp.lt.s32.totalorder %s318_s22, %s318_s22 }
 0x1de   :  { %p6903_p3 = scmp.lt.s32.totalorder %s6901_s29, %s6897_s30 }
 0x1e0   :  { %p6904_p4 = por %p6903_p3, %p6902_p2 }
 0x1e2   :  { %p6905_p5 = pnand %p6904_p4, %p6898_p1 }
 0x1e4   :  { %6908 = shalt.err (!%p6905_p5)
}
 0x1e5   :  { %s8394_s8 = sld [smem:[#allocation85_spill]]  ;;  %s7166_s14 = smov [#allocation37]  }
 0x1e6   :  { %320 = dma.hbm_to_vmem [thread:$0]  %s8393_s3, 16, %s318_s22, [#allocation33]  }
 0x1e7   :  { %s339_s16 = sshll.u32 %s7166_s14, 4  ;;  %s7167_s0 = smov [#allocation40]   ;;  %s340_s16 = int_to_ptr.vmem [resolvable:$true] %s339_s16 }
 0x1e8   :  { %s365_s5 = sshll.u32 %s7167_s0, 4  ;;  %s366_s5 = int_to_ptr.vmem [resolvable:$true] %s365_s5 }
 0x1eb   :  { %s6909_s1 = scalar_lea.hbm %s8394_s8, 16 }
 0x1ec   :  { %p6910_p6 = scmp.ne.s32.totalorder %s8394_s8, %s6909_s1  ;;  %p6913_p7 = scmp.lt.u32.totalorder %s6909_s1, %s8394_s8 }
 0x1ee   :  { %p6915_p8 = pnand %p6913_p7, %p6910_p6 }
 0x1f0   :  { %6918 = shalt.err (!%p6915_p8)
}
 0x1f1   :  { %s6919_s24 = scalar_lea.vmem %s340_s16, 16  ;;  %s6923_s20 = scalar_lea.vmem %s340_s16, 32 }
 0x1f2   :  { %p6920_p9 = scmp.ne.s32.totalorder %s340_s16, %s6919_s24  ;;  %p6924_p10 = scmp.lt.s32.totalorder %s340_s16, %s340_s16 }
 0x1f3   :  { %p6925_p11 = scmp.lt.s32.totalorder %s6923_s20, %s6919_s24 }
 0x1f5   :  { %p6926_p12 = por %p6925_p11, %p6924_p10 }
 0x1f7   :  { %p6927_p13 = pnand %p6926_p12, %p6920_p9 }
 0x1f9   :  { %6930 = shalt.err (!%p6927_p13)
}
 0x1fa   :  { %s8395_s6 = sld [smem:[#allocation88_spill]] }
 0x1fb   :  { %342 = dma.hbm_to_vmem [thread:$0]  %s8394_s8, 16, %s340_s16, [#allocation36]  }
 0x200   :  { %s6931_s7 = scalar_lea.hbm %s8395_s6, 16 }
 0x201   :  { %p6932_p0 = scmp.ne.s32.totalorder %s8395_s6, %s6931_s7  ;;  %p6935_p1 = scmp.lt.u32.totalorder %s6931_s7, %s8395_s6 }
 0x203   :  { %p6937_p2 = pnand %p6935_p1, %p6932_p0 }
 0x205   :  { %6940 = shalt.err (!%p6937_p2)
}
 0x206   :  { %s6941_s15 = scalar_lea.vmem %s366_s5, 16  ;;  %s6945_s4 = scalar_lea.vmem %s366_s5, 32 }
 0x207   :  { %p6942_p3 = scmp.ne.s32.totalorder %s366_s5, %s6941_s15  ;;  %p6946_p4 = scmp.lt.s32.totalorder %s366_s5, %s366_s5 }
 0x208   :  { %p6947_p5 = scmp.lt.s32.totalorder %s6945_s4, %s6941_s15 }
 0x20a   :  { %p6948_p6 = por %p6947_p5, %p6946_p4 }
 0x20c   :  { %p6949_p7 = pnand %p6948_p6, %p6942_p3 }
 0x20e   :  { %6952 = shalt.err (!%p6949_p7)
}
 0x20f   :  { %s8396_s18 = sld [smem:[#allocation90_spill]]  ;;  %s7168_s27 = smov [#allocation43]  }
 0x210   :  { %368 = dma.hbm_to_vmem [thread:$0]  %s8395_s6, 16, %s366_s5, [#allocation39]  }
 0x211   :  { %s389_s12 = sshll.u32 %s7168_s27, 4  ;;  %s7169_s23 = smov [#allocation46]   ;;  %s390_s12 = int_to_ptr.vmem [resolvable:$true] %s389_s12 }
 0x212   :  { %s411_s13 = sshll.u32 %s7169_s23, 4  ;;  %s412_s13 = int_to_ptr.vmem [resolvable:$true] %s411_s13 }
 0x215   :  { %s6953_s26 = scalar_lea.hbm %s8396_s18, 16 }
 0x216   :  { %p6954_p8 = scmp.ne.s32.totalorder %s8396_s18, %s6953_s26  ;;  %p6957_p9 = scmp.lt.u32.totalorder %s6953_s26, %s8396_s18 }
 0x218   :  { %p6959_p10 = pnand %p6957_p9, %p6954_p8 }
 0x21a   :  { %6962 = shalt.err (!%p6959_p10)
}
 0x21b   :  { %s6963_s28 = scalar_lea.vmem %s390_s12, 16  ;;  %s6967_s21 = scalar_lea.vmem %s390_s12, 32 }
 0x21c   :  { %p6964_p11 = scmp.ne.s32.totalorder %s390_s12, %s6963_s28  ;;  %p6968_p12 = scmp.lt.s32.totalorder %s390_s12, %s390_s12 }
 0x21d   :  { %p6969_p13 = scmp.lt.s32.totalorder %s6967_s21, %s6963_s28 }
 0x21f   :  { %p6970_p0 = por %p6969_p13, %p6968_p12 }
 0x221   :  { %p6971_p1 = pnand %p6970_p0, %p6964_p11 }
 0x223   :  { %6974 = shalt.err (!%p6971_p1)
}
 0x224   :  { %s8397_s19 = sld [smem:[#allocation92_spill]] }
 0x225   :  { %392 = dma.hbm_to_vmem [thread:$0]  %s8396_s18, 16, %s390_s12, [#allocation42]  }
 0x22a   :  { %s6975_s2 = scalar_lea.hbm %s8397_s19, 16 }
 0x22b   :  { %p6976_p2 = scmp.ne.s32.totalorder %s8397_s19, %s6975_s2  ;;  %p6979_p3 = scmp.lt.u32.totalorder %s6975_s2, %s8397_s19 }
 0x22d   :  { %p6981_p4 = pnand %p6979_p3, %p6976_p2 }
 0x22f   :  { %6984 = shalt.err (!%p6981_p4)
}
 0x230   :  { %s6985_s10 = scalar_lea.vmem %s412_s13, 16  ;;  %s6989_s22 = scalar_lea.vmem %s412_s13, 32 }
 0x231   :  { %p6986_p5 = scmp.ne.s32.totalorder %s412_s13, %s6985_s10  ;;  %p6990_p6 = scmp.lt.s32.totalorder %s412_s13, %s412_s13 }
 0x232   :  { %p6991_p7 = scmp.lt.s32.totalorder %s6989_s22, %s6985_s10 }
 0x234   :  { %p6992_p8 = por %p6991_p7, %p6990_p6 }
 0x236   :  { %p6993_p9 = pnand %p6992_p8, %p6986_p5 }
 0x238   :  { %6996 = shalt.err (!%p6993_p9)
}
 0x239   :  { %s8398_s17 = sld [smem:[#allocation97_spill]]  ;;  %s7170_s25 = smov [#allocation49]  }
 0x23a   :  { %414 = dma.hbm_to_vmem [thread:$0]  %s8397_s19, 16, %s412_s13, [#allocation45]  }
 0x23b   :  { %s439_s9 = sshll.u32 %s7170_s25, 4  ;;  %s7171_s3 = smov [#allocation50]   ;;  %s440_s9 = int_to_ptr.vmem [resolvable:$true] %s439_s9 }
 0x23c   :  { %s451_s11 = sshll.u32 %s7171_s3, 4  ;;  %s452_s11 = int_to_ptr.vmem [resolvable:$true] %s451_s11 }
 0x23f   :  { %s6997_s30 = scalar_lea.hbm %s8398_s17, 16 }
 0x240   :  { %p6998_p10 = scmp.ne.s32.totalorder %s8398_s17, %s6997_s30  ;;  %p7001_p11 = scmp.lt.u32.totalorder %s6997_s30, %s8398_s17 }
 0x242   :  { %p7003_p12 = pnand %p7001_p11, %p6998_p10 }
 0x244   :  { %7006 = shalt.err (!%p7003_p12)
}
 0x245   :  { %s7007_s29 = scalar_lea.vmem %s440_s9, 16  ;;  %s7011_s8 = scalar_lea.vmem %s440_s9, 32 }
 0x246   :  { %p7008_p13 = scmp.ne.s32.totalorder %s440_s9, %s7007_s29  ;;  %p7012_p0 = scmp.lt.s32.totalorder %s440_s9, %s440_s9 }
 0x247   :  { %p7013_p1 = scmp.lt.s32.totalorder %s7011_s8, %s7007_s29 }
 0x249   :  { %p7014_p2 = por %p7013_p1, %p7012_p0 }
 0x24b   :  { %p7015_p3 = pnand %p7014_p2, %p7008_p13 }
 0x24d   :  { %7018 = shalt.err (!%p7015_p3)
}
 0x24e   :  { %s8399_s14 = sld [smem:[#allocation99_spill]] }
 0x24f   :  { %442 = dma.hbm_to_vmem [thread:$0]  %s8398_s17, 16, %s440_s9, [#allocation48]  }
 0x254   :  { %s7019_s16 = scalar_lea.hbm %s8399_s14, 16 }
 0x255   :  { %p7020_p4 = scmp.ne.s32.totalorder %s8399_s14, %s7019_s16  ;;  %p7023_p5 = scmp.lt.u32.totalorder %s7019_s16, %s8399_s14 }
 0x257   :  { %p7025_p6 = pnand %p7023_p5, %p7020_p4 }
 0x259   :  { %7028 = shalt.err (!%p7025_p6)
}
 0x25a   :  { %s7029_s0 = scalar_lea.vmem %s452_s11, 16  ;;  %s7033_s5 = scalar_lea.vmem %s452_s11, 32 }
 0x25b   :  { %p7030_p7 = scmp.ne.s32.totalorder %s452_s11, %s7029_s0  ;;  %p7034_p8 = scmp.lt.s32.totalorder %s452_s11, %s452_s11 }
 0x25c   :  { %p7035_p9 = scmp.lt.s32.totalorder %s7033_s5, %s7029_s0 }
 0x25e   :  { %p7036_p10 = por %p7035_p9, %p7034_p8 }
 0x260   :  { %p7037_p11 = pnand %p7036_p10, %p7030_p7 }
 0x262   :  { %7040 = shalt.err (!%p7037_p11)
}
 0x263   :  { %454 = dma.hbm_to_vmem [thread:$0]  %s8399_s14, 16, %s452_s11, [#allocation51]  }
 0x264   :  { %7063 = dma.done.wait [#allocation12], 256  }
 0x265   :  { %7064 = vsyncadd [#allocation12], 4294967040 }
 0x266   :  { %7065 = dma.done.wait [#allocation15], 272  }
 0x267   :  { %7066 = vsyncadd [#allocation15], 4294967024 }
 0x268   :  { %7067 = dma.done.wait [#allocation18], 32  }
 0x269   :  { %7068 = vsyncadd [#allocation18], 4294967264 }
 0x26a   :  { %7069 = dma.done.wait [#allocation21], 32  }
 0x26b   :  { %7070 = vsyncadd [#allocation21], 4294967264 }
 0x26c   :  { %7071 = dma.done.wait [#allocation24], 32  }
 0x26d   :  { %7072 = vsyncadd [#allocation24], 4294967264 }
 0x26e   :  { %7073 = dma.done.wait [#allocation27], 32  }
 0x26f   :  { %7074 = vsyncadd [#allocation27], 4294967264 }
 0x270   :  { %7075 = dma.done.wait [#allocation30], 32  }
 0x271   :  { %7076 = vsyncadd [#allocation30], 4294967264 }
 0x272   :  { %7077 = dma.done.wait [#allocation33], 32  }
 0x273   :  { %7078 = vsyncadd [#allocation33], 4294967264 }
 0x274   :  { %7079 = dma.done.wait [#allocation36], 32  }
 0x275   :  { %7080 = vsyncadd [#allocation36], 4294967264 }
 0x276   :  { %7081 = dma.done.wait [#allocation39], 32  }
 0x277   :  { %7082 = vsyncadd [#allocation39], 4294967264 }
 0x278   :  { %7083 = dma.done.wait [#allocation42], 32  }
 0x279   :  { %7084 = vsyncadd [#allocation42], 4294967264 }
 0x27a   :  { %7085 = dma.done.wait [#allocation45], 32  }
 0x27b   :  { %7086 = vsyncadd [#allocation45], 4294967264 }
 0x27c   :  { %7087 = dma.done.wait [#allocation48], 32  }
 0x27d   :  { %7088 = vsyncadd [#allocation48], 4294967264 }
 0x27e   :  { %7089 = dma.done.wait [#allocation51], 16  }
 0x27f   :  { %7090 = vsyncadd [#allocation51], 4294967280  ;;  %s8400_s1 = sld [smem:[#allocation68_spill]]  ;;  %v561_v9 = vlaneseq  ;;  %v7172_v10 = vmov 0   ;;  %vm576_vm0 = vcmask 130048   ;;  %v537_v14 = vld [vmem:[#allocation14] sm:$0xff] }
 0x280   :  { %6384 = vset.pattern.permute.xlu1 %v7172_v10  ;;  %v538_v15 = vld [vmem:[#allocation14 + $0x8] sm:$0xff]  ;;  %v535_v19 = vld [vmem:[#allocation11] sm:$0xff]  ;;  %v536_v20 = vld [vmem:[#allocation11 + $0x8] sm:$0xff]  ;;  %v7173_v23 = vmov 0.0   ;;  %s8405_s24 = sld [smem:[#allocation74_spill]]  ;;  %s8408_s20 = sld [smem:[#allocation77_spill]] }
 0x281   :  { %v7560_v11 = vshrl.u32 %v561_v9, 7  ;;  %v7562_v12 = vand.u32 127, %v561_v9  ;;  %v6143_v18 = vpack.c.bf16 %v538_v15, %v537_v14  ;;  %vm570_vm3 = vcmp.gt.f32.partialorder %v535_v19, 0.0  ;;  %v5493_v0 = vld [vmem:[#allocation16] ss:$0 sm:$0xff]  ;;  %s8409_s6 = sld [smem:[#allocation75_spill]] }
 0x282   :  { %vm571_vm4 = vcmp.gt.f32.partialorder %v536_v20, 0.0  ;;  %v7174_v62 = vmov 1   ;;  %v7175_v63 = vmov 2   ;;  %vm8350_vm12 = vcmask 261120   ;;  %s8412_s7 = sld [smem:[#allocation71_spill]]  ;;  %s8416_s15 = sld [smem:[#allocation80_spill]] }
 0x283   :  { %v7565_v13 = vadd.s32 8, %v7560_v11  ;;  %vm7570_vm1 = vcmp.eq.s32.totalorder %v7560_v11, %v7562_v12  ;;  %6144 = vmatprep.subr.bf16.mxu0 %v6143_v18  ;;  %6385 = vset.pattern.permute.xlu0 %v7174_v62  ;;  %v7176_v15 = vmov 3   ;;  %v7179_v19 = vmov 4   ;;  %s8417_s4 = sld [smem:[#allocation81_spill]]  ;;  %s8419_s18 = sld [smem:[#allocation83_spill]] }
 0x284   :  { %vm7579_vm5 = vmor %vm7570_vm1, %vm570_vm3  ;;  %6146 = vmatpush3.bf16.msra.mxu0 %v6143_v18  ;;  %v7178_v18 = vmov 8   ;;  %v7180_v20 = vmov 10   ;;  %s8429_s27 = sld [smem:[#allocation72_spill]]  ;;  %s8433_s12 = sld [smem:[#allocation86_spill]] }
 0x285   :  { %v533_v16 = vld [vmem:[%s8400_s1] sm:$0xff]  ;;  %vm567_vm2 = vcmp.eq.s32.totalorder %v7565_v13, %v7562_v12  ;;  %v534_v22 = vld [vmem:[%s8400_s1 + $0x8] sm:$0xff]  ;;  %v7587_v24 = vsel %vm7579_vm5, 1.0, %v7173_v23  ;;  %s8434_s23 = sld [smem:[#allocation87_spill]]  ;;  %s8435_s13 = sld [smem:[#allocation89_spill]] }
 0x286   :  { %5775 = vmatprep.mubr.msk.f32.mxu0 %vm576_vm0, %v533_v16  ;;  %vm7592_vm6 = vmor %vm567_vm2, %vm571_vm4  ;;  %v577_v26 = vsel %vm576_vm0, %v7587_v24, 0.0  ;;  %vm936_vm7 = vcmp.gt.f32.partialorder %v7587_v24, 0.0  ;;  %v540_v32 = vld [vmem:[%s8405_s24] sm:$0xff]  ;;  %v541_v33 = vld [vmem:[%s8405_s24 + $0x8] sm:$0xff]  ;;  %v7177_v16 = vmov 7   ;;  %s8446_s26 = sld [smem:[#allocation93_spill]] }
 0x287   :  { %v7602_v27 = vsel %vm7592_vm6, 1.0, %v7173_v23  ;;  %v7607_v28 = vsel %vm936_vm7, 1, %v7172_v10  ;;  %578 = vadd.xlane.f32.xlu0 %v577_v26  ;;  %5776 = vmatmul.mubr.msk.f32.vlgmr.msra.gmra.mrb[0].mxu0 %vm576_vm0, %v534_v22  ;;  %v6151_v34 = vpack.c.bf16 %v541_v33, %v540_v32  ;;  %v542_v56 = vld [vmem:[%s8405_s24 + $0x10] sm:$0xff]  ;;  %v543_v57 = vld [vmem:[%s8405_s24 + $0x18] sm:$0xff]  ;;  %v550_v59 = vld [vmem:[%s8408_s20] sm:$0xff]  ;;  %v7181_v22 = vmov 5  }
 0x288   :  { %v580_v29 = vsel %vm576_vm0, %v7602_v27, 0.0  ;;  %vm937_vm8 = vcmp.gt.f32.partialorder %v7602_v27, 0.0  ;;  %941 = vperm.xlu1 %6384, %v7607_v28   ;;  %v6155_v58 = vpack.c.bf16 %v543_v57, %v542_v56  ;;  %v551_v60 = vld [vmem:[%s8408_s20 + $0x8] sm:$0xff]  ;;  %v552_v5 = vld [vmem:[%s8408_s20 + $0x10] sm:$0xff]  ;;  %v553_v6 = vld [vmem:[%s8408_s20 + $0x18] sm:$0xff]  ;;  %v7185_v32 = vmov 14  }
 0x289   :  { %v583_v30 = vadd.f32 %v580_v29, %v577_v26  ;;  %v7617_v31 = vsel %vm937_vm8, 1, %v7172_v10  ;;  %6152 = vmatprep.subr.bf16.mxu0 %v6151_v34  ;;  %v6171_v61 = vpack.c.bf16 %v551_v60, %v550_v59  ;;  %v6175_v9 = vpack.c.bf16 %v553_v6, %v552_v5  ;;  %s8447_s28 = sld [smem:[#allocation94_spill]]  ;;  %s8448_s21 = sld [smem:[#allocation96_spill]] }
 0x28a   :  { %6154 = vmatpush3.bf16.msra.mxu0 %v6151_v34  ;;  %v7182_v26 = vmov 11   ;;  %v7186_v33 = vmov 9   ;;  %v7187_v34 = vmov 12   ;;  %v7724_v5 = vsub.s32 0, %v7560_v11  ;;  %s8451_s19 = sld [smem:[#allocation98_spill]]  ;;  %s7193_s2 = smov [#allocation52]  }
 0x28b   :  { %581 = vadd.xlane.f32.xlu0 %v580_v29  ;;  %v584_v35 = vrot.slane %v583_v30, 4  ;;  %6156 = vmatprep.subr.bf16.mxu0 %v6155_v58  ;;  %v7183_v29 = vmov 13   ;;  %s5418_s10 = sshll.u32 %s7193_s2, 4  ;;  %s5419_s10 = int_to_ptr.vmem [resolvable:$true] %s5418_s10 }
 0x28c   :  { %944 = vperm.xlu1 %6384, %v7617_v31   ;;  %s7041_s22 = scalar_lea.vmem %s5419_s10, 16  ;;  %s7045_s17 = scalar_lea.vmem %s5419_s10, 32 }
 0x28d   :  { %v585_v36 = vadd.f32 %v584_v35, %v583_v30  ;;  %v7184_v30 = vmov 6   ;;  %v7188_v35 = vmov 15   ;;  %p7042_p12 = scmp.ne.s32.totalorder %s5419_s10, %s7041_s22  ;;  %p7046_p13 = scmp.lt.s32.totalorder %s5419_s10, %s5419_s10 }
 0x28e   :  { %6158 = vmatpush3.bf16.msra.mxu0 %v6155_v58  ;;  %p7047_p0 = scmp.lt.s32.totalorder %s7045_s17, %s7041_s22 }
 0x28f   :  { %v586_v37 = vrot.slane %v585_v36, 2  ;;  %6172 = vmatprep.subr.bf16.mxu0 %v6171_v61 }
 0x290   :  { %6386 = vset.pattern.permute.xlu1 %v7174_v62  ;;  %p7048_p1 = por %p7047_p0, %p7046_p13 }
 0x291   :  { %v587_v38 = vadd.f32 %v586_v37, %v585_v36  ;;  %960 = vperm.xlu1 %6386, %v7617_v31  }
 0x292   :  { %p7049_p2 = pnand %p7048_p1, %p7042_p12 }
 0x293   :  { %v588_v39 = vrot.slane %v587_v38, 1 }
 0x295   :  { %v7622_v40 = vadd.f32 %v588_v39, %v587_v38  ;;  %6387 = vset.pattern.permute.xlu1 %v7175_v63 }
 0x296   :  { %973 = vperm.xlu1 %6387, %v7607_v28  }
 0x297   :  { %6423 = vrsqrt.f32 %v7622_v40  ;;  %vm596_vm10 = vcmp.gt.f32.partialorder %v7622_v40, 0.0 }
 0x29a   :  { %976 = vperm.xlu1 %6387, %v7617_v31  }
 0x29e   :  { %6388 = vset.pattern.permute.xlu1 %v7176_v15 }
 0x29f   :  { %989 = vperm.xlu1 %6388, %v7607_v28  }
 0x2a1   :  { %v6424_v42 = vpop.eup %6423  ;;  %957 = vperm.xlu0 %6385, %v7607_v28  }
 0x2a2   :  { %v598_v45 = vsel %vm596_vm10, %v6424_v42, 0.0 }
 0x2a3   :  { %992 = vperm.xlu1 %6388, %v7617_v31  }
 0x2a5   :  { %6392 = vset.pattern.permute.xlu0 %v7177_v16 }
 0x2a6   :  { %1053 = vperm.xlu0 %6392, %v7607_v28  }
 0x2a7   :  { %6389 = vset.pattern.permute.xlu1 %v7179_v19 }
 0x2a8   :  { %1005 = vperm.xlu1 %6389, %v7607_v28  }
 0x2aa   :  { %6395 = vset.pattern.permute.xlu0 %v7178_v18 }
 0x2ab   :  { %1072 = vperm.xlu0 %6395, %v7617_v31  }
 0x2ac   :  { %1008 = vperm.xlu1 %6389, %v7617_v31  }
 0x2af   :  { %6397 = vset.pattern.permute.xlu0 %v7180_v20 }
 0x2b0   :  { %1101 = vperm.xlu0 %6397, %v7607_v28   ;;  %6390 = vset.pattern.permute.xlu1 %v7181_v22 }
 0x2b1   :  { %1021 = vperm.xlu1 %6390, %v7607_v28  }
 0x2b4   :  { %6400 = vset.pattern.permute.xlu0 %v7182_v26 }
 0x2b5   :  { %1120 = vperm.xlu0 %6400, %v7617_v31   ;;  %1024 = vperm.xlu1 %6390, %v7617_v31  }
 0x2b9   :  { %6402 = vset.pattern.permute.xlu0 %v7183_v29  ;;  %6391 = vset.pattern.permute.xlu1 %v7184_v30 }
 0x2ba   :  { %1149 = vperm.xlu0 %6402, %v7607_v28   ;;  %1037 = vperm.xlu1 %6391, %v7607_v28  }
 0x2be   :  { %6405 = vset.pattern.permute.xlu0 %v7185_v32  ;;  %1040 = vperm.xlu1 %6391, %v7617_v31  }
 0x2bf   :  { %1168 = vperm.xlu0 %6405, %v7617_v31  }
 0x2c2   :  { %6393 = vset.pattern.permute.xlu1 %v7177_v16 }
 0x2c3   :  { %6407 = vset.pattern.permute.xlu0 %v7172_v10  ;;  %1056 = vperm.xlu1 %6393, %v7617_v31  }
 0x2c7   :  { %6394 = vset.pattern.permute.xlu1 %v7178_v18 }
 0x2c8   :  { %1069 = vperm.xlu1 %6394, %v7607_v28  }
 0x2cc   :  { %6396 = vset.pattern.permute.xlu1 %v7186_v33 }
 0x2cd   :  { %1085 = vperm.xlu1 %6396, %v7607_v28  }
 0x2d1   :  { %1088 = vperm.xlu1 %6396, %v7617_v31  }
 0x2d5   :  { %6398 = vset.pattern.permute.xlu1 %v7180_v20  ;;  %v7734_v20 = vsub.s32 2, %v7560_v11 }
 0x2d6   :  { %1104 = vperm.xlu1 %6398, %v7617_v31  }
 0x2da   :  { %6399 = vset.pattern.permute.xlu1 %v7182_v26  ;;  %v7737_v26 = vsub.s32 3, %v7560_v11 }
 0x2db   :  { %1117 = vperm.xlu1 %6399, %v7607_v28  }
 0x2df   :  { %6401 = vset.pattern.permute.xlu1 %v7187_v34  ;;  %v7746_v34 = vsub.s32 4, %v7560_v11 }
 0x2e0   :  { %1133 = vperm.xlu1 %6401, %v7607_v28  }
 0x2e4   :  { %1136 = vperm.xlu1 %6401, %v7617_v31  }
 0x2e8   :  { %6403 = vset.pattern.permute.xlu1 %v7183_v29 }
 0x2e9   :  { %1152 = vperm.xlu1 %6403, %v7617_v31  }
 0x2ed   :  { %6404 = vset.pattern.permute.xlu1 %v7185_v32 }
 0x2ee   :  { %1165 = vperm.xlu1 %6404, %v7607_v28  }
 0x2f2   :  { %6406 = vset.pattern.permute.xlu1 %v7188_v35 }
 0x2f3   :  { %1181 = vperm.xlu1 %6406, %v7607_v28   ;;  %v545_v28 = vld [vmem:[%s8409_s6] sm:$0xff] }
 0x2f7   :  { %1184 = vperm.xlu1 %6406, %v7617_v31   ;;  %v547_v31 = vld [vmem:[%s8409_s6 + $0x10] sm:$0xff] }
 0x2fb   :  { %6408 = vset.pattern.permute.xlu1 %v7172_v10 }
 0x307   :  { %v942_v39 = vpop.permute.xlu1 %941 }
 0x308   :  { %vm946_vm13 = vcmp.eq.s32.totalorder %v942_v39, 1  ;;  %v7754_v39 = vsub.s32 5, %v7560_v11 }
 0x314   :  { %v579_v41 = vpop.xlane.xlu0 %578 }
 0x315   :  { %6425 = vrsqrt.f32 %v579_v41  ;;  %vm590_vm9 = vcmp.gt.f32.partialorder %v579_v41, 0.0  ;;  %v945_v41 = vpop.permute.xlu1 %944 }
 0x316   :  { %vm947_vm15 = vcmp.eq.s32.totalorder %v945_v41, 1 }
 0x318   :  { %v582_v48 = vpop.xlane.xlu0 %581 }
 0x319   :  { %6427 = vrsqrt.f32 %v582_v48  ;;  %vm591_vm11 = vcmp.gt.f32.partialorder %v582_v48, 0.0  ;;  %v961_v42 = vpop.permute.xlu1 %960 }
 0x31a   :  { %vm963_vm3 = vcmp.eq.s32.totalorder %v961_v42, 1  ;;  %v7760_v42 = vsub.s32 6, %v7560_v11 }
 0x31f   :  { %v6426_v43 = vpop.eup %6425 }
 0x320   :  { %v594_v44 = vsel %vm590_vm9, %v6426_v43, 0.0  ;;  %v7688_v43 = vpop.permute.xlu1 %973 }
 0x321   :  { %v599_v46 = vmul.f32 %v594_v44, %v7587_v24  ;;  %v546_v44 = vld [vmem:[%s8409_s6 + $0x8] sm:$0xff]  ;;  %vm978_vm4 = vcmp.eq.s32.totalorder %v7688_v43, 1 }
 0x323   :  { %v601_v47 = vmul.f32 %v599_v46, %v598_v45  ;;  %v6428_v49 = vpop.eup %6427  ;;  %v548_v46 = vld [vmem:[%s8409_s6 + $0x18] sm:$0xff] }
 0x324   :  { %v595_v50 = vsel %vm591_vm11, %v6428_v49, 0.0  ;;  %v6167_v48 = vpack.c.bf16 %v548_v46, %v547_v31 }
 0x325   :  { %5782 = vmatprep.mubr.msk.f32.mxu1 %vm576_vm0, %v601_v47  ;;  %v600_v53 = vmul.f32 %v595_v50, %v7602_v27  ;;  %v7189_v50 = vmov 0.0|0.0  }
 0x327   :  { %v7629_v55 = vmul.f32 %v600_v53, %v598_v45  ;;  %v6163_v45 = vpack.c.bf16 %v546_v44, %v545_v28 }
 0x35a   :  { %v5777_v51 = vpop.f32.mrb[0].mxu0 }
 0x35b   :  { %v675_v52 = vpop.f32.mrb[1].mxu0 }
 0x35c   :  { %v6147_v54 = vpack.c.bf16 %v5777_v51, %v675_v52 }
 0x35e   :  { %6148 = vmatprep.subr.bf16.mxu1 %v6147_v54 }
 0x35f   :  { %6150 = vmatpush3.bf16.msra.mxu1 %v6147_v54 }
 0x362   :  { %5783 = vmatmul.mubr.msk.f32.vlgmr.msra.gmra.mrb[0].mxu1 %vm576_vm0, %v7629_v55 }
 0x363   :  { %5800 = vmatprep.mubr.msk.f32.mxu1 %vm576_vm0, %v601_v47  ;;  %v7694_v47 = vpop.permute.xlu1 %976 }
 0x364   :  { %vm979_vm9 = vcmp.eq.s32.totalorder %v7694_v47, 1  ;;  %v7769_v47 = vsub.s32 7, %v7560_v11 }
 0x367   :  { %v990_v49 = vpop.permute.xlu1 %989 }
 0x368   :  { %vm994_vm10 = vcmp.eq.s32.totalorder %v990_v49, 1 }
 0x36b   :  { %v993_v51 = vpop.permute.xlu1 %992 }
 0x36c   :  { %vm995_vm11 = vcmp.eq.s32.totalorder %v993_v51, 1 }
 0x36f   :  { %v7697_v52 = vpop.permute.xlu1 %1005 }
 0x373   :  { %v7699_v53 = vpop.permute.xlu1 %1008 }
 0x377   :  { %v7701_v54 = vpop.permute.xlu1 %1021 }
 0x435   :  { %v5784_v1 = vpop.f32.mrb[0].mxu1 }
 0x436   :  { %v768_v2 = vadd.f32 %v5784_v1, %v5493_v0  ;;  %v762_v3 = vpop.f32.mrb[1].mxu1  ;;  %v958_v1 = vpop.permute.xlu0 %957 }
 0x437   :  { %v763_v4 = vadd.f32 %v5493_v0, %v762_v3  ;;  %vm962_vm14 = vcmp.eq.s32.totalorder %v958_v1, 1 }
 0x438   :  { %v772_v7 = vmax.f32 %v768_v2, 0.0 }
 0x439   :  { %v771_v8 = vmax.f32 %v763_v4, 0.0  ;;  %v5498_v4 = vld [vmem:[#allocation20] ss:$0 sm:$0xff] }
 0x43a   :  { %v7721_v3 = vpop.permute.xlu0 %1053 }
 0x43b   :  { %v7647_v14 = vpack.c.bf16 %v772_v7, %v771_v8  ;;  %5793 = vmatprep.mubr.msk.f32.mxu0 %vm8350_vm12, %v771_v8 }
 0x43c   :  { %5794 = vmatmul.mubr.msk.f32.vlgmr.msra.gmra.mrb[2].mxu0 %vm8350_vm12, %v772_v7  ;;  %v7727_v7 = vsub.s32 1, %v7560_v11 }
 0x43d   :  { %6174 = vmatpush3.bf16.msra.mxu0 %v6171_v61 }
 0x43e   :  { %6176 = vmatprep.subr.bf16.mxu0 %v6175_v9  ;;  %v7743_v33 = vpop.permute.xlu0 %1072 }
 0x441   :  { %6178 = vmatpush3.bf16.msra.mxu0 %v6175_v9 }
 0x442   :  { %6184 = vmatprep.subr.bf16.mxu0 %v7647_v14 }
 0x50f   :  { %v5795_v36 = vpop.f32.mrb[2].mxu0 }
 0x510   :  { %v846_v37 = vpop.f32.mrb[3].mxu0 }
 0x511   :  { %v6159_v38 = vpack.c.bf16 %v5795_v36, %v846_v37 }
 0x513   :  { %6160 = vmatprep.subr.bf16.mxu1 %v6159_v38 }
 0x514   :  { %6162 = vmatpush3.bf16.msra.mxu1 %v6159_v38 }
 0x515   :  { %6164 = vmatprep.subr.bf16.mxu1 %v6163_v45 }
 0x517   :  { %5801 = vmatmul.mubr.msk.f32.vlgmr.msra.gmra.mrb[2].mxu1 %vm576_vm0, %v7629_v55  ;;  %v7703_v55 = vpop.permute.xlu1 %1024 }
 0x518   :  { %6166 = vmatpush3.bf16.msra.mxu1 %v6163_v45 }
 0x519   :  { %6168 = vmatprep.subr.bf16.mxu1 %v6167_v48 }
 0x51b   :  { %v7705_v56 = vpop.permute.xlu1 %1037 }
 0x51c   :  { %6170 = vmatpush3.bf16.msra.mxu1 %v6167_v48 }
 0x51d   :  { %6179 = vmatprep.subr.bf16.mxu1 %v7189_v50 }
 0x51f   :  { %v7707_v57 = vpop.permute.xlu1 %1040 }
 0x523   :  { %v7709_v58 = vpop.permute.xlu1 %1056 }
 0x527   :  { %v7711_v59 = vpop.permute.xlu1 %1069 }
 0x52b   :  { %v7713_v60 = vpop.permute.xlu1 %1085 }
 0x52f   :  { %v7715_v61 = vpop.permute.xlu1 %1088 }
 0x533   :  { %v7717_v0 = vpop.permute.xlu1 %1104 }
 0x537   :  { %v7719_v2 = vpop.permute.xlu1 %1117 }
 0x53b   :  { %v7729_v8 = vpop.permute.xlu1 %1133 }
 0x53f   :  { %v7751_v37 = vpop.permute.xlu1 %1136 }
 0x5ea   :  { %v5802_v6 = vpop.f32.mrb[2].mxu1 }
 0x5eb   :  { %v927_v9 = vpop.f32.mrb[3].mxu1 }
 0x5ec   :  { %v7731_v18 = vadd.f32 %v5498_v4, %v927_v9  ;;  %v7764_v9 = vpop.permute.xlu0 %1101 }
 0x5ee   :  { %v951_v29 = vrot.slane %v7731_v18, %v7724_v5  ;;  %v967_v32 = vrot.slane %v7731_v18, %v7727_v7  ;;  %v983_v36 = vrot.slane %v7731_v18, %v7734_v20  ;;  %v999_v41 = vrot.slane %v7731_v18, %v7737_v26 }
 0x5ef   :  { %v1015_v1 = vrot.slane %v7731_v18, %v7746_v34 }
 0x5f0   :  { %v952_v35 = vsel %vm946_vm13, %v951_v29, -1e+30  ;;  %v953_v38 = vsel %vm947_vm15, %v951_v29, -1e+30  ;;  %v968_v45 = vsel %vm962_vm14, %v967_v32, -1e+30  ;;  %v7766_v29 = vadd.f32 %v5802_v6, %v5498_v4 }
 0x5f1   :  { %v954_v28 = vmax.f32 %v952_v35, -1e+30  ;;  %v955_v44 = vmax.f32 %v953_v38, -1e+30  ;;  %v969_v31 = vsel %vm963_vm3, %v967_v32, -1e+30 }
 0x5f2   :  { %v984_v48 = vsel %vm978_vm4, %v983_v36, -1e+30  ;;  %v985_v35 = vsel %vm979_vm9, %v983_v36, -1e+30  ;;  %v1000_v32 = vsel %vm994_vm10, %v999_v41, -1e+30  ;;  %v1047_v36 = vrot.slane %v7731_v18, %v7760_v42 }
 0x5f3   :  { %v970_v46 = vmax.f32 %v954_v28, %v968_v45  ;;  %v971_v43 = vmax.f32 %v955_v44, %v969_v31  ;;  %v1031_v28 = vrot.slane %v7731_v18, %v7754_v39  ;;  %vm1010_vm13 = vcmp.eq.s32.totalorder %v7697_v52, 1  ;;  %v7774_v44 = vpop.permute.xlu1 %1152 }
 0x5f4   :  { %v1001_v45 = vsel %vm995_vm11, %v999_v41, -1e+30  ;;  %vm1011_vm14 = vcmp.eq.s32.totalorder %v7699_v53, 1  ;;  %v1016_v6 = vsel %vm1010_vm13, %v1015_v1, -1e+30  ;;  %vm1026_vm15 = vcmp.eq.s32.totalorder %v7701_v54, 1  ;;  %v1121_v53 = vpop.permute.xlu0 %1120 }
 0x5f5   :  { %v986_v38 = vmax.f32 %v970_v46, %v984_v48  ;;  %v987_v49 = vmax.f32 %v971_v43, %v985_v35  ;;  %v1017_v31 = vsel %vm1011_vm14, %v1015_v1, -1e+30  ;;  %v6180_v43 = vpack.c.bf16 %v7766_v29, %v7731_v18 }
 0x5f6   :  { %vm1027_vm3 = vcmp.eq.s32.totalorder %v7703_v55, 1  ;;  %v1063_v52 = vrot.slane %v7731_v18, %v7769_v47  ;;  %v1032_v48 = vsel %vm1026_vm15, %v1031_v28, -1e+30  ;;  %vm1042_vm4 = vcmp.eq.s32.totalorder %v7705_v56, 1 }
 0x5f7   :  { %v1002_v51 = vmax.f32 %v986_v38, %v1000_v32  ;;  %v1003_v4 = vmax.f32 %v987_v49, %v1001_v45  ;;  %vm1058_vm9 = vcmp.eq.s32.totalorder %v7721_v3, 1  ;;  %v1033_v35 = vsel %vm1027_vm3, %v1031_v28, -1e+30  ;;  %v1166_v55 = vpop.permute.xlu1 %1165 }
 0x5f8   :  { %vm1043_vm10 = vcmp.eq.s32.totalorder %v7707_v57, 1  ;;  %v1048_v1 = vsel %vm1042_vm4, %v1047_v36, -1e+30  ;;  %v1079_v49 = vrot.slane %v7766_v29, %v7724_v5  ;;  %vm1075_vm11 = vcmp.eq.s32.totalorder %v7743_v33, 1 }
 0x5f9   :  { %v1018_v46 = vmax.f32 %v1002_v51, %v1016_v6  ;;  %v1019_v41 = vmax.f32 %v1003_v4, %v1017_v31  ;;  %v1049_v32 = vsel %vm1043_vm10, %v1047_v36, -1e+30  ;;  %vm1059_vm13 = vcmp.eq.s32.totalorder %v7709_v58, 1  ;;  %v1150_v58 = vpop.permute.xlu0 %1149 }
 0x5fa   :  { %v1064_v56 = vsel %vm1058_vm9, %v1063_v52, -1e+30  ;;  %v1095_v3 = vrot.slane %v7766_v29, %v7727_v7  ;;  %vm1074_vm14 = vcmp.eq.s32.totalorder %v7711_v59, 1  ;;  %v1065_v57 = vsel %vm1059_vm13, %v1063_v52, -1e+30 }
 0x5fb   :  { %v1034_v38 = vmax.f32 %v1018_v46, %v1032_v48  ;;  %v1035_v54 = vmax.f32 %v1019_v41, %v1033_v35  ;;  %vm1106_vm15 = vcmp.eq.s32.totalorder %v7764_v9, 1  ;;  %v1080_v6 = vsel %vm1074_vm14, %v1079_v49, -1e+30  ;;  %v1182_v48 = vpop.permute.xlu1 %1181 }
 0x5fc   :  { %v1111_v31 = vrot.slane %v7766_v29, %v7734_v20  ;;  %vm1090_vm3 = vcmp.eq.s32.totalorder %v7713_v60, 1  ;;  %vm1091_vm4 = vcmp.eq.s32.totalorder %v7715_v61, 1  ;;  %v1081_v36 = vsel %vm1075_vm11, %v1079_v49, -1e+30 }
 0x5fd   :  { %v1050_v45 = vmax.f32 %v1034_v38, %v1048_v1  ;;  %v1051_v51 = vmax.f32 %v1035_v54, %v1049_v32  ;;  %vm1107_vm9 = vcmp.eq.s32.totalorder %v7717_v0, 1  ;;  %v1096_v52 = vsel %vm1090_vm3, %v1095_v3, -1e+30 }
 0x5fe   :  { %v1127_v41 = vrot.slane %v7766_v29, %v7737_v26  ;;  %vm1122_vm10 = vcmp.eq.s32.totalorder %v7719_v2, 1  ;;  %v1097_v35 = vsel %vm1091_vm4, %v1095_v3, -1e+30  ;;  %vm1123_vm13 = vcmp.eq.s32.totalorder %v1121_v53, 1  ;;  %v1169_v53 = vpop.permute.xlu0 %1168 }
 0x5ff   :  { %v1066_v28 = vmax.f32 %v1050_v45, %v1064_v56  ;;  %v1067_v4 = vmax.f32 %v1051_v51, %v1065_v57  ;;  %v1112_v61 = vsel %vm1106_vm15, %v1111_v31, -1e+30  ;;  %v1143_v33 = vrot.slane %v7766_v29, %v7746_v34  ;;  %v1185_v51 = vpop.permute.xlu1 %1184 }
 0x600   :  { %vm1138_vm11 = vcmp.eq.s32.totalorder %v7729_v8, 1  ;;  %v1113_v0 = vsel %vm1107_vm9, %v1111_v31, -1e+30  ;;  %vm1139_vm14 = vcmp.eq.s32.totalorder %v7751_v37, 1  ;;  %v1128_v49 = vsel %vm1122_vm10, %v1127_v41, -1e+30 }
 0x601   :  { %v1082_v46 = vmax.f32 %v1066_v28, %v1080_v6  ;;  %v1083_v59 = vmax.f32 %v1067_v4, %v1081_v36  ;;  %v1159_v2 = vrot.slane %v7766_v29, %v7754_v39  ;;  %vm1154_vm3 = vcmp.eq.s32.totalorder %v1150_v58, 1 }
 0x602   :  { %v1129_v32 = vsel %vm1123_vm13, %v1127_v41, -1e+30  ;;  %vm1155_vm15 = vcmp.eq.s32.totalorder %v7774_v44, 1  ;;  %v1144_v56 = vsel %vm1138_vm11, %v1143_v33, -1e+30  ;;  %v1175_v8 = vrot.slane %v7766_v29, %v7760_v42  ;;  %vm7821_vm11 = vmpackc.low %vm8350_vm12, %vm8350_vm12 }
 0x603   :  { %v1098_v38 = vmax.f32 %v1082_v46, %v1096_v52  ;;  %v1099_v60 = vmax.f32 %v1083_v59, %v1097_v35  ;;  %vm1170_vm4 = vcmp.eq.s32.totalorder %v1166_v55, 1  ;;  %v1145_v3 = vsel %vm1139_vm14, %v1143_v33, -1e+30 }
 0x604   :  { %v1191_v57 = vrot.slane %v7766_v29, %v7769_v47  ;;  %v1160_v4 = vsel %vm1154_vm3, %v1159_v2, -1e+30  ;;  %vm1171_vm9 = vcmp.eq.s32.totalorder %v1169_v53, 1  ;;  %vm1186_vm10 = vcmp.eq.s32.totalorder %v1182_v48, 1  ;;  %v554_v48 = vld [vmem:[#allocation23] sm:$0x1] }
 0x605   :  { %v1114_v54 = vmax.f32 %v1098_v38, %v1112_v61  ;;  %v1115_v1 = vmax.f32 %v1099_v60, %v1113_v0  ;;  %v1161_v6 = vsel %vm1155_vm15, %v1159_v2, -1e+30  ;;  %vm1187_vm13 = vcmp.eq.s32.totalorder %v1185_v51, 1  ;;  %v5501_v60 = vld [vmem:[#allocation22] ss:$0 sm:$0xff] }
 0x606   :  { %v1176_v58 = vsel %vm1170_vm4, %v1175_v8, -1e+30  ;;  %v1177_v36 = vsel %vm1171_vm9, %v1175_v8, -1e+30  ;;  %v1192_v59 = vsel %vm1186_vm10, %v1191_v57, -1e+30  ;;  %vm1919_vm9 = vcmp.lt.s32.totalorder %v7560_v11, %v7562_v12 }
 0x607   :  { %v1130_v45 = vmax.f32 %v1114_v54, %v1128_v49  ;;  %v1131_v9 = vmax.f32 %v1115_v1, %v1129_v32  ;;  %v1193_v55 = vsel %vm1187_vm13, %v1191_v57, -1e+30  ;;  %vm7190_vm14 = vmmov 0   ;;  %v5504_v54 = vld [vmem:[#allocation2] ss:$0 sm:$0xff] }
 0x608   :  { %v7191_v38 = vmov 1.0|1.0  }
 0x609   :  { %v1146_v37 = vmax.f32 %v1130_v45, %v1144_v56  ;;  %v1147_v28 = vmax.f32 %v1131_v9, %v1145_v3 }
 0x60b   :  { %v1162_v31 = vmax.f32 %v1146_v37, %v1160_v4  ;;  %v1163_v44 = vmax.f32 %v1147_v28, %v1161_v6 }
 0x60d   :  { %v1178_v46 = vmax.f32 %v1162_v31, %v1176_v58  ;;  %v1179_v52 = vmax.f32 %v1163_v44, %v1177_v36 }
 0x60f   :  { %v1194_v41 = vmax.f32 %v1178_v46, %v1192_v59  ;;  %v1195_v35 = vmax.f32 %v1179_v52, %v1193_v55 }
 0x611   :  { %5811 = vmatprep.mubr.msk.f32.mxu1 %vm8350_vm12, %v1194_v41 }
 0x612   :  { %5812 = vmatmul.mubr.msk.f32.vlgmr.msra.gmra.mrb[4].mxu1 %vm8350_vm12, %v1195_v35 }
 0x613   :  { %6182 = vmatpush3.bf16.xpose.msk.msra.mxu1 %vm7821_vm11, %v6180_v43  ;;  %5829 = vmatprep.mubr.msk.f32.mxu1 %vm7190_vm14, %v7173_v23 }
 0x614   :  { %6191 = vmatprep.subr.bf16.mxu1 %v7189_v50 }
 0x61a   :  { %5830 = vmatmul.mubr.msk.f32.vlgmr.msra.gmra.mrb[6].mxu1 %vm8350_vm12, %v554_v48 }
 0x61b   :  { %5850 = vmatprep.mubr.msk.f32.mxu1 %vm7190_vm14, %v7173_v23 }
 0x6e5   :  { %v5813_v61 = vpop.f32.mrb[4].mxu1 }
 0x6e6   :  { %v1274_v33 = vpop.f32.mrb[5].mxu1  ;;  %v1280_v18 = vadd.f32 %v5813_v61, %v5501_v60  ;;  %v560_v61 = vld [vmem:[#allocation4] sm:$0x1] }
 0x6e7   :  { %v1275_v0 = vadd.f32 %v5501_v60, %v1274_v33  ;;  %v557_v33 = vld [vmem:[#allocation3] sm:$0x1] }
 0x6e9   :  { %5822 = vmatprep.mubr.msk.f32.mxu0 %vm8350_vm12, %v1275_v0 }
 0x6ea   :  { %5823 = vmatmul.mubr.msk.f32.vlgmr.msra.gmra.mrb[4].mxu0 %vm8350_vm12, %v1280_v18 }
 0x6eb   :  { %6186 = vmatpush3.bf16.msra.mxu0 %v7647_v14 }
 0x6ec   :  { %6187 = vmatprep.subr.bf16.mxu0 %v7189_v50 }
 0x6ed   :  { %v1445_v29 = vpop.f32.mrb[6].mxu1 }
 0x6ee   :  { %v5831_v43 = vpop.f32.mrb[7].mxu1  ;;  %v1462_v32 = vrot.slane %v1445_v29, %v7724_v5 }
 0x7bd   :  { %v5824_v1 = vpop.f32.mrb[4].mxu0 }
 0x7be   :  { %v1367_v49 = vadd.f32 %v5824_v1, %v5504_v54  ;;  %v1361_v2 = vpop.f32.mrb[5].mxu0 }
 0x7bf   :  { %v1362_v53 = vadd.f32 %v5504_v54, %v1361_v2 }
 0x7c0   :  { %1456 = vperm.xlu1 %6408, %v1367_v49  }
 0x7c1   :  { %1451 = vperm.xlu0 %6407, %v1362_v53   ;;  %v556_v53 = vld [vmem:[#allocation25] sm:$0x1] }
 0x83f   :  { %v1457_v45 = vpop.permute.xlu1 %1456 }
 0x840   :  { %v1464_v9 = vadd.f32 %v1462_v32, %v1457_v45  ;;  %v1452_v56 = vpop.permute.xlu0 %1451  ;;  %v559_v45 = vld [vmem:[#allocation28] sm:$0x1] }
 0x841   :  { %v1463_v8 = vadd.f32 %v1462_v32, %v1452_v56  ;;  %v558_v32 = vld [vmem:[#allocation26] sm:$0x1] }
 0x842   :  { %v1468_v51 = vmul.f32 0.2, %v1464_v9  ;;  %vm1466_vm3 = vcmp.gt.f32.partialorder %v1464_v9, 0.0 }
 0x843   :  { %v1467_v14 = vmul.f32 0.2, %v1463_v8  ;;  %vm1465_vm15 = vcmp.gt.f32.partialorder %v1463_v8, 0.0 }
 0x844   :  { %v1470_v3 = vsel %vm1466_vm3, %v1464_v9, %v1468_v51 }
 0x845   :  { %v1472_v37 = vsel %vm937_vm8, %v1470_v3, -1e+30  ;;  %v1469_v57 = vsel %vm1465_vm15, %v1463_v8, %v1467_v14  ;;  %vm1920_vm8 = vcmp.lt.s32.totalorder %v7565_v13, %v7562_v12 }
 0x846   :  { %v1476_v28 = vsel %vm576_vm0, %v1472_v37, -inf  ;;  %v1471_v4 = vsel %vm936_vm7, %v1469_v57, -1e+30  ;;  %vm6200_vm7 = vmpackc.low %vm7592_vm6, %vm7579_vm5  ;;  %vm8413_vm5 = vcmask 261120  }
 0x847   :  { %1477 = vmax.xlane.f32.xlu0 %v1476_v28  ;;  %v1473_v6 = vsel %vm576_vm0, %v1471_v4, -inf }
 0x848   :  { %1474 = vmax.xlane.f32.xlu1 %v1473_v6 }
 0x8d4   :  { %v1478_v31 = vpop.xlane.xlu0 %1477 }
 0x8d5   :  { %v1480_v44 = vsub.f32 %v1472_v37, %v1478_v31  ;;  %v1475_v58 = vpop.xlane.xlu1 %1474 }
 0x8d6   :  { %v1479_v36 = vsub.f32 %v1471_v4, %v1475_v58 }
 0x8d7   :  { %v1483_v46 = vmul.f32 1.442695, %v1480_v44 }
 0x8d8   :  { %v1481_v59 = vmul.f32 1.442695, %v1479_v36 }
 0x8d9   :  { %6429 = vpow2.f32 %v1483_v46 }
 0x8da   :  { %6431 = vpow2.f32 %v1481_v59 }
 0x8e3   :  { %v6430_v52 = vpop.eup %6429 }
 0x8e4   :  { %v6432_v55 = vpop.eup %6431  ;;  %v1486_v41 = vmul.f32 %v6430_v52, %v7602_v27 }
 0x8e5   :  { %v1485_v35 = vmul.f32 %v6432_v55, %v7587_v24 }
 0x8e6   :  { %v1490_v48 = vsel %vm576_vm0, %v1486_v41, 0.0 }
 0x8e7   :  { %1491 = vadd.xlane.f32.xlu1 %v1490_v48  ;;  %v1487_v60 = vsel %vm576_vm0, %v1485_v35, 0.0  ;;  %v569_v48 = vsel %vm567_vm2, 1.0, %v7173_v23 }
 0x8e8   :  { %1488 = vadd.xlane.f32.xlu0 %v1487_v60 }
 0x8f8   :  { %1741 = vperm.xlu1 %6408, %v560_v61  }
 0x8fe   :  { %1580 = vperm.xlu0 %6407, %v557_v33  }
 0x974   :  { %v1492_v0 = vpop.xlane.xlu1 %1491 }
 0x975   :  { %6433 = vrcp.f32 %v1492_v0  ;;  %v1489_v18 = vpop.xlane.xlu0 %1488 }
 0x976   :  { %6435 = vrcp.f32 %v1489_v18 }
 0x978   :  { %v1742_v4 = vpop.permute.xlu1 %1741 }
 0x979   :  { %v1747_v6 = vrot.slane %v1742_v4, %v7724_v5 }
 0x97d   :  { %v1581_v9 = vpop.permute.xlu0 %1580 }
 0x97e   :  { %v1586_v56 = vrot.slane %v1581_v9, %v7724_v5 }
 0x97f   :  { %v6434_v29 = vpop.eup %6433 }
 0x980   :  { %v6436_v43 = vpop.eup %6435  ;;  %v7853_v54 = vmul.f32 %v6434_v29, %v1486_v41 }
 0x981   :  { %v7855_v27 = vmul.f32 %v6436_v43, %v1485_v35 }
 0x983   :  { %5836 = vmatprep.mubr.msk.f32.mxu0 %vm576_vm0, %v7855_v27  ;;  %v6209_v24 = vpack.c.bf16 %v7853_v54, %v7855_v27  ;;  %v2331_v27 = vld [vmem:[%s8412_s7 + $0x8] sm:$0xff] }
 0x984   :  { %5837 = vmatmul.mubr.msk.f32.vlgmr.msra.gmra.mrb[6].mxu0 %vm576_vm0, %v7853_v54  ;;  %v2330_v54 = vld [vmem:[%s8412_s7] sm:$0xff] }
 0x985   :  { %5843 = vmatprep.mubr.msk.f32.mxu0 %vm7190_vm14, %v7173_v23  ;;  %v6215_v4 = vpack.c.bf16 %v2331_v27, %v2330_v54  ;;  %v5538_v54 = vld [vmem:[#allocation17] ss:$0 sm:$0xff] }
 0xa57   :  { %v5838_v1 = vpop.f32.mrb[6].mxu0 }
 0xa58   :  { %v1569_v49 = vpop.f32.mrb[7].mxu0 }
 0xa59   :  { %v6188_v2 = vpack.c.bf16 %v5838_v1, %v1569_v49 }
 0xa5b   :  { %6190 = vmatpush3.bf16.xpose.msk.msra.mxu0 %vm7821_vm11, %v6188_v2  ;;  %6194 = vmatpush3.bf16.xpose.msk.msra.mxu1 %vm7821_vm11, %v6188_v2 }
 0xa5c   :  { %6195 = vmatprep.subr.bf16.mxu0 %v7189_v50  ;;  %6199 = vmatprep.subr.bf16.mxu1 %v7189_v50 }
 0xa62   :  { %5844 = vmatmul.mubr.msk.f32.vlgmr.msra.gmra.mrb[8].mxu0 %vm8350_vm12, %v556_v53  ;;  %5851 = vmatmul.mubr.msk.f32.vlgmr.msra.gmra.mrb[8].mxu1 %vm8350_vm12, %v558_v32 }
 0xa63   :  { %6198 = vmatpush3.bf16.xpose.msk.msra.mxu0 %vm7821_vm11, %v6188_v2  ;;  %5857 = vmatprep.mubr.msk.f32.mxu0 %vm7190_vm14, %v7173_v23 }
 0xa64   :  { %6205 = vmatprep.subr.bf16.mxu0 %v7189_v50  ;;  %5864 = vmatprep.mubr.msk.f32.mxu1 %vm7190_vm14, %v7173_v23 }
 0xa65   :  { %6201 = vmatpush3.bf16.msk.msra.mxu1 %vm6200_vm7, %v7191_v38 }
 0xa66   :  { %6202 = vmatprep.subr.bf16.mxu1 %v7189_v50 }
 0xa6a   :  { %5858 = vmatmul.mubr.msk.f32.vlgmr.msra.gmra.mrb[10].mxu0 %vm8350_vm12, %v559_v45 }
 0xa6b   :  { %6207 = vmatpush3.bf16.msra.mxu0 %v6188_v2  ;;  %5878 = vmatprep.mubr.msk.f32.mxu0 %vm7190_vm14, %v7173_v23 }
 0xa6c   :  { %6211 = vmatprep.subr.bf16.mxu0 %v7189_v50 }
 0xb35   :  { %v1662_v8 = vpop.f32.mrb[8].mxu0  ;;  %v1735_v51 = vpop.f32.mrb[8].mxu1 }
 0xb36   :  { %v1663_v14 = vadd.f32 %v1662_v8, %v1586_v56  ;;  %v5845_v3 = vpop.f32.mrb[9].mxu0  ;;  %v5852_v37 = vpop.f32.mrb[9].mxu1  ;;  %v1894_v31 = vmul.f32 %v1735_v51, %v7622_v40  ;;  %v7908_v40 = vsel %vm7570_vm1, 1.0, %v7173_v23 }
 0xb38   :  { %5865 = vmatmul.mubr.msk.f32.vlgmr.msra.gmra.mrb[10].mxu1 %vm576_vm0, %v1663_v14  ;;  %v7927_v14 = vcvt.s32.f32 %v7560_v11 }
 0xb39   :  { %5871 = vmatprep.mubr.msk.f32.mxu1 %vm7190_vm14, %v7173_v23 }
 0xb3d   :  { %v1817_v57 = vpop.f32.mrb[10].mxu0 }
 0xb3e   :  { %v5859_v28 = vpop.f32.mrb[11].mxu0  ;;  %v1818_v58 = vadd.f32 %v1817_v57, %v1747_v6 }
 0xc0b   :  { %v1890_v44 = vpop.f32.mrb[10].mxu1 }
 0xc0c   :  { %v1895_v36 = vsub.f32 %v1890_v44, %v1894_v31  ;;  %v5866_v46 = vpop.f32.mrb[11].mxu1  ;;  %v2332_v44 = vld [vmem:[%s8412_s7 + $0x10] sm:$0xff] }
 0xc0e   :  { %v1896_v59 = vadd.f32 %v1895_v36, %v1818_v58  ;;  %v2333_v58 = vld [vmem:[%s8412_s7 + $0x18] sm:$0xff] }
 0xc0f   :  { %v6218_v36 = vpack.c.bf16 %v2333_v58, %v2332_v44  ;;  %v2342_v44 = vld [vmem:[%s8417_s4 + $0x10] sm:$0xff] }
 0xc10   :  { %v5524_v52 = vmul.f32 -1.442695, %v1896_v59 }
 0xc12   :  { %6437 = vpow2.f32 %v5524_v52 }
 0xc1c   :  { %v6438_v55 = vpop.eup %6437 }
 0xc1d   :  { %v1900_v41 = vadd.f32 1.0, %v6438_v55 }
 0xc1f   :  { %6439 = vrcp.f32 %v1900_v41 }
 0xc29   :  { %v6440_v35 = vpop.eup %6439 }
 0xc2a   :  { %v1906_v60 = vrot.slane %v6440_v35, %v7724_v5 }
 0xc2c   :  { %v1908_v61 = vmul.f32 %v1906_v60, %v569_v48  ;;  %v1907_v33 = vmul.f32 %v1906_v60, %v7908_v40 }
 0xc2e   :  { %v1912_v0 = vsel %vm576_vm0, %v1908_v61, 0.0  ;;  %v1909_v18 = vsel %vm576_vm0, %v1907_v33, 0.0 }
 0xc2f   :  { %1913 = vadd.xlane.f32.xlu0 %v1912_v0  ;;  %1910 = vadd.xlane.f32.xlu1 %v1909_v18 }
 0xcbc   :  { %v1914_v29 = vpop.xlane.xlu0 %1913  ;;  %v1911_v43 = vpop.xlane.xlu1 %1910 }
 0xcbd   :  { %vm1916_vm2 = vcmp.gt.f32.partialorder %v1914_v29, %v1906_v60  ;;  %vm1918_vm4 = vcmp.eq.f32.partialorder %v1914_v29, %v1906_v60  ;;  %vm1917_vm10 = vcmp.eq.f32.partialorder %v1911_v43, %v1906_v60  ;;  %vm1915_vm11 = vcmp.gt.f32.partialorder %v1911_v43, %v1906_v60 }
 0xcbe   :  { %vm1922_vm13 = vmand %vm1918_vm4, %vm1920_vm8  ;;  %v6203_v1 = vpack.c.bf16 %v1914_v29, %v1911_v43 }
 0xcbf   :  { %vm1924_vm3 = vmor %vm1916_vm2, %vm1922_vm13 }
 0xcc0   :  { %v5526_v49 = vsel %vm1924_vm3, 1.0, %v7173_v23  ;;  %vm1921_vm15 = vmand %vm1917_vm10, %vm1919_vm9  ;;  %6204 = vmatpush3.bf16.msra.mxu1 %v6203_v1 }
 0xcc1   :  { %v1930_v13 = vsel %vm576_vm0, %v5526_v49, 0.0  ;;  %vm1923_vm12 = vmor %vm1915_vm11, %vm1921_vm15  ;;  %6208 = vmatprep.subr.bf16.mxu1 %v7189_v50 }
 0xcc2   :  { %v5525_v2 = vsel %vm1923_vm12, 1.0, %v7173_v23  ;;  %vm8418_vm11 = vmmov %vm8413_vm5 }
 0xcc3   :  { %v1929_v53 = vsel %vm576_vm0, %v5525_v2, 0.0 }
 0xcc4   :  { %v1931_v32 = vadd.f32 %v1930_v13, %v1929_v53 }
 0xcc6   :  { %v1932_v45 = vrot.slane %v1931_v32, 4 }
 0xcc8   :  { %v1933_v9 = vadd.f32 %v1932_v45, %v1931_v32  ;;  %v2336_v45 = vld [vmem:[%s8416_s15 + $0x8] sm:$0xff] }
 0xcca   :  { %v1934_v56 = vrot.slane %v1933_v9, 2 }
 0xccc   :  { %v1935_v8 = vadd.f32 %v1934_v56, %v1933_v9 }
 0xcce   :  { %v1936_v51 = vrot.slane %v1935_v8, 1 }
 0xcd0   :  { %v1937_v3 = vadd.f32 %v1936_v51, %v1935_v8 }
 0xcd2   :  { %v1939_v37 = vsub.f32 %v1937_v3, %v7927_v14 }
 0xcd4   :  { %v1940_v57 = vand.u32 2147483647, %v1939_v37  ;;  %v2337_v37 = vld [vmem:[%s8416_s15 + $0x10] sm:$0xff] }
 0xcd6   :  { %vm1941_vm8 = vcmp.lt.f32.partialorder %v1940_v57, 0.5  ;;  %v2338_v57 = vld [vmem:[%s8416_s15 + $0x18] sm:$0xff] }
 0xcd7   :  { %v5527_v28 = vsel %vm1941_vm8, 1.0, %v7173_v23 }
 0xcd8   :  { %5872 = vmatmul.mubr.msk.f32.vlgmr.msra.gmra.mrb[12].mxu1 %vm576_vm0, %v5527_v28  ;;  %5879 = vmatmul.mubr.msk.f32.vlgmr.msra.gmra.mrb[12].mxu0 %vm576_vm0, %v5527_v28 }
 0xcd9   :  { %6210 = vmatpush3.bf16.msra.mxu1 %v6209_v24  ;;  %5885 = vmatprep.mubr.msk.f32.mxu1 %vm7190_vm14, %v7173_v23 }
 0xcda   :  { %6213 = vmatpush3.bf16.msk.msra.mxu0 %vm6200_vm7, %v7191_v38  ;;  %5892 = vmatprep.mubr.msk.f32.mxu0 %vm7190_vm14, %v7173_v23  ;;  %vm2359_vm7 = vcmask 64512  }
 0xcdb   :  { %5895 = vmatprep.subr.mxu1 %v7173_v23  ;;  %6214 = vmatprep.subr.bf16.mxu0 %v7189_v50 }
 0xcdc   :  { %5886 = vmatmul.mubr.msk.f32.vlgmr.msra.gmra.mrb[14].mxu1 %vm576_vm0, %v5527_v28  ;;  %v6224_v28 = vpack.c.bf16 %v2338_v57, %v2337_v37 }
 0xcdd   :  { %5897 = vmatprep.mubr.msk.f32.mxu1 %vm7190_vm14, %v7173_v23 }
 0xdab   :  { %v2013_v25 = vpop.f32.mrb[12].mxu1  ;;  %v2083_v21 = vpop.f32.mrb[12].mxu0 }
 0xdac   :  { %v5880_v24 = vpop.f32.mrb[13].mxu0  ;;  %2089 = vperm.xlu0 %6407, %v2013_v25   ;;  %v5873_v38 = vpop.f32.mrb[13].mxu1 }
 0xdaf   :  { %v2159_v6 = vpop.f32.mrb[14].mxu1 }
 0xdb0   :  { %v5887_v31 = vpop.f32.mrb[15].mxu1  ;;  %5893 = vmatmul.mubr.msk.f32.vlgmr.msra.gmra.mrb[14].mxu0 %vm576_vm0, %v2159_v6  ;;  %5896 = vmatpush3.xpose.msk.msra.mxu1 %vm576_vm0, %v2159_v6  ;;  %v2340_v6 = vld [vmem:[%s8417_s4] sm:$0xff] }
 0xdb1   :  { %6216 = vmatpush3.bf16.msra.mxu0 %v6215_v4  ;;  %5908 = vmatprep.mubr.msk.f32.mxu0 %vm7190_vm14, %v7173_v23  ;;  %v2341_v31 = vld [vmem:[%s8417_s4 + $0x8] sm:$0xff] }
 0xdb2   :  { %6217 = vmatprep.subr.bf16.mxu0 %v7189_v50  ;;  %5911 = vmatprep.subr.mxu1 %v7173_v23  ;;  %v6227_v58 = vpack.c.bf16 %v2341_v31, %v2340_v6 }
 0xdb3   :  { %6409 = vset.pattern.permute.xlu0 %v7174_v62 }
 0xdb5   :  { %6219 = vmatpush3.bf16.msra.mxu0 %v6218_v36  ;;  %v2343_v36 = vld [vmem:[%s8417_s4 + $0x18] sm:$0xff] }
 0xdb6   :  { %5927 = vmatprep.subr.mxu0 %v7173_v23 }
 0xe2b   :  { %v2090_v46 = vpop.permute.xlu0 %2089 }
 0xe2c   :  { %v7963_v59 = vmul.f32 %v2090_v46, %v2083_v21  ;;  %v6230_v46 = vpack.c.bf16 %v2343_v36, %v2342_v44 }
 0xe2e   :  { %5909 = vmatmul.mubr.msk.f32.vlgmr.msra.gmra.mrb[16].mxu0 %vm8413_vm5, %v7963_v59 }
 0xe2f   :  { %5929 = vmatprep.mubr.msk.f32.mxu0 %vm7190_vm14, %v7173_v23 }
 0xe83   :  { %v2232_v52 = vpop.f32.mrb[14].mxu0 }
 0xe84   :  { %v5894_v55 = vpop.f32.mrb[15].mxu0  ;;  %5898 = vmatmul.mubr.msk.f32.vlgmr.msra.gmra.mrb[16].mxu1 %vm576_vm0, %v2232_v52  ;;  %v2345_v52 = vld [vmem:[%s8419_s18] sm:$0xff] }
 0xe85   :  { %5913 = vmatprep.mubr.msk.f32.mxu1 %vm7190_vm14, %v7173_v23  ;;  %v2346_v55 = vld [vmem:[%s8419_s18 + $0x8] sm:$0xff] }
 0xf01   :  { %v2446_v41 = vpop.f32.mrb[16].mxu0 }
 0xf02   :  { %v5910_v35 = vpop.f32.mrb[17].mxu0  ;;  %5912 = vmatpush3.msra.mxu1 %v2446_v41  ;;  %v2347_v41 = vld [vmem:[%s8419_s18 + $0x10] sm:$0xff] }
 0xf03   :  { %6220 = vmatprep.subr.bf16.mxu1 %v7189_v50  ;;  %v6233_v35 = vpack.c.bf16 %v2346_v55, %v2345_v52 }
 0xf57   :  { %v2305_v48 = vpop.f32.mrb[16].mxu1 }
 0xf58   :  { %v2309_v60 = vsel %vm7570_vm1, 0.0, %v2305_v48  ;;  %v5899_v61 = vpop.f32.mrb[17].mxu1  ;;  %v2348_v48 = vld [vmem:[%s8419_s18 + $0x18] sm:$0xff] }
 0xf59   :  { %vm2310_vm6 = vcmp.gt.f32.partialorder %v2309_v60, 0.0  ;;  %v6236_v60 = vpack.c.bf16 %v2348_v48, %v2347_v41 }
 0xf5a   :  { %v5536_v33 = vsel %vm2310_vm6, 1.0, %v7173_v23 }
 0xf5b   :  { %vm2356_vm12 = vcmp.gt.f32.partialorder %v5536_v33, 0.0 }
 0xf5c   :  { %vm7978_vm2 = vmor %vm7570_vm1, %vm2356_vm12 }
 0xf5d   :  { %v7985_v18 = vsel %vm7978_vm2, 1.0, %v7173_v23 }
 0xf5e   :  { %vm2679_vm4 = vcmp.gt.f32.partialorder %v7985_v18, 0.0  ;;  %v2360_v29 = vsel %vm2359_vm7, %v7985_v18, 0.0 }
 0xf5f   :  { %v2680_v43 = vsel %vm2679_vm4, 1, %v7172_v10  ;;  %2361 = vadd.xlane.f32.xlu1 %v2360_v29 }
 0xf60   :  { %2692 = vperm.xlu0 %6409, %v2680_v43  }
 0xf64   :  { %6412 = vset.pattern.permute.xlu0 %v7179_v19 }
 0xf65   :  { %2722 = vperm.xlu0 %6412, %v2680_v43  }
 0xf69   :  { %6415 = vset.pattern.permute.xlu0 %v7177_v16  ;;  %v2363_v16 = vrot.slane %v2360_v29, 4 }
 0xf6a   :  { %2752 = vperm.xlu0 %6415, %v2680_v43  }
 0xf6b   :  { %v2364_v19 = vadd.f32 %v2363_v16, %v2360_v29  ;;  %v5541_v29 = vld [vmem:[#allocation29] ss:$0 sm:$0xff] }
 0xf6d   :  { %v2365_v1 = vrot.slane %v2364_v19, 2 }
 0xf6e   :  { %6417 = vset.pattern.permute.xlu0 %v7172_v10 }
 0xf6f   :  { %v2366_v49 = vadd.f32 %v2365_v1, %v2364_v19 }
 0xf70   :  { %2682 = vperm.xlu1 %6408, %v2680_v43  }
 0xf71   :  { %v2367_v13 = vrot.slane %v2366_v49, 1 }
 0xf73   :  { %v8001_v2 = vadd.f32 %v2367_v13, %v2366_v49 }
 0xf74   :  { %6410 = vset.pattern.permute.xlu1 %v7175_v63 }
 0xf75   :  { %2702 = vperm.xlu1 %6410, %v2680_v43   ;;  %6441 = vrsqrt.f32 %v8001_v2  ;;  %vm2372_vm13 = vcmp.gt.f32.partialorder %v8001_v2, 0.0 }
 0xf79   :  { %6411 = vset.pattern.permute.xlu1 %v7176_v15 }
 0xf7a   :  { %2712 = vperm.xlu1 %6411, %v2680_v43  }
 0xf7e   :  { %6413 = vset.pattern.permute.xlu1 %v7181_v22 }
 0xf7f   :  { %2732 = vperm.xlu1 %6413, %v2680_v43   ;;  %v6442_v22 = vpop.eup %6441 }
 0xf80   :  { %v2374_v8 = vsel %vm2372_vm13, %v6442_v22, 0.0 }
 0xf83   :  { %6414 = vset.pattern.permute.xlu1 %v7184_v30  ;;  %v2335_v30 = vld [vmem:[%s8416_s15] sm:$0xff] }
 0xf84   :  { %2742 = vperm.xlu1 %6414, %v2680_v43   ;;  %v6221_v51 = vpack.c.bf16 %v2336_v45, %v2335_v30 }
 0xf88   :  { %6416 = vset.pattern.permute.xlu1 %v7172_v10 }
 0xfdf   :  { %v2693_v49 = vpop.permute.xlu0 %2692 }
 0xfe0   :  { %vm2694_vm15 = vcmp.eq.s32.totalorder %v2693_v49, 1 }
 0xfec   :  { %v2362_v53 = vpop.xlane.xlu1 %2361 }
 0xfed   :  { %6443 = vrsqrt.f32 %v2362_v53  ;;  %vm2369_vm10 = vcmp.gt.f32.partialorder %v2362_v53, 0.0 }
 0xff0   :  { %v2683_v61 = vpop.permute.xlu1 %2682 }
 0xff1   :  { %vm2684_vm3 = vcmp.eq.s32.totalorder %v2683_v61, 1  ;;  %v5545_v61 = vld [vmem:[#allocation5] ss:$0 sm:$0xff] }
 0xff4   :  { %v2703_v33 = vpop.permute.xlu1 %2702 }
 0xff5   :  { %vm2704_vm8 = vcmp.eq.s32.totalorder %v2703_v33, 1 }
 0xff7   :  { %v6444_v32 = vpop.eup %6443 }
 0xff8   :  { %v2371_v9 = vsel %vm2369_vm10, %v6444_v32, 0.0 }
 0xff9   :  { %v2375_v56 = vmul.f32 %v2371_v9, %v7985_v18  ;;  %v2713_v16 = vpop.permute.xlu1 %2712 }
 0xffa   :  { %vm2714_vm5 = vcmp.eq.s32.totalorder %v2713_v16, 1 }
 0xffb   :  { %v2376_v3 = vmul.f32 %v2375_v56, %v2374_v8 }
 0xffd   :  { %5914 = vmatmul.mubr.msk.f32.vlgmr.msra.gmra.mrb[18].mxu1 %vm2359_vm7, %v2376_v3 }
 0xffe   :  { %6222 = vmatpush3.bf16.msra.mxu1 %v6221_v51  ;;  %5924 = vmatprep.mubr.msk.f32.mxu1 %vm7190_vm14, %v7173_v23  ;;  %v2733_v45 = vpop.permute.xlu1 %2732  ;;  %v2723_v51 = vpop.permute.xlu0 %2722 }
 0xfff   :  { %6223 = vmatprep.subr.bf16.mxu1 %v7189_v50  ;;  %vm2724_vm6 = vcmp.eq.s32.totalorder %v2723_v51, 1  ;;  %vm2734_vm12 = vcmp.eq.s32.totalorder %v2733_v45, 1 }
0x1002   :  { %6225 = vmatpush3.bf16.msra.mxu1 %v6224_v28  ;;  %v2753_v31 = vpop.permute.xlu0 %2752 }
0x1003   :  { %6232 = vmatprep.subr.bf16.mxu1 %v7189_v50  ;;  %vm2754_vm13 = vcmp.eq.s32.totalorder %v2753_v31, 1 }
0x10d0   :  { %v2525_v27 = vpop.f32.mrb[18].mxu1 }
0x10d1   :  { %v8015_v25 = vadd.f32 %v5538_v54, %v2525_v27  ;;  %v5915_v21 = vpop.f32.mrb[19].mxu1 }
0x10d2   :  { %v2743_v21 = vpop.permute.xlu1 %2742 }
0x10d3   :  { %v2529_v24 = vmax.f32 %v8015_v25, 0.0  ;;  %vm2744_vm10 = vcmp.eq.s32.totalorder %v2743_v21, 1  ;;  %v2354_v21 = vld [vmem:[#allocation37] sm:$0x1] }
0x10d5   :  { %5925 = vmatmul.mubr.msk.f32.vlgmr.msra.gmra.mrb[20].mxu1 %vm8418_vm11, %v2529_v24 }
0x10d6   :  { %5951 = vmatprep.mubr.msk.f32.mxu1 %vm7190_vm14, %v7173_v23  ;;  %6234 = vmatpush3.bf16.msra.mxu1 %v6233_v35 }
0x10d7   :  { %6235 = vmatprep.subr.bf16.mxu1 %v7189_v50 }
0x10da   :  { %6237 = vmatpush3.bf16.msra.mxu1 %v6236_v60 }
0x10db   :  { %5959 = vmatprep.subr.mxu1 %v7173_v23 }
0x11a8   :  { %v2599_v38 = vpop.f32.mrb[20].mxu1 }
0x11a9   :  { %v5926_v4 = vpop.f32.mrb[21].mxu1  ;;  %5928 = vmatpush3.msra.mxu0 %v2599_v38 }
0x11aa   :  { %5930 = vmatmul.mubr.msk.f32.vlgmr.msra.gmra.mrb[18].mxu0 %vm2359_vm7, %v2376_v3  ;;  %6226 = vmatprep.subr.bf16.mxu0 %v7189_v50 }
0x11ab   :  { %5940 = vmatprep.mubr.msk.f32.mxu0 %vm7190_vm14, %v7173_v23  ;;  %6228 = vmatpush3.bf16.msra.mxu0 %v6227_v58 }
0x11ac   :  { %6229 = vmatprep.subr.bf16.mxu0 %v7189_v50 }
0x11af   :  { %6231 = vmatpush3.bf16.msra.mxu0 %v6230_v46 }
0x11b0   :  { %5954 = vmatprep.subr.mxu0 %v7173_v23 }
0x127d   :  { %v2675_v43 = vpop.f32.mrb[18].mxu0 }
0x127e   :  { %v2676_v19 = vadd.f32 %v5541_v29, %v2675_v43  ;;  %v5931_v1 = vpop.f32.mrb[19].mxu0 }
0x1280   :  { %v2688_v13 = vrot.slane %v2676_v19, %v7724_v5  ;;  %v2698_v53 = vrot.slane %v2676_v19, %v7727_v7  ;;  %v2708_v32 = vrot.slane %v2676_v19, %v7734_v20  ;;  %v2718_v56 = vrot.slane %v2676_v19, %v7737_v26 }
0x1281   :  { %v2728_v37 = vrot.slane %v2676_v19, %v7746_v34  ;;  %v2738_v54 = vrot.slane %v2676_v19, %v7754_v39  ;;  %v2748_v4 = vrot.slane %v2676_v19, %v7760_v42  ;;  %v2758_v58 = vrot.slane %v2676_v19, %v7769_v47  ;;  %v2349_v39 = vld [vmem:[#allocation32] sm:$0x1]  ;;  %v5543_v42 = vld [vmem:[#allocation31] ss:$0 sm:$0xff] }
0x1282   :  { %v2689_v22 = vsel %vm2684_vm3, %v2688_v13, -1e+30  ;;  %v2699_v9 = vsel %vm2694_vm15, %v2698_v53, -1e+30  ;;  %v2709_v3 = vsel %vm2704_vm8, %v2708_v32, -1e+30  ;;  %vm8420_vm3 = vmmov %vm8418_vm11 }
0x1283   :  { %v2690_v30 = vmax.f32 %v2689_v22, -1e+30  ;;  %v2719_v28 = vsel %vm2714_vm5, %v2718_v56, -1e+30  ;;  %v2729_v38 = vsel %vm2724_vm6, %v2728_v37, -1e+30  ;;  %vm8421_vm15 = vmmov %vm8420_vm3 }
0x1284   :  { %v2739_v44 = vsel %vm2734_vm12, %v2738_v54, -1e+30  ;;  %v2749_v34 = vsel %vm2744_vm10, %v2748_v4, -1e+30  ;;  %v2759_v52 = vsel %vm2754_vm13, %v2758_v58, -1e+30  ;;  %vm8422_vm8 = vmmov %vm8420_vm3 }
0x1285   :  { %v2700_v8 = vmax.f32 %v2690_v30, %v2699_v9  ;;  %v2355_v53 = vld [vmem:[#allocation7] sm:$0x1]  ;;  %v2352_v37 = vld [vmem:[#allocation6] sm:$0x1]  ;;  %vm8424_vm6 = vmmov %vm8420_vm3 }
0x1286   :  { %v2353_v54 = vld [vmem:[#allocation35] sm:$0x1]  ;;  %vm8425_vm12 = vmmov %vm8420_vm3 }
0x1287   :  { %v2710_v57 = vmax.f32 %v2700_v8, %v2709_v3  ;;  %vm8426_vm10 = vmmov %vm8420_vm3 }
0x1288   :  { %vm8427_vm13 = vmmov %vm8420_vm3 }
0x1289   :  { %v2720_v27 = vmax.f32 %v2710_v57, %v2719_v28 }
0x128b   :  { %v2730_v6 = vmax.f32 %v2720_v27, %v2729_v38  ;;  %v7192_v27 = vmov 1.0  }
0x128d   :  { %v2740_v36 = vmax.f32 %v2730_v6, %v2739_v44 }
0x128f   :  { %v2750_v46 = vmax.f32 %v2740_v36, %v2749_v34 }
0x1291   :  { %v2760_v55 = vmax.f32 %v2750_v46, %v2759_v52 }
0x1293   :  { %5941 = vmatmul.mubr.msk.f32.vlgmr.msra.gmra.mrb[20].mxu0 %vm8418_vm11, %v2760_v55  ;;  %vm8428_vm11 = vmmov %vm8420_vm3 }
0x1294   :  { %5955 = vmatpush3.xpose.msk.msra.mxu0 %vm8420_vm3, %v2676_v19  ;;  %5956 = vmatprep.mubr.msk.f32.mxu0 %vm7190_vm14, %v7173_v23 }
0x1295   :  { %5964 = vmatprep.subr.mxu0 %v7173_v23 }
0x1297   :  { %5957 = vmatmul.mubr.msk.f32.vlgmr.msra.gmra.mrb[22].mxu0 %vm8421_vm15, %v2349_v39 }
0x1298   :  { %5966 = vmatprep.mubr.msk.f32.mxu0 %vm7190_vm14, %v7173_v23 }
0x1366   :  { %v2836_v47 = vpop.f32.mrb[20].mxu0 }
0x1367   :  { %v2837_v41 = vadd.f32 %v5543_v42, %v2836_v47  ;;  %v5942_v35 = vpop.f32.mrb[21].mxu0 }
0x1369   :  { %5952 = vmatmul.mubr.msk.f32.vlgmr.msra.gmra.mrb[22].mxu1 %vm8422_vm8, %v2837_v41 }
0x136a   :  { %5960 = vmatpush3.msra.mxu1 %v2529_v24  ;;  %5961 = vmatprep.mubr.msk.f32.mxu1 %vm7190_vm14, %v7173_v23  ;;  %v2991_v48 = vpop.f32.mrb[22].mxu0 }
0x136b   :  { %5969 = vmatprep.subr.mxu1 %v7173_v23  ;;  %v5958_v60 = vpop.f32.mrb[23].mxu0  ;;  %v3003_v16 = vrot.slane %v2991_v48, %v7724_v5 }
0x143c   :  { %v2915_v33 = vpop.f32.mrb[22].mxu1 }
0x143d   :  { %v2916_v29 = vadd.f32 %v5545_v61, %v2915_v33  ;;  %v5953_v43 = vpop.f32.mrb[23].mxu1 }
0x143f   :  { %2997 = vperm.xlu1 %6416, %v2916_v29  }
0x14be   :  { %v2998_v19 = vpop.permute.xlu1 %2997 }
0x14bf   :  { %v3004_v1 = vadd.f32 %v3003_v16, %v2998_v19 }
0x14c1   :  { %v3006_v49 = vmul.f32 0.2, %v3004_v1  ;;  %vm3005_vm5 = vcmp.gt.f32.partialorder %v3004_v1, 0.0 }
0x14c3   :  { %v3007_v25 = vsel %vm3005_vm5, %v3004_v1, %v3006_v49 }
0x14c4   :  { %v3008_v24 = vsel %vm2679_vm4, %v3007_v25, -1e+30  ;;  %vm8423_vm4 = vmmov %vm8420_vm3 }
0x14c5   :  { %v3009_v13 = vsel %vm2359_vm7, %v3008_v24, -inf }
0x14c6   :  { %3010 = vmax.xlane.f32.xlu1 %v3009_v13 }
0x14d7   :  { %3254 = vperm.xlu1 %6416, %v2355_v53  }
0x1553   :  { %v3011_v22 = vpop.xlane.xlu1 %3010 }
0x1554   :  { %v3012_v32 = vsub.f32 %v3008_v24, %v3011_v22 }
0x1556   :  { %v3013_v30 = vmul.f32 1.442695, %v3012_v32 }
0x1557   :  { %v3255_v52 = vpop.permute.xlu1 %3254 }
0x1558   :  { %6445 = vpow2.f32 %v3013_v30  ;;  %v3260_v55 = vrot.slane %v3255_v52, %v7724_v5 }
0x1562   :  { %v6446_v45 = vpop.eup %6445 }
0x1563   :  { %v3015_v9 = vmul.f32 %v6446_v45, %v7985_v18  ;;  %v2351_v18 = vld [vmem:[#allocation34] sm:$0x1] }
0x1565   :  { %v3016_v56 = vsel %vm2359_vm7, %v3015_v9, 0.0 }
0x1566   :  { %3017 = vadd.xlane.f32.xlu0 %v3016_v56  ;;  %v3829_v56 = vld [vmem:[%s8429_s27] sm:$0xff] }
0x157c   :  { %3096 = vperm.xlu0 %6417, %v2352_v37  }
0x15f3   :  { %v3018_v8 = vpop.xlane.xlu0 %3017 }
0x15f4   :  { %6447 = vrcp.f32 %v3018_v8  ;;  %v3830_v8 = vld [vmem:[%s8429_s27 + $0x8] sm:$0xff] }
0x15fb   :  { %v3097_v38 = vpop.permute.xlu0 %3096 }
0x15fc   :  { %v3102_v4 = vrot.slane %v3097_v38, %v7724_v5 }
0x15fe   :  { %v6448_v51 = vpop.eup %6447 }
0x15ff   :  { %v8067_v3 = vmul.f32 %v6448_v51, %v3015_v9 }
0x1601   :  { %5962 = vmatmul.mubr.msk.f32.vlgmr.msra.gmra.mrb[24].mxu1 %vm2359_vm7, %v8067_v3 }
0x1602   :  { %5971 = vmatprep.mubr.msk.f32.mxu1 %vm7190_vm14, %v7173_v23 }
0x16d4   :  { %v3090_v57 = vpop.f32.mrb[24].mxu1 }
0x16d5   :  { %v5963_v28 = vpop.f32.mrb[25].mxu1  ;;  %5965 = vmatpush3.xpose.msk.msra.mxu0 %vm8423_vm4, %v3090_v57  ;;  %5970 = vmatpush3.xpose.msk.msra.mxu1 %vm8424_vm6, %v3090_v57 }
0x16d6   :  { %5974 = vmatprep.subr.mxu0 %v7173_v23  ;;  %5979 = vmatprep.subr.mxu1 %v7173_v23 }
0x16d8   :  { %5967 = vmatmul.mubr.msk.f32.vlgmr.msra.gmra.mrb[24].mxu0 %vm8425_vm12, %v2351_v18  ;;  %5972 = vmatmul.mubr.msk.f32.vlgmr.msra.gmra.mrb[26].mxu1 %vm8426_vm10, %v2353_v54  ;;  %v3831_v54 = vld [vmem:[%s8429_s27 + $0x10] sm:$0xff]  ;;  %vm3811_vm12 = vcmask 257024  }
0x16d9   :  { %5975 = vmatpush3.xpose.msk.msra.mxu0 %vm8427_vm13, %v3090_v57  ;;  %5980 = vmatpush3.msk.msra.mxu1 %vm7978_vm2, %v7192_v27  ;;  %vm3959_vm13 = vcmask 1043456  }
0x16da   :  { %5976 = vmatprep.mubr.msk.f32.mxu0 %vm7190_vm14, %v7173_v23  ;;  %5981 = vmatprep.mubr.msk.f32.mxu1 %vm7190_vm14, %v7173_v23 }
0x16db   :  { %5989 = vmatprep.subr.mxu1 %v7173_v23  ;;  %5984 = vmatprep.subr.mxu0 %v7173_v23 }
0x16dc   :  { %5977 = vmatmul.mubr.msk.f32.vlgmr.msra.gmra.mrb[26].mxu0 %vm8428_vm11, %v2354_v21 }
0x16dd   :  { %5986 = vmatprep.mubr.msk.f32.mxu0 %vm7190_vm14, %v7173_v23 }
0x17ab   :  { %v3175_v6 = vpop.f32.mrb[24].mxu0  ;;  %v3248_v31 = vpop.f32.mrb[26].mxu1 }
0x17ac   :  { %v3176_v44 = vadd.f32 %v3175_v6, %v3102_v4  ;;  %v5968_v58 = vpop.f32.mrb[25].mxu0  ;;  %v5973_v36 = vpop.f32.mrb[27].mxu1  ;;  %v3407_v39 = vmul.f32 %v3248_v31, %v8001_v2 }
0x17ae   :  { %5982 = vmatmul.mubr.msk.f32.vlgmr.msra.gmra.mrb[28].mxu1 %vm2359_vm7, %v3176_v44 }
0x17af   :  { %5990 = vmatpush3.msra.mxu1 %v3090_v57  ;;  %v3330_v34 = vpop.f32.mrb[26].mxu0  ;;  %5991 = vmatprep.mubr.msk.f32.mxu1 %vm7190_vm14, %v7173_v23  ;;  %v6239_v57 = vpack.c.bf16 %v3830_v8, %v3829_v56 }
0x17b0   :  { %v5978_v46 = vpop.f32.mrb[27].mxu0  ;;  %5999 = vmatprep.subr.mxu1 %v7173_v23  ;;  %v3331_v47 = vadd.f32 %v3330_v34, %v3260_v55 }
0x1881   :  { %v3403_v42 = vpop.f32.mrb[28].mxu1 }
0x1882   :  { %v3408_v41 = vsub.f32 %v3403_v42, %v3407_v39  ;;  %v5983_v35 = vpop.f32.mrb[29].mxu1 }
0x1884   :  { %v3409_v48 = vadd.f32 %v3408_v41, %v3331_v47 }
0x1886   :  { %v5558_v60 = vmul.f32 -1.442695, %v3409_v48 }
0x1888   :  { %6449 = vpow2.f32 %v5558_v60 }
0x1892   :  { %v6450_v61 = vpop.eup %6449 }
0x1893   :  { %v3413_v33 = vadd.f32 1.0, %v6450_v61 }
0x1895   :  { %6451 = vrcp.f32 %v3413_v33 }
0x189f   :  { %v6452_v29 = vpop.eup %6451 }
0x18a0   :  { %v3419_v43 = vrot.slane %v6452_v29, %v7724_v5 }
0x18a2   :  { %v3420_v16 = vmul.f32 %v3419_v43, %v7908_v40 }
0x18a4   :  { %v3421_v19 = vsel %vm2359_vm7, %v3420_v16, 0.0 }
0x18a5   :  { %3422 = vadd.xlane.f32.xlu1 %v3421_v19 }
0x1932   :  { %v3423_v1 = vpop.xlane.xlu1 %3422 }
0x1933   :  { %vm3424_vm3 = vcmp.gt.f32.partialorder %v3423_v1, %v3419_v43  ;;  %vm3425_vm15 = vcmp.eq.f32.partialorder %v3423_v1, %v3419_v43  ;;  %5985 = vmatpush3.msra.mxu0 %v3423_v1 }
0x1934   :  { %vm3426_vm8 = vmand %vm3425_vm15, %vm1919_vm9  ;;  %5994 = vmatprep.subr.mxu0 %v7173_v23 }
0x1935   :  { %vm3427_vm5 = vmor %vm3424_vm3, %vm3426_vm8 }
0x1936   :  { %v5559_v2 = vsel %vm3427_vm5, 1.0, %v7173_v23 }
0x1937   :  { %v3430_v49 = vsel %vm2359_vm7, %v5559_v2, 0.0 }
0x1938   :  { %v3431_v25 = vrot.slane %v3430_v49, 4 }
0x193a   :  { %v3432_v24 = vadd.f32 %v3431_v25, %v3430_v49 }
0x193c   :  { %v3433_v13 = vrot.slane %v3432_v24, 2 }
0x193e   :  { %v3434_v53 = vadd.f32 %v3433_v13, %v3432_v24 }
0x1940   :  { %v3435_v22 = vrot.slane %v3434_v53, 1 }
0x1942   :  { %v3436_v32 = vadd.f32 %v3435_v22, %v3434_v53 }
0x1944   :  { %v3437_v30 = vsub.f32 %v3436_v32, %v7927_v14 }
0x1946   :  { %v3438_v45 = vand.u32 2147483647, %v3437_v30 }
0x1948   :  { %vm3439_vm4 = vcmp.lt.f32.partialorder %v3438_v45, 0.5 }
0x1949   :  { %v5560_v9 = vsel %vm3439_vm4, 1.0, %v7173_v23  ;;  %vm3955_vm4 = vcmask 31744  }
0x194a   :  { %5987 = vmatmul.mubr.msk.f32.vlgmr.msra.gmra.mrb[28].mxu0 %vm2359_vm7, %v5560_v9  ;;  %5992 = vmatmul.mubr.msk.f32.vlgmr.msra.gmra.mrb[30].mxu1 %vm2359_vm7, %v5560_v9 }
0x194b   :  { %5995 = vmatpush3.msra.mxu0 %v8067_v3  ;;  %6000 = vmatpush3.msk.msra.mxu1 %vm7978_vm2, %v7192_v27  ;;  %v3832_v27 = vld [vmem:[%s8429_s27 + $0x18] sm:$0xff]  ;;  %vm8430_vm2 = vmmov %vm8424_vm6 }
0x194c   :  { %5996 = vmatprep.mubr.msk.f32.mxu0 %vm7190_vm14, %v7173_v23  ;;  %6001 = vmatprep.mubr.msk.f32.mxu1 %vm7190_vm14, %v7173_v23  ;;  %v6242_v21 = vpack.c.bf16 %v3832_v27, %v3831_v54  ;;  %v2320_v38 = vsel %vm8430_vm2, %v7963_v59, 0.0  ;;  %vm8431_vm6 = vmmov %vm8430_vm2 }
0x194d   :  { %6004 = vmatprep.subr.mxu0 %v7173_v23  ;;  %6238 = vmatprep.subr.bf16.mxu1 %v7189_v50  ;;  %v2313_v4 = vsel %vm8431_vm6, %v7963_v59, -inf  ;;  %v2321_v6 = vrot.slane %v2320_v38, 4  ;;  %vm8432_vm10 = vmmov %vm8430_vm2 }
0x194e   :  { %5997 = vmatmul.mubr.msk.f32.vlgmr.msra.gmra.mrb[30].mxu0 %vm2359_vm7, %v5560_v9  ;;  %v2314_v31 = vrot.slane %v2313_v4, 4 }
0x194f   :  { %6006 = vmatprep.mubr.msk.f32.mxu0 %vm7190_vm14, %v7173_v23  ;;  %v2322_v44 = vadd.f32 %v2321_v6, %v2320_v38  ;;  %v3835_v6 = vld [vmem:[%s8433_s12 + $0x8] sm:$0xff] }
0x1950   :  { %v2315_v58 = vmax.f32 %v2313_v4, %v2314_v31  ;;  %v3834_v4 = vld [vmem:[%s8433_s12] sm:$0xff] }
0x1951   :  { %v2323_v36 = vrot.slane %v2322_v44, 2 }
0x1952   :  { %v2316_v52 = vrot.slane %v2315_v58, 2 }
0x1953   :  { %v2324_v39 = vadd.f32 %v2323_v36, %v2322_v44 }
0x1954   :  { %v2317_v59 = vmax.f32 %v2315_v58, %v2316_v52  ;;  %v6245_v58 = vpack.c.bf16 %v3835_v6, %v3834_v4 }
0x1955   :  { %v2325_v48 = vrot.slane %v2324_v39, 1 }
0x1956   :  { %v2318_v33 = vrot.slane %v2317_v59, 1 }
0x1957   :  { %v2326_v16 = vadd.f32 %v2325_v48, %v2324_v39  ;;  %v3840_v48 = vld [vmem:[%s8434_s23 + $0x8] sm:$0xff] }
0x1958   :  { %v2319_v2 = vmax.f32 %v2317_v59, %v2318_v33  ;;  %v3842_v33 = vld [vmem:[%s8434_s23 + $0x18] sm:$0xff] }
0x1959   :  { %v2327_v24 = vmul.f32 0.125, %v2326_v16  ;;  %v3845_v16 = vld [vmem:[%s8435_s13 + $0x8] sm:$0xff] }
0x1a1d   :  { %v3511_v0 = vpop.f32.mrb[28].mxu0  ;;  %v3581_v51 = vpop.f32.mrb[30].mxu1 }
0x1a1e   :  { %3587 = vperm.xlu0 %6417, %v3511_v0   ;;  %v5988_v3 = vpop.f32.mrb[29].mxu0  ;;  %v5993_v37 = vpop.f32.mrb[31].mxu1 }
0x1a21   :  { %v3657_v28 = vpop.f32.mrb[30].mxu0 }
0x1a22   :  { %v5998_v18 = vpop.f32.mrb[31].mxu0  ;;  %6002 = vmatmul.mubr.msk.f32.vlgmr.msra.gmra.mrb[32].mxu1 %vm2359_vm7, %v3657_v28  ;;  %6005 = vmatpush3.xpose.msk.msra.mxu0 %vm2359_vm7, %v3657_v28 }
0x1a23   :  { %6240 = vmatpush3.bf16.msra.mxu1 %v6239_v57  ;;  %6017 = vmatprep.mubr.msk.f32.mxu1 %vm7190_vm14, %v7173_v23 }
0x1a24   :  { %6241 = vmatprep.subr.bf16.mxu1 %v7189_v50  ;;  %6020 = vmatprep.subr.mxu0 %v7173_v23 }
0x1a25   :  { %6420 = vset.pattern.permute.xlu0 %v7176_v15 }
0x1a27   :  { %6243 = vmatpush3.bf16.msra.mxu1 %v6242_v21 }
0x1a28   :  { %6036 = vmatprep.subr.mxu1 %v7173_v23 }
0x1a9d   :  { %v3588_v34 = vpop.permute.xlu0 %3587 }
0x1a9e   :  { %v3590_v46 = vmul.f32 %v3588_v34, %v3581_v51  ;;  %v3836_v34 = vld [vmem:[%s8433_s12 + $0x10] sm:$0xff] }
0x1aa0   :  { %v3812_v15 = vsel %vm3811_vm12, %v3590_v46, -inf  ;;  %v3819_v55 = vsel %vm3811_vm12, %v3590_v46, 0.0  ;;  %6018 = vmatmul.mubr.msk.f32.vlgmr.msra.gmra.mrb[34].mxu1 %vm8432_vm10, %v3590_v46  ;;  %v3837_v46 = vld [vmem:[%s8433_s12 + $0x18] sm:$0xff] }
0x1aa1   :  { %v3813_v42 = vrot.slane %v3812_v15, 4  ;;  %v3820_v47 = vrot.slane %v3819_v55, 4  ;;  %6038 = vmatprep.mubr.msk.f32.mxu1 %vm7190_vm14, %v7173_v23  ;;  %v6248_v52 = vpack.c.bf16 %v3837_v46, %v3836_v34 }
0x1aa3   :  { %v3814_v41 = vmax.f32 %v3812_v15, %v3813_v42  ;;  %v3821_v35 = vadd.f32 %v3820_v47, %v3819_v55  ;;  %v5570_v15 = vld [vmem:[#allocation19] ss:$0 sm:$0xff] }
0x1aa5   :  { %v3815_v60 = vrot.slane %v3814_v41, 2  ;;  %v3822_v61 = vrot.slane %v3821_v35, 2 }
0x1aa7   :  { %v3816_v29 = vmax.f32 %v3814_v41, %v3815_v60  ;;  %v3823_v43 = vadd.f32 %v3822_v61, %v3821_v35  ;;  %v3839_v35 = vld [vmem:[%s8434_s23] sm:$0xff]  ;;  %v3841_v60 = vld [vmem:[%s8434_s23 + $0x10] sm:$0xff] }
0x1aa8   :  { %v6251_v61 = vpack.c.bf16 %v3840_v48, %v3839_v35 }
0x1aa9   :  { %v3817_v19 = vrot.slane %v3816_v29, 1  ;;  %v3824_v1 = vrot.slane %v3823_v43, 1 }
0x1aab   :  { %v3818_v49 = vmax.f32 %v3816_v29, %v3817_v19  ;;  %v3825_v25 = vadd.f32 %v3824_v1, %v3823_v43  ;;  %v6254_v29 = vpack.c.bf16 %v3842_v33, %v3841_v60  ;;  %v3844_v43 = vld [vmem:[%s8435_s13] sm:$0xff]  ;;  %v3846_v19 = vld [vmem:[%s8435_s13 + $0x10] sm:$0xff] }
0x1aac   :  { %v6257_v1 = vpack.c.bf16 %v3845_v16, %v3844_v43  ;;  %v3851_v16 = vld [vmem:[#allocation9] sm:$0x1] }
0x1aad   :  { %v3826_v13 = vmul.f32 0.25, %v3825_v25  ;;  %v8142_v53 = vadd.f32 %v3818_v49, %v2319_v2  ;;  %v3847_v2 = vld [vmem:[%s8435_s13 + $0x18] sm:$0xff] }
0x1aae   :  { %v6260_v49 = vpack.c.bf16 %v3847_v2, %v3846_v19  ;;  %v3850_v2 = vld [vmem:[#allocation43] sm:$0x1] }
0x1aaf   :  { %v8144_v22 = vadd.f32 %v3826_v13, %v2327_v24  ;;  %v5574_v24 = vld [vmem:[#allocation38] ss:$0 sm:$0xff] }
0x1af5   :  { %v3730_v32 = vpop.f32.mrb[32].mxu1 }
0x1af6   :  { %v6003_v30 = vpop.f32.mrb[33].mxu1  ;;  %6007 = vmatmul.mubr.msk.f32.vlgmr.msra.gmra.mrb[32].mxu0 %vm2359_vm7, %v3730_v32  ;;  %vm3858_vm7 = vcmask 27648  }
0x1af7   :  { %6022 = vmatprep.mubr.msk.f32.mxu0 %vm7190_vm14, %v7173_v23 }
0x1b73   :  { %v3945_v45 = vpop.f32.mrb[34].mxu1 }
0x1b74   :  { %v6019_v9 = vpop.f32.mrb[35].mxu1  ;;  %6021 = vmatpush3.msk.msra.mxu0 %vm3959_vm13, %v3945_v45 }
0x1b75   :  { %6244 = vmatprep.subr.bf16.mxu0 %v7189_v50 }
0x1bc9   :  { %v3803_v56 = vpop.f32.mrb[32].mxu0 }
0x1bca   :  { %v3807_v8 = vsel %vm7570_vm1, 0.0, %v3803_v56  ;;  %v6008_v0 = vpop.f32.mrb[33].mxu0 }
0x1bcb   :  { %vm3808_vm11 = vcmp.gt.f32.partialorder %v3807_v8, 0.0 }
0x1bcc   :  { %v5568_v51 = vsel %vm3808_vm11, 1.0, %v7173_v23 }
0x1bcd   :  { %vm3855_vm3 = vcmp.gt.f32.partialorder %v5568_v51, 0.0 }
0x1bce   :  { %vm3856_vm15 = vmor %vm7570_vm1, %vm3855_vm3 }
0x1bcf   :  { %v8157_v3 = vsel %vm3856_vm15, 1.0, %v7173_v23  ;;  %vm8436_vm3 = vmmov %vm8430_vm2 }
0x1bd0   :  { %v3859_v37 = vsel %vm3858_vm7, %v8157_v3, 0.0  ;;  %vm4186_vm8 = vcmp.gt.f32.partialorder %v8157_v3, 0.0  ;;  %vm8437_vm15 = vmmov %vm8430_vm2 }
0x1bd1   :  { %3860 = vadd.xlane.f32.xlu0 %v3859_v37  ;;  %v4187_v57 = vsel %vm4186_vm8, 1, %v7172_v10  ;;  %v3862_v17 = vrot.slane %v3859_v37, 4 }
0x1bd2   :  { %4189 = vperm.xlu1 %6416, %v4187_v57  }
0x1bd3   :  { %v3863_v28 = vadd.f32 %v3862_v17, %v3859_v37 }
0x1bd5   :  { %v3864_v18 = vrot.slane %v3863_v28, 2 }
0x1bd6   :  { %6418 = vset.pattern.permute.xlu1 %v7174_v62 }
0x1bd7   :  { %4199 = vperm.xlu1 %6418, %v4187_v57   ;;  %v3865_v54 = vadd.f32 %v3864_v18, %v3863_v28 }
0x1bd9   :  { %v3866_v27 = vrot.slane %v3865_v54, 1 }
0x1bdb   :  { %6419 = vset.pattern.permute.xlu1 %v7175_v63  ;;  %v8169_v21 = vadd.f32 %v3866_v27, %v3865_v54 }
0x1bdc   :  { %4209 = vperm.xlu1 %6419, %v4187_v57  }
0x1bdd   :  { %6453 = vrsqrt.f32 %v8169_v21  ;;  %vm3871_vm5 = vcmp.gt.f32.partialorder %v8169_v21, 0.0 }
0x1be0   :  { %6421 = vset.pattern.permute.xlu1 %v7172_v10 }
0x1be7   :  { %4219 = vperm.xlu0 %6420, %v4187_v57   ;;  %v6454_v63 = vpop.eup %6453 }
0x1be8   :  { %v3873_v44 = vsel %vm3871_vm5, %v6454_v63, 0.0 }
0x1beb   :  { %6422 = vset.pattern.permute.xlu0 %v7172_v10 }
0x1bec   :  { %4565 = vperm.xlu0 %6422, %v3851_v16  }
0x1c51   :  { %v4190_v25 = vpop.permute.xlu1 %4189 }
0x1c52   :  { %vm4191_vm6 = vcmp.eq.s32.totalorder %v4190_v25, 1  ;;  %v3853_v25 = vld [vmem:[#allocation46] sm:$0x1] }
0x1c56   :  { %v4200_v13 = vpop.permute.xlu1 %4199 }
0x1c57   :  { %vm4201_vm12 = vcmp.eq.s32.totalorder %v4200_v13, 1 }
0x1c5b   :  { %v4210_v8 = vpop.permute.xlu1 %4209 }
0x1c5c   :  { %vm4211_vm10 = vcmp.eq.s32.totalorder %v4210_v8, 1 }
0x1c5e   :  { %v3861_v62 = vpop.xlane.xlu0 %3860 }
0x1c5f   :  { %6455 = vrsqrt.f32 %v3861_v62  ;;  %vm3868_vm1 = vcmp.gt.f32.partialorder %v3861_v62, 0.0 }
0x1c66   :  { %v4220_v57 = vpop.permute.xlu0 %4219 }
0x1c67   :  { %vm4221_vm11 = vcmp.eq.s32.totalorder %v4220_v57, 1 }
0x1c69   :  { %v6456_v38 = vpop.eup %6455 }
0x1c6a   :  { %v3870_v31 = vsel %vm3868_vm1, %v6456_v38, 0.0  ;;  %vm8438_vm1 = vmmov %vm8430_vm2 }
0x1c6b   :  { %v3874_v10 = vmul.f32 %v3870_v31, %v8157_v3  ;;  %vm8439_vm5 = vmmov %vm8438_vm1 }
0x1c6d   :  { %v3875_v36 = vmul.f32 %v3874_v10, %v3873_v44  ;;  %v5579_v10 = vld [vmem:[#allocation8] ss:$0 sm:$0xff] }
0x1c6f   :  { %6023 = vmatmul.mubr.msk.f32.vlgmr.msra.gmra.mrb[34].mxu0 %vm3955_vm4, %v3875_v36 }
0x1c70   :  { %6246 = vmatpush3.bf16.msra.mxu0 %v6245_v58  ;;  %6033 = vmatprep.mubr.msk.f32.mxu0 %vm7190_vm14, %v7173_v23 }
0x1c71   :  { %6247 = vmatprep.subr.bf16.mxu0 %v7189_v50 }
0x1c74   :  { %6249 = vmatpush3.bf16.msra.mxu0 %v6248_v52 }
0x1c75   :  { %6256 = vmatprep.subr.bf16.mxu0 %v7189_v50 }
0x1d42   :  { %v4029_v55 = vpop.f32.mrb[34].mxu0 }
0x1d43   :  { %v8183_v39 = vadd.f32 %v5570_v15, %v4029_v55  ;;  %v6024_v42 = vpop.f32.mrb[35].mxu0 }
0x1d45   :  { %v4033_v47 = vmax.f32 %v8183_v39, 0.0 }
0x1d47   :  { %6034 = vmatmul.mubr.msk.f32.vlgmr.msra.gmra.mrb[36].mxu0 %vm8430_vm2, %v4033_v47 }
0x1d48   :  { %6060 = vmatprep.mubr.msk.f32.mxu0 %vm7190_vm14, %v7173_v23  ;;  %6258 = vmatpush3.bf16.msra.mxu0 %v6257_v1 }
0x1d49   :  { %6259 = vmatprep.subr.bf16.mxu0 %v7189_v50 }
0x1d4c   :  { %6261 = vmatpush3.bf16.msra.mxu0 %v6260_v49  ;;  %v3852_v49 = vld [vmem:[#allocation44] sm:$0x1] }
0x1d4d   :  { %6068 = vmatprep.subr.mxu0 %v7173_v23 }
0x1e1a   :  { %v4103_v59 = vpop.f32.mrb[36].mxu0 }
0x1e1b   :  { %v6035_v41 = vpop.f32.mrb[37].mxu0  ;;  %6037 = vmatpush3.msk.msra.mxu1 %vm3959_vm13, %v4103_v59 }
0x1e1c   :  { %6039 = vmatmul.mubr.msk.f32.vlgmr.msra.gmra.mrb[36].mxu1 %vm3955_vm4, %v3875_v36  ;;  %6250 = vmatprep.subr.bf16.mxu1 %v7189_v50 }
0x1e1d   :  { %6049 = vmatprep.mubr.msk.f32.mxu1 %vm7190_vm14, %v7173_v23  ;;  %6252 = vmatpush3.bf16.msra.mxu1 %v6251_v61  ;;  %v3854_v61 = vld [vmem:[#allocation10] sm:$0x1] }
0x1e1e   :  { %6253 = vmatprep.subr.bf16.mxu1 %v7189_v50 }
0x1e21   :  { %6255 = vmatpush3.bf16.msra.mxu1 %v6254_v29 }
0x1e22   :  { %6063 = vmatprep.subr.mxu1 %v7173_v23 }
0x1eef   :  { %v4182_v32 = vpop.f32.mrb[36].mxu1 }
0x1ef0   :  { %v4183_v30 = vadd.f32 %v5574_v24, %v4182_v32  ;;  %v6040_v45 = vpop.f32.mrb[37].mxu1  ;;  %v4566_v24 = vpop.permute.xlu0 %4565 }
0x1ef1   :  { %v4571_v13 = vrot.slane %v4566_v24, %v7724_v5 }
0x1ef2   :  { %v4195_v9 = vrot.slane %v4183_v30, %v7724_v5  ;;  %v4205_v56 = vrot.slane %v4183_v30, %v7727_v7  ;;  %v4215_v51 = vrot.slane %v4183_v30, %v7734_v20  ;;  %v4225_v28 = vrot.slane %v4183_v30, %v7737_v26  ;;  %v3848_v7 = vld [vmem:[#allocation41] sm:$0x1]  ;;  %v5577_v20 = vld [vmem:[#allocation40] ss:$0 sm:$0xff] }
0x1ef4   :  { %v4196_v0 = vsel %vm4191_vm6, %v4195_v9, -1e+30  ;;  %v4206_v17 = vsel %vm4201_vm12, %v4205_v56, -1e+30  ;;  %v4216_v54 = vsel %vm4211_vm10, %v4215_v51, -1e+30  ;;  %vm8441_vm6 = vmmov %vm8438_vm1 }
0x1ef5   :  { %v4197_v37 = vmax.f32 %v4196_v0, -1e+30  ;;  %v4226_v62 = vsel %vm4221_vm11, %v4225_v28, -1e+30  ;;  %vm8442_vm12 = vmmov %vm8438_vm1 }
0x1ef6   :  { %vm8443_vm10 = vmmov %vm8438_vm1 }
0x1ef7   :  { %v4207_v18 = vmax.f32 %v4197_v37, %v4206_v17  ;;  %vm8444_vm11 = vmmov %vm8438_vm1 }
0x1ef9   :  { %v4217_v27 = vmax.f32 %v4207_v18, %v4216_v54 }
0x1efb   :  { %v4227_v63 = vmax.f32 %v4217_v27, %v4226_v62 }
0x1efd   :  { %6050 = vmatmul.mubr.msk.f32.vlgmr.msra.gmra.mrb[38].mxu1 %vm8436_vm3, %v4227_v63  ;;  %vm8445_vm3 = vmmov %vm8438_vm1 }
0x1efe   :  { %6064 = vmatpush3.xpose.msk.msra.mxu1 %vm8437_vm15, %v4183_v30  ;;  %6065 = vmatprep.mubr.msk.f32.mxu1 %vm7190_vm14, %v7173_v23 }
0x1eff   :  { %6073 = vmatprep.subr.mxu1 %v7173_v23 }
0x1f01   :  { %6066 = vmatmul.mubr.msk.f32.vlgmr.msra.gmra.mrb[40].mxu1 %vm8438_vm1, %v3848_v7 }
0x1f02   :  { %6075 = vmatprep.mubr.msk.f32.mxu1 %vm7190_vm14, %v7173_v23 }
0x1fd0   :  { %v4303_v26 = vpop.f32.mrb[38].mxu1 }
0x1fd1   :  { %v4304_v38 = vadd.f32 %v5577_v20, %v4303_v26  ;;  %v6051_v4 = vpop.f32.mrb[39].mxu1 }
0x1fd3   :  { %6061 = vmatmul.mubr.msk.f32.vlgmr.msra.gmra.mrb[38].mxu0 %vm8439_vm5, %v4304_v38 }
0x1fd4   :  { %6069 = vmatpush3.msk.msra.mxu0 %vm3959_vm13, %v4033_v47  ;;  %6070 = vmatprep.mubr.msk.f32.mxu0 %vm7190_vm14, %v7173_v23  ;;  %v4458_v6 = vpop.f32.mrb[40].mxu1 }
0x1fd5   :  { %6078 = vmatprep.subr.mxu0 %v7173_v23  ;;  %v6067_v31 = vpop.f32.mrb[41].mxu1  ;;  %v4470_v34 = vrot.slane %v4458_v6, %v7724_v5 }
0x20a6   :  { %v4382_v44 = vpop.f32.mrb[38].mxu0 }
0x20a7   :  { %v4383_v58 = vadd.f32 %v5579_v10, %v4382_v44  ;;  %v6062_v36 = vpop.f32.mrb[39].mxu0 }
0x20a9   :  { %4464 = vperm.xlu1 %6421, %v4383_v58  }
0x2128   :  { %v4465_v46 = vpop.permute.xlu1 %4464 }
0x2129   :  { %v4471_v52 = vadd.f32 %v4470_v34, %v4465_v46 }
0x212b   :  { %v4473_v15 = vmul.f32 0.2, %v4471_v52  ;;  %vm4472_vm2 = vcmp.gt.f32.partialorder %v4471_v52, 0.0 }
0x212d   :  { %v4474_v55 = vsel %vm4472_vm2, %v4471_v52, %v4473_v15  ;;  %v5086_v15 = vld [vmem:[%s8446_s26] sm:$0xff] }
0x212e   :  { %v4475_v39 = vsel %vm4186_vm8, %v4474_v55, -1e+30  ;;  %vm8440_vm8 = vmmov %vm8438_vm1  ;;  %v5087_v55 = vld [vmem:[%s8446_s26 + $0x8] sm:$0xff] }
0x212f   :  { %v4476_v42 = vsel %vm3858_vm7, %v4475_v39, -inf }
0x2130   :  { %4477 = vmax.xlane.f32.xlu1 %v4476_v42  ;;  %v6269_v42 = vpack.c.bf16 %v5087_v55, %v5086_v15 }
0x21bd   :  { %v4478_v47 = vpop.xlane.xlu1 %4477 }
0x21be   :  { %v4479_v59 = vsub.f32 %v4475_v39, %v4478_v47  ;;  %v5090_v39 = vld [vmem:[%s8447_s28] sm:$0xff]  ;;  %v5091_v47 = vld [vmem:[%s8447_s28 + $0x8] sm:$0xff] }
0x21c0   :  { %v4480_v41 = vmul.f32 1.442695, %v4479_v59  ;;  %v5088_v59 = vld [vmem:[%s8446_s26 + $0x10] sm:$0xff] }
0x21c2   :  { %6457 = vpow2.f32 %v4480_v41  ;;  %v5089_v41 = vld [vmem:[%s8446_s26 + $0x18] sm:$0xff] }
0x21cc   :  { %v6458_v35 = vpop.eup %6457 }
0x21cd   :  { %v4482_v48 = vmul.f32 %v6458_v35, %v8157_v3  ;;  %v6263_v35 = vpack.c.bf16 %v5091_v47, %v5090_v39 }
0x21cf   :  { %v4483_v60 = vsel %vm3858_vm7, %v4482_v48, 0.0 }
0x21d0   :  { %4484 = vadd.xlane.f32.xlu1 %v4483_v60  ;;  %v5093_v60 = vld [vmem:[%s8447_s28 + $0x18] sm:$0xff] }
0x21e1   :  { %4723 = vperm.xlu1 %6421, %v3854_v61   ;;  %v6272_v61 = vpack.c.bf16 %v5089_v41, %v5088_v59 }
0x225d   :  { %v4485_v33 = vpop.xlane.xlu1 %4484 }
0x225e   :  { %6459 = vrcp.f32 %v4485_v33 }
0x2261   :  { %v4724_v0 = vpop.permute.xlu1 %4723 }
0x2262   :  { %v4729_v51 = vrot.slane %v4724_v0, %v7724_v5 }
0x2268   :  { %v6460_v29 = vpop.eup %6459 }
0x2269   :  { %v4487_v43 = vmul.f32 %v6460_v29, %v4482_v48  ;;  %v5092_v48 = vld [vmem:[%s8447_s28 + $0x10] sm:$0xff] }
0x226a   :  { %v6266_v33 = vpack.c.bf16 %v5093_v60, %v5092_v48 }
0x226b   :  { %6071 = vmatmul.mubr.msk.f32.vlgmr.msra.gmra.mrb[40].mxu0 %vm3955_vm4, %v4487_v43 }
0x226c   :  { %6080 = vmatprep.mubr.msk.f32.mxu0 %vm7190_vm14, %v7173_v23 }
0x233e   :  { %v4559_v19 = vpop.f32.mrb[40].mxu0 }
0x233f   :  { %v6072_v1 = vpop.f32.mrb[41].mxu0  ;;  %6074 = vmatpush3.xpose.msk.msra.mxu1 %vm8440_vm8, %v4559_v19  ;;  %6079 = vmatpush3.xpose.msk.msra.mxu0 %vm8441_vm6, %v4559_v19  ;;  %vm5398_vm8 = vcmask 24576  }
0x2340   :  { %6083 = vmatprep.subr.mxu1 %v7173_v23  ;;  %6088 = vmatprep.subr.mxu0 %v7173_v23 }
0x2342   :  { %6076 = vmatmul.mubr.msk.f32.vlgmr.msra.gmra.mrb[42].mxu1 %vm8442_vm12, %v3850_v2  ;;  %6081 = vmatmul.mubr.msk.f32.vlgmr.msra.gmra.mrb[42].mxu0 %vm8443_vm10, %v3852_v49 }
0x2343   :  { %6084 = vmatpush3.xpose.msk.msra.mxu1 %vm8444_vm11, %v4559_v19  ;;  %6089 = vmatpush3.msk.msra.mxu0 %vm3959_vm13, %v8157_v3 }
0x2344   :  { %6085 = vmatprep.mubr.msk.f32.mxu1 %vm7190_vm14, %v7173_v23  ;;  %6090 = vmatprep.mubr.msk.f32.mxu0 %vm7190_vm14, %v7173_v23 }
0x2345   :  { %6098 = vmatprep.subr.mxu0 %v7173_v23  ;;  %6093 = vmatprep.subr.mxu1 %v7173_v23 }
0x2346   :  { %6086 = vmatmul.mubr.msk.f32.vlgmr.msra.gmra.mrb[44].mxu1 %vm8445_vm3, %v3853_v25 }
0x2347   :  { %6095 = vmatprep.mubr.msk.f32.mxu1 %vm7190_vm14, %v7173_v23 }
0x2415   :  { %v4644_v3 = vpop.f32.mrb[42].mxu1  ;;  %v4717_v32 = vpop.f32.mrb[42].mxu0 }
0x2416   :  { %v4645_v30 = vadd.f32 %v4644_v3, %v4571_v13  ;;  %v6077_v45 = vpop.f32.mrb[43].mxu1  ;;  %v6082_v9 = vpop.f32.mrb[43].mxu0  ;;  %v4879_v37 = vmul.f32 %v4717_v32, %v8169_v21 }
0x2418   :  { %6091 = vmatmul.mubr.msk.f32.vlgmr.msra.gmra.mrb[44].mxu0 %vm3955_vm4, %v4645_v30 }
0x2419   :  { %6099 = vmatpush3.msk.msra.mxu0 %vm3959_vm13, %v4559_v19  ;;  %v4799_v56 = vpop.f32.mrb[44].mxu1  ;;  %6100 = vmatprep.mubr.msk.f32.mxu0 %vm7190_vm14, %v7173_v23 }
0x241a   :  { %v6087_v8 = vpop.f32.mrb[45].mxu1  ;;  %6268 = vmatprep.subr.bf16.mxu0 %v7189_v50  ;;  %v4800_v17 = vadd.f32 %v4799_v56, %v4729_v51 }
0x24eb   :  { %v4875_v57 = vpop.f32.mrb[44].mxu0 }
0x24ec   :  { %v4880_v28 = vsub.f32 %v4875_v57, %v4879_v37  ;;  %v6092_v18 = vpop.f32.mrb[45].mxu0  ;;  %v5243_v37 = vld [vmem:[%s8448_s21] sm:$0xff]  ;;  %v5244_v57 = vld [vmem:[%s8448_s21 + $0x8] sm:$0xff] }
0x24ed   :  { %v5246_v18 = vld [vmem:[%s8448_s21 + $0x18] sm:$0xff] }
0x24ee   :  { %v4881_v54 = vadd.f32 %v4880_v28, %v4800_v17  ;;  %v5245_v17 = vld [vmem:[%s8448_s21 + $0x10] sm:$0xff]  ;;  %v6275_v28 = vpack.c.bf16 %v5244_v57, %v5243_v37 }
0x24f0   :  { %v5593_v27 = vmul.f32 -1.442695, %v4881_v54 }
0x24f2   :  { %6461 = vpow2.f32 %v5593_v27 }
0x24fc   :  { %v6462_v62 = vpop.eup %6461 }
0x24fd   :  { %v4885_v63 = vadd.f32 1.0, %v6462_v62  ;;  %v5240_v62 = vld [vmem:[#allocation47] sm:$0x1] }
0x24ff   :  { %6463 = vrcp.f32 %v4885_v63 }
0x2509   :  { %v6464_v7 = vpop.eup %6463 }
0x250a   :  { %v4891_v20 = vrot.slane %v6464_v7, %v7724_v5 }
0x250c   :  { %v4892_v26 = vmul.f32 %v4891_v20, %v7908_v40 }
0x250e   :  { %v4893_v38 = vsel %vm3858_vm7, %v4892_v26, 0.0  ;;  %v5322_v26 = vld [vmem:[%s8451_s19] sm:$0xff] }
0x250f   :  { %4894 = vadd.xlane.f32.xlu0 %v4893_v38  ;;  %v5323_v38 = vld [vmem:[%s8451_s19 + $0x8] sm:$0xff] }
0x259c   :  { %v4895_v4 = vpop.xlane.xlu0 %4894 }
0x259d   :  { %vm4896_vm15 = vcmp.gt.f32.partialorder %v4895_v4, %v4891_v20  ;;  %vm4897_vm1 = vcmp.eq.f32.partialorder %v4895_v4, %v4891_v20  ;;  %6094 = vmatpush3.msk.msra.mxu1 %vm3959_vm13, %v4895_v4  ;;  %vm5068_vm13 = vcmask 254976   ;;  %v6281_v4 = vpack.c.bf16 %v5323_v38, %v5322_v26 }
0x259e   :  { %vm4898_vm5 = vmand %vm4897_vm1, %vm1919_vm9  ;;  %6262 = vmatprep.subr.bf16.mxu1 %v7189_v50 }
0x259f   :  { %vm4899_vm2 = vmor %vm4896_vm15, %vm4898_vm5 }
0x25a0   :  { %v5594_v21 = vsel %vm4899_vm2, 1.0, %v7173_v23 }
0x25a1   :  { %v4902_v5 = vsel %vm3858_vm7, %v5594_v21, 0.0  ;;  %vm8449_vm7 = vmmov %vm8445_vm3  ;;  %v5247_v21 = vld [vmem:[#allocation49] sm:$0x1] }
0x25a2   :  { %v4903_v40 = vrot.slane %v4902_v5, 4 }
0x25a4   :  { %v4904_v6 = vadd.f32 %v4903_v40, %v4902_v5 }
0x25a6   :  { %v4905_v31 = vrot.slane %v4904_v6, 2 }
0x25a8   :  { %v4906_v10 = vadd.f32 %v4905_v31, %v4904_v6  ;;  %v5324_v31 = vld [vmem:[#allocation50] sm:$0x1] }
0x25aa   :  { %v4907_v44 = vrot.slane %v4906_v10, 1 }
0x25ac   :  { %v4908_v58 = vadd.f32 %v4907_v44, %v4906_v10 }
0x25ae   :  { %v4909_v36 = vsub.f32 %v4908_v58, %v7927_v14 }
0x25b0   :  { %v4910_v11 = vand.u32 2147483647, %v4909_v36 }
0x25b2   :  { %vm4911_vm9 = vcmp.lt.f32.partialorder %v4910_v11, 0.5 }
0x25b3   :  { %v5595_v12 = vsel %vm4911_vm9, 1.0, %v7173_v23 }
0x25b4   :  { %6096 = vmatmul.mubr.msk.f32.vlgmr.msra.gmra.mrb[46].mxu1 %vm3955_vm4, %v5595_v12  ;;  %6101 = vmatmul.mubr.msk.f32.vlgmr.msra.gmra.mrb[46].mxu0 %vm3955_vm4, %v5595_v12  ;;  %vm8450_vm4 = vmmov %vm8445_vm3 }
0x25b5   :  { %6122 = vmatprep.mubr.msk.f32.mxu0 %vm7190_vm14, %v7173_v23  ;;  %6111 = vmatprep.mubr.msk.f32.mxu1 %vm7190_vm14, %v7173_v23 }
0x25b6   :  { %6270 = vmatpush3.bf16.msra.mxu0 %v6269_v42  ;;  %6264 = vmatpush3.bf16.msra.mxu1 %v6263_v35 }
0x25b7   :  { %6271 = vmatprep.subr.bf16.mxu0 %v7189_v50  ;;  %6265 = vmatprep.subr.bf16.mxu1 %v7189_v50 }
0x25ba   :  { %6273 = vmatpush3.bf16.msra.mxu0 %v6272_v61  ;;  %6267 = vmatpush3.bf16.msra.mxu1 %v6266_v33 }
0x25bb   :  { %6280 = vmatprep.subr.bf16.mxu0 %v7189_v50  ;;  %6274 = vmatprep.subr.bf16.mxu1 %v7189_v50 }
0x2687   :  { %v4986_v14 = vpop.f32.mrb[46].mxu1  ;;  %v5058_v34 = vpop.f32.mrb[46].mxu0 }
0x2688   :  { %v6102_v46 = vpop.f32.mrb[47].mxu0  ;;  %5064 = vperm.xlu1 %6421, %v4986_v14   ;;  %v6097_v52 = vpop.f32.mrb[47].mxu1 }
0x2707   :  { %v5065_v29 = vpop.permute.xlu1 %5064 }
0x2708   :  { %v5067_v43 = vmul.f32 %v5065_v29, %v5058_v34 }
0x270a   :  { %v5069_v16 = vsel %vm5068_vm13, %v5067_v43, -inf  ;;  %v5076_v19 = vsel %vm5068_vm13, %v5067_v43, 0.0 }
0x270b   :  { %v5070_v1 = vrot.slane %v5069_v16, 4  ;;  %v5077_v2 = vrot.slane %v5076_v19, 4 }
0x270d   :  { %v5071_v49 = vmax.f32 %v5069_v16, %v5070_v1  ;;  %v5078_v25 = vadd.f32 %v5077_v2, %v5076_v19 }
0x270f   :  { %v5072_v24 = vrot.slane %v5071_v49, 2  ;;  %v5079_v13 = vrot.slane %v5078_v25, 2 }
0x2711   :  { %v5073_v3 = vmax.f32 %v5071_v49, %v5072_v24  ;;  %v5080_v32 = vadd.f32 %v5079_v13, %v5078_v25 }
0x2713   :  { %v5074_v30 = vrot.slane %v5073_v3, 1  ;;  %v5081_v45 = vrot.slane %v5080_v32, 1 }
0x2715   :  { %v5075_v9 = vmax.f32 %v5073_v3, %v5074_v30  ;;  %v5082_v56 = vadd.f32 %v5081_v45, %v5080_v32 }
0x2717   :  { %v5083_v8 = vmul.f32 0.5, %v5082_v56  ;;  %v5084_v0 = vadd.f32 %v5075_v9, %v8142_v53  ;;  %v6278_v53 = vpack.c.bf16 %v5246_v18, %v5245_v17 }
0x2719   :  { %v5085_v51 = vadd.f32 %v5083_v8, %v8144_v22  ;;  %6123 = vmatmul.mubr.msk.f32.vlgmr.msra.gmra.mrb[48].mxu0 %vm8449_vm7, %v5084_v0 }
0x271a   :  { %6140 = vmatprep.mubr.msk.f32.mxu0 %vm7190_vm14, %v7173_v23  ;;  %6282 = vmatpush3.bf16.msra.mxu0 %v6281_v4 }
0x271b   :  { %6112 = vmatmul.mubr.msk.f32.vlgmr.msra.gmra.mrb[48].mxu1 %vm8450_vm4, %v5085_v51 }
0x271c   :  { %6133 = vmatprep.mubr.msk.f32.mxu1 %vm7190_vm14, %v7173_v23  ;;  %6276 = vmatpush3.bf16.msra.mxu1 %v6275_v28  ;;  %vm8452_vm14 = vmmov %vm8445_vm3 }
0x271d   :  { %6277 = vmatprep.subr.bf16.mxu1 %v7189_v50 }
0x2720   :  { %6279 = vmatpush3.bf16.msra.mxu1 %v6278_v53 }
0x27ec   :  { %v5236_v22 = vpop.f32.mrb[48].mxu0 }
0x27ed   :  { %v6124_v54 = vpop.f32.mrb[49].mxu0 }
0x27ee   :  { %v5163_v27 = vpop.f32.mrb[48].mxu1 }
0x27ef   :  { %v5237_v63 = vadd.f32 %v5236_v22, %v5163_v27  ;;  %v6113_v7 = vpop.f32.mrb[49].mxu1 }
0x27f1   :  { %v5241_v20 = vadd.f32 %v5240_v62, %v5237_v63 }
0x27f3   :  { %v5242_v23 = vmax.f32 %v5241_v20, 0.0 }
0x27f5   :  { %6134 = vmatmul.mubr.msk.f32.vlgmr.msra.gmra.mrb[50].mxu1 %vm8452_vm14, %v5242_v23 }
0x28c8   :  { %v5317_v5 = vpop.f32.mrb[50].mxu1 }
0x28c9   :  { %v5318_v40 = vadd.f32 %v5317_v5, %v5247_v21  ;;  %v6135_v6 = vpop.f32.mrb[51].mxu1 }
0x28cb   :  { %v5321_v50 = vmax.f32 %v5318_v40, 0.0 }
0x28cd   :  { %6141 = vmatmul.mubr.msk.f32.vlgmr.msra.gmra.mrb[50].mxu0 %vm576_vm0, %v5321_v50 }
0x29a0   :  { %v5394_v10 = vpop.f32.mrb[50].mxu0 }
0x29a1   :  { %v5395_v44 = vadd.f32 %v5394_v10, %v5324_v31  ;;  %v6142_v58 = vpop.f32.mrb[51].mxu0 }
0x29a3   :  { %v5399_v36 = vsel %vm5398_vm8, %v5395_v44, -inf }
0x29a4   :  { %5400 = vmax.xlane.f32.xlu1 %v5399_v36 }
0x2a31   :  { %v5401_v11 = vpop.xlane.xlu1 %5400 }
0x2a32   :  { %v5402_v12 = vsub.f32 %v5395_v44, %v5401_v11 }
0x2a34   :  { %v5403_v14 = vmul.f32 1.442695, %v5402_v12 }
0x2a36   :  { %6465 = vpow2.f32 %v5403_v14 }
0x2a40   :  { %v6466_v34 = vpop.eup %6465 }
0x2a41   :  { %v5405_v46 = vsel %vm5398_vm8, %v6466_v34, 0.0 }
0x2a42   :  { %5406 = vadd.xlane.f32.xlu0 %v5405_v46 }
0x2acf   :  { %v5407_v52 = vpop.xlane.xlu0 %5406 }
0x2ad0   :  { %6467 = vlog2.f32 %v5407_v52 }
0x2ada   :  { %v6468_v15 = vpop.eup %6467 }
0x2adb   :  { %v5409_v55 = vmul.f32 0.6931472, %v6468_v15 }
0x2add   :  { %v5410_v39 = vsub.f32 %v5402_v12, %v5409_v55 }
0x2adf   :  { %5411 = vst.msk [vmem:[#allocation52] sm:$0x1] %vm5398_vm8, %v5410_v39 }
0x2ae0   :  { %7052 = shalt.err (!%p7049_p2)
}
0x2ae1   :  { %s8453_s25 = sld [smem:[#allocation100_spill]] }
0x2ae7   :  { %s7053_s9 = scalar_lea.hbm %s8453_s25, 16 }
0x2ae8   :  { %p7054_p3 = scmp.ne.s32.totalorder %s8453_s25, %s7053_s9  ;;  %p7057_p4 = scmp.lt.u32.totalorder %s7053_s9, %s8453_s25 }
0x2aea   :  { %p7059_p5 = pnand %p7057_p4, %p7054_p3 }
0x2aec   :  { %7062 = shalt.err (!%p7059_p5)
}
0x2aed   :  { %5421 = dma.vmem_to_hbm [thread:$0]  %s5419_s10, 16, %s8453_s25, [#allocation13]  }
0x2aee   :  { %7091 = dma.done.wait [#allocation13], 16  }
0x2aef   :  { %7092 = vsyncadd [#allocation13], 4294967280 }
0x2af0   :  { %5425 = vsyncpa [#allocation12], 1 }
0x2af1   :  { %5426 = vsyncpa [#allocation15], 1 }
0x2af2   :  { %5427 = vsyncpa [#allocation18], 1 }
0x2af3   :  { %5428 = vsyncpa [#allocation21], 1 }
0x2af4   :  { %5429 = vsyncpa [#allocation24], 1 }
0x2af5   :  { %5430 = vsyncpa [#allocation27], 1 }
0x2af6   :  { %5431 = vsyncpa [#allocation30], 1 }
0x2af7   :  { %5432 = vsyncpa [#allocation33], 1 }
0x2af8   :  { %5433 = vsyncpa [#allocation36], 1 }
0x2af9   :  { %5434 = vsyncpa [#allocation39], 1 }
0x2afa   :  { %5435 = vsyncpa [#allocation42], 1 }
0x2afb   :  { %5436 = vsyncpa [#allocation45], 1 }
0x2afc   :  { %5437 = vsyncpa [#allocation48], 1 }
0x2afd   :  { %5438 = vsyncpa [#allocation51], 1 }
0x2afe   :  { %5439 = vsyncpa [#allocation13], 1 }

</bundles_post_ra>
